<compile_context>
chip_gen: v5e
topology: v5e:2x2
jax: 0.10.0
libtpu: 0.0.40
codegen_flags: <defaults>
</compile_context>

<pallas_src>
import functools

import jax
import jax.numpy as jnp
from jax import lax
from jax.experimental import pallas as pl
from jax.experimental.pallas import tpu as pltpu

EPS = 1e-5


def _round_up(x, m):
    return ((x + m - 1) // m) * m


def _largest_divisor_le(n, cap):
    cap = max(1, min(n, cap))
    best = 1
    for c in range(1, cap + 1):
        if n % c == 0:
            best = c
    return best


# ---------------------------------------------------------------------------
# Pass 1: 3x3x3 conv (stride 1, pad 1, no bias) as shifted-window matmuls,
#         plus per-(n, d)-plane partial BatchNorm statistics.
# ---------------------------------------------------------------------------
def _conv3d_stats_kernel(x_ref, w_ref, y_ref, psum_ref, psumsq_ref, acc_ref, *, H, W):
    """One (n, d_out, kd) grid step.

    x_ref:      (1, 1, P, Cin_p)    bf16  depth plane d_out+kd, P = H*W + 2*(W+1) rows
    w_ref:      (27, Cin_p, Cout_p) bf16  full conv weights, VMEM-resident
    y_ref:      (1, 1, H*W, Cout_p) bf16  conv output plane (written at last kd)
    psum_ref:   (1, 1, 1, Cout_p)   f32   per-plane channel sum       (last kd)
    psumsq_ref: (1, 1, 1, Cout_p)   f32   per-plane channel sum(x^2)  (last kd)
    acc_ref:    (H*W, Cout_p)       f32   accumulator across the kd axis
    """
    HW = H * W
    kd = pl.program_id(2)

    @pl.when(kd == 0)
    def _init():
        acc_ref[...] = jnp.zeros_like(acc_ref)

    plane = x_ref[0, 0]                                        # (P, Cin_p) bf16
    # Column index of each flattened output row (to mask the W boundary); hoisted masks.
    wcol = lax.broadcasted_iota(jnp.int32, (HW, 1), 0) % W
    mask_l = wcol > 0          # tap kw == 0 reads column w-1: invalid for w == 0
    mask_r = wcol < W - 1      # tap kw == 2 reads column w+1: invalid for w == W-1

    contrib = None
    for t in range(9):                                         # static, unrolled taps
        kh, kw = divmod(t, 3)
        start = kh * W + kw                                    # row offset of this tap
        patch = plane[start:start + HW, :]                     # (HW, Cin_p)
        if kw == 0:
            patch = jnp.where(mask_l, patch, jnp.zeros_like(patch))
        elif kw == 2:
            patch = jnp.where(mask_r, patch, jnp.zeros_like(patch))
        tap = jnp.dot(patch, w_ref[kd * 9 + t],
                      preferred_element_type=jnp.float32)      # (HW, Cout_p) f32
        contrib = tap if contrib is None else contrib + tap

    acc_ref[...] += contrib

    @pl.when(kd == pl.num_programs(2) - 1)
    def _finalize():
        acc = acc_ref[...]
        y_ref[0, 0] = acc.astype(y_ref.dtype)
        psum_ref[0, 0] = jnp.sum(acc, axis=0, keepdims=True)
        psumsq_ref[0, 0] = jnp.sum(acc * acc, axis=0, keepdims=True)


# ---------------------------------------------------------------------------
# Pass 2: fused BatchNorm affine + ReLU (lane-dense elementwise).
# ---------------------------------------------------------------------------
def _bn_relu_kernel(y_ref, scale_ref, shift_ref, o_ref):
    y = y_ref[...].astype(jnp.float32)
    o_ref[...] = jnp.maximum(y * scale_ref[...] + shift_ref[...], 0.0).astype(o_ref.dtype)


def conv_bn_relu_block(x_ndhwc, w_ocidhw, gamma, beta, *, eps=EPS, out_dtype=jnp.bfloat16):
    """One convolution_block: Conv3d(k=3, pad=1, stride=1, bias=False) + BN3d + ReLU.

    Returns (N, D, H, W, Cout_p) with Cout_p = round_up(Cout, 128); caller slices channels.
    """
    N, D, H, W, Cin = x_ndhwc.shape
    Cout = w_ocidhw.shape[0]
    HW = H * W
    P = HW + 2 * (W + 1)                    # flattened rows per plane incl. halo
    Cin_p = _round_up(Cin, 8)
    Cout_p = _round_up(Cout, 128)           # lane-dense MXU output / stores

    # Input: depth-padded, (h, w)-flattened with a (W+1)-row zero halo at both ends,
    # channels zero-padded to Cin_p.  Row (W+1) + h*W + w holds voxel (h, w); tap (kh, kw)
    # then reads the contiguous row window [kh*W + kw, kh*W + kw + H*W).
    xr = x_ndhwc.reshape(N, D, HW, Cin)
    pf = jnp.pad(xr, ((0, 0), (1, 1), (W + 1, W + 1), (0, Cin_p - Cin)))
    pf = pf.astype(jnp.bfloat16)            # (N, D+2, P, Cin_p)

    # Weights: torch (Cout, Cin, kd, kh, kw) -> (kd, kh, kw, Cin_p, Cout_p) -> (27, ., .)
    wt = jnp.transpose(w_ocidhw, (2, 3, 4, 1, 0))
    wt = jnp.pad(wt, ((0, 0), (0, 0), (0, 0), (0, Cin_p - Cin), (0, Cout_p - Cout)))
    w27 = wt.reshape(27, Cin_p, Cout_p).astype(jnp.bfloat16)

    cparams1 = pltpu.CompilerParams(
        dimension_semantics=("parallel", "parallel", "arbitrary"),
        vmem_limit_bytes=32 * 1024 * 1024)
    cost1 = pl.CostEstimate(
        flops=2 * N * D * 27 * HW * Cin_p * Cout_p,
        transcendentals=0,
        bytes_accessed=(3 * N * (D + 2) * P * Cin_p * 2      # input planes (3 kd reads)
                        + 27 * Cin_p * Cout_p * 2            # weights (resident)
                        + N * D * HW * Cout_p * 2            # conv output write (bf16)
                        + 2 * N * D * Cout_p * 4))           # BN partial stats

    y, psum, psumsq = pl.pallas_call(
        functools.partial(_conv3d_stats_kernel, H=H, W=W),
        grid=(N, D, 3),
        in_specs=[
            pl.BlockSpec((1, 1, P, Cin_p), lambda n, d, kd: (n, d + kd, 0, 0)),
            pl.BlockSpec((27, Cin_p, Cout_p), lambda n, d, kd: (0, 0, 0)),
        ],
        out_specs=(
            pl.BlockSpec((1, 1, HW, Cout_p), lambda n, d, kd: (n, d, 0, 0)),
            pl.BlockSpec((1, 1, 1, Cout_p), lambda n, d, kd: (n, d, 0, 0)),
            pl.BlockSpec((1, 1, 1, Cout_p), lambda n, d, kd: (n, d, 0, 0)),
        ),
        out_shape=(
            jax.ShapeDtypeStruct((N, D, HW, Cout_p), jnp.bfloat16),
            jax.ShapeDtypeStruct((N, D, 1, Cout_p), jnp.float32),
            jax.ShapeDtypeStruct((N, D, 1, Cout_p), jnp.float32),
        ),
        scratch_shapes=[pltpu.VMEM((HW, Cout_p), jnp.float32)],
        compiler_params=cparams1,
        cost_estimate=cost1,
    )(pf, w27)

    # Train-mode BatchNorm statistics over the whole batch: tiny (N*D x Cout_p) reduction
    # in plain JAX, fused into per-channel scale/shift (f32 to avoid cancellation issues).
    m = jnp.float32(N * D * HW)
    total = jnp.sum(psum, axis=(0, 1, 2))                     # (Cout_p,)
    total_sq = jnp.sum(psumsq, axis=(0, 1, 2))
    mean = total / m
    var = jnp.maximum(total_sq / m - mean * mean, 0.0)        # biased var (PyTorch train BN)
    inv = lax.rsqrt(var + eps)
    gamma_p = jnp.pad(gamma.astype(jnp.float32), (0, Cout_p - Cout))
    beta_p = jnp.pad(beta.astype(jnp.float32), (0, Cout_p - Cout))
    scale = (gamma_p * inv).reshape(1, 1, Cout_p)
    shift = (beta_p - mean * gamma_p * inv).reshape(1, 1, Cout_p)

    # Pass 2 tiling: as many full depth planes per block as fit in a ~4 MiB budget
    # (bigger tiles -> fewer grid steps, denser DMAs; stores are lane-dense over Cout_p).
    ND = N * D
    out_itemsize = jnp.dtype(out_dtype).itemsize
    bytes_per_plane = HW * Cout_p * (2 + out_itemsize)
    PB = _largest_divisor_le(ND, (4 * 1024 * 1024) // max(bytes_per_plane, 1))

    y_flat = y.reshape(ND, HW, Cout_p)
    cparams2 = pltpu.CompilerParams(
        dimension_semantics=("parallel",),
        vmem_limit_bytes=32 * 1024 * 1024)
    cost2 = pl.CostEstimate(
        flops=3 * ND * HW * Cout_p,
        transcendentals=0,
        bytes_accessed=ND * HW * Cout_p * (2 + out_itemsize) + 2 * Cout_p * 4)

    act = pl.pallas_call(
        _bn_relu_kernel,
        grid=(ND // PB,),
        in_specs=[
            pl.BlockSpec((PB, HW, Cout_p), lambda i: (i, 0, 0)),
            pl.BlockSpec((1, 1, Cout_p), lambda i: (0, 0, 0)),
            pl.BlockSpec((1, 1, Cout_p), lambda i: (0, 0, 0)),
        ],
        out_specs=pl.BlockSpec((PB, HW, Cout_p), lambda i: (i, 0, 0)),
        out_shape=jax.ShapeDtypeStruct((ND, HW, Cout_p), out_dtype),
        compiler_params=cparams2,
        cost_estimate=cost2,
    )(y_flat, scale, shift)

    return act.reshape(N, D, H, W, Cout_p)


def double_conv(x_ncdhw, params):
    """DoubleConv forward. x_ncdhw: (N, Cin, D, H, W); params = [(w, gamma, beta)] x 2."""
    x = jnp.transpose(x_ncdhw, (0, 2, 3, 4, 1))               # NCDHW -> NDHWC
    (w1, g1, b1), (w2, g2, b2) = params
    c1, c2 = w1.shape[0], w2.shape[0]
    # Intermediate activation stays NDHWC bf16; channel padding is stripped between layers.
    # TODO(synk): the spatial halo re-pad between the two conv blocks is done with a cheap
    # XLA pad inside conv_bn_relu_block rather than fused into pass 2's output writes.
    a1 = conv_bn_relu_block(x, w1, g1, b1, out_dtype=jnp.bfloat16)[..., :c1]
    a2 = conv_bn_relu_block(a1, w2, g2, b2, out_dtype=jnp.float32)[..., :c2]
    return jnp.transpose(a2, (0, 4, 1, 2, 3))                 # NDHWC -> NCDHW


# ---------------------------------------------------------------------------
# Pure-JAX reference (f32, highest precision) for correctness checking.
# ---------------------------------------------------------------------------
def _ref_block(x_ndhwc, w_ocidhw, gamma, beta, eps=EPS):
    wd = jnp.transpose(w_ocidhw, (2, 3, 4, 1, 0))             # DHWIO
    y = lax.conv_general_dilated(
        x_ndhwc, wd, window_strides=(1, 1, 1),
        padding=((1, 1), (1, 1), (1, 1)),
        dimension_numbers=("NDHWC", "DHWIO", "NDHWC"),
        precision=lax.Precision.HIGHEST)
    mean = y.mean(axis=(0, 1, 2, 3), keepdims=True)
    var = ((y - mean) ** 2).mean(axis=(0, 1, 2, 3), keepdims=True)
    yn = (y - mean) * lax.rsqrt(var + eps) * gamma.reshape(1, 1, 1, 1, -1) \
         + beta.reshape(1, 1, 1, 1, -1)
    return jnp.maximum(yn, 0.0)


def _ref_double_conv(x_ncdhw, params):
    x = jnp.transpose(x_ncdhw, (0, 2, 3, 4, 1))
    for (w, g, b) in params:
        x = _ref_block(x, w, g, b)
    return jnp.transpose(x, (0, 4, 1, 2, 3))


if __name__ == "__main__":
    key = jax.random.PRNGKey(0)
    N, Cin, Cout, D, H, W = 2, 4, 8, 8, 8, 8

    k = jax.random.split(key, 6)
    x = jax.random.normal(k[0], (N, Cin, D, H, W), dtype=jnp.float32)

    # conv1: (Cout, Cin, 3, 3, 3); conv2: (Cout, Cout, 3, 3, 3); BN gamma/beta per channel.
    w1 = jax.random.normal(k[1], (Cout, Cin, 3, 3, 3), dtype=jnp.float32) * 0.1
    w2 = jax.random.normal(k[2], (Cout, Cout, 3, 3, 3), dtype=jnp.float32) * 0.1
    g1 = 1.0 + 0.1 * jax.random.normal(k[3], (Cout,), dtype=jnp.float32)
    b1 = 0.1 * jax.random.normal(k[4], (Cout,), dtype=jnp.float32)
    g2 = 1.0 + 0.1 * jax.random.normal(k[5], (Cout,), dtype=jnp.float32)
    b2 = 0.1 * jax.random.normal(jax.random.PRNGKey(1), (Cout,), dtype=jnp.float32)

    params = [(w1, g1, b1), (w2, g2, b2)]

    out = jax.block_until_ready(jax.jit(double_conv)(x, params))
    assert out.shape == (N, Cout, D, H, W), out.shape

    ref = jax.block_until_ready(_ref_double_conv(x, params))
    max_err = float(jnp.max(jnp.abs(out - ref)))
    # bf16 MXU operands + bf16 intermediate activation vs. f32 reference -> bf16 tolerance.
    assert jnp.allclose(out, ref, atol=1e-1, rtol=1e-1), max_err

    print("KERNEL_OK")
</pallas_src>

<mosaic_0001>
module attributes {stable_mosaic.version = 11 : i64} {
  func.func @_conv3d_stats_kernel(%arg0: i32, %arg1: i32, %arg2: i32, %arg3: memref<1x1x82x8xbf16, #tpu.memory_space<vmem>>, %arg4: memref<27x8x128xbf16, #tpu.memory_space<vmem>>, %arg5: memref<1x1x64x128xbf16, #tpu.memory_space<vmem>>, %arg6: memref<1x1x1x128xf32, #tpu.memory_space<vmem>>, %arg7: memref<1x1x1x128xf32, #tpu.memory_space<vmem>>, %arg8: memref<64x128xf32, #tpu.memory_space<vmem>>) attributes {dimension_semantics = [#tpu.dimension_semantics<parallel>, #tpu.dimension_semantics<parallel>, #tpu.dimension_semantics<arbitrary>], iteration_bounds = array<i64: 2, 8, 3>, scalar_prefetch = 0 : i64, scratch_operands = 1 : i64, tpu.core_type = #tpu.core_type<tc>, window_params = [{transform_indices = @transform_0, window_bounds = array<i64: 1, 1, 82, 8>}, {pipeline_mode = #tpu.pipeline_mode<synchronous>, transform_indices = @transform_1, window_bounds = array<i64: 27, 8, 128>}, {transform_indices = @transform_2, window_bounds = array<i64: 1, 1, 64, 128>}, {transform_indices = @transform_3, window_bounds = array<i64: 1, 1, 1, 128>}, {transform_indices = @transform_4, window_bounds = array<i64: 1, 1, 1, 128>}]} {
    %c0_i32 = arith.constant 0 : i32
    %0 = arith.cmpi eq, %arg2, %c0_i32 : i32
    %1 = arith.extui %0 : i1 to i32
    %c0_i32_0 = arith.constant 0 : i32
    %2 = arith.cmpi ne, %1, %c0_i32_0 : i32
    scf.if %2 {
      %cst_59 = arith.constant 0.000000e+00 : f32
      %127 = vector.broadcast %cst_59 : f32 to vector<64x128xf32>
      %c0_60 = arith.constant 0 : index
      %c0_61 = arith.constant 0 : index
      %128 = vector.load %arg8[%c0_60, %c0_61] : memref<64x128xf32, #tpu.memory_space<vmem>>, vector<64x128xf32>
      tpu.vector_store %arg8[%c0_60, %c0_61], %127 {strides = array<i32>} : memref<64x128xf32, #tpu.memory_space<vmem>>, vector<64x128xf32>,
    } else {
    }
    %c0 = arith.constant 0 : index
    %c0_1 = arith.constant 0 : index
    %c0_2 = arith.constant 0 : index
    %c0_3 = arith.constant 0 : index
    %3 = vector.load %arg3[%c0, %c0_1, %c0_2, %c0_3] : memref<1x1x82x8xbf16, #tpu.memory_space<vmem>>, vector<1x1x82x8xbf16>
    %4 = vector.shape_cast %3 : vector<1x1x82x8xbf16> to vector<82x8xbf16>
    %5 = tpu.iota {dimensions = array<i32: 0>} : vector<64x1xi32>
    %c8_i32 = arith.constant 8 : i32
    %c0_i32_4 = arith.constant 0 : i32
    %6 = arith.cmpi eq, %c8_i32, %c0_i32_4 : i32
    %c1_i32 = arith.constant 1 : i32
    %7 = arith.select %6, %c1_i32, %c8_i32 : i32
    %8 = vector.broadcast %7 : i32 to vector<64x1xi32>
    %9 = arith.remsi %5, %8 : vector<64x1xi32>
    %c0_i32_5 = arith.constant 0 : i32
    %10 = vector.broadcast %c0_i32_5 : i32 to vector<64x1xi32>
    %11 = arith.cmpi ne, %9, %10 : vector<64x1xi32>
    %c0_i32_6 = arith.constant 0 : i32
    %12 = vector.broadcast %c0_i32_6 : i32 to vector<64x1xi32>
    %13 = arith.cmpi slt, %9, %12 : vector<64x1xi32>
    %c0_i32_7 = arith.constant 0 : i32
    %14 = arith.cmpi slt, %7, %c0_i32_7 : i32
    %15 = vector.broadcast %14 : i1 to vector<64x1xi1>
    %16 = vector.broadcast %15 : vector<64x1xi1> to vector<64x1xi1>
    %17 = arith.xori %13, %16 : vector<64x1xi1>
    %18 = arith.andi %17, %11 : vector<64x1xi1>
    %19 = vector.broadcast %7 : i32 to vector<64x1xi32>
    %20 = arith.addi %9, %19 : vector<64x1xi32>
    %21 = arith.select %18, %20, %9 : vector<64x1xi1>, vector<64x1xi32>
    %c0_i32_8 = arith.constant 0 : i32
    %22 = vector.broadcast %c0_i32_8 : i32 to vector<64x1xi32>
    %23 = arith.cmpi sgt, %21, %22 : vector<64x1xi32>
    %c7_i32 = arith.constant 7 : i32
    %24 = vector.broadcast %c7_i32 : i32 to vector<64x1xi32>
    %25 = arith.cmpi slt, %21, %24 : vector<64x1xi32>
    %26 = vector.extract_strided_slice %4 {offsets = [0, 0], sizes = [64, 8], strides = [1, 1]} : vector<82x8xbf16> to vector<64x8xbf16>
    %cst = arith.constant 0.000000e+00 : bf16
    %27 = vector.broadcast %cst : bf16 to vector<64x8xbf16>
    %28 = vector.shape_cast %23 : vector<64x1xi1> to vector<64x1xi1>
    %29 = vector.broadcast %28 : vector<64x1xi1> to vector<64x8xi1>
    %30 = arith.select %29, %26, %27 : vector<64x8xi1>, vector<64x8xbf16>
    %c9_i32 = arith.constant 9 : i32
    %31 = arith.muli %arg2, %c9_i32 : i32
    %c0_i32_9 = arith.constant 0 : i32
    %32 = arith.addi %31, %c0_i32_9 : i32
    %33 = arith.index_cast %32 : i32 to index
    %c0_10 = arith.constant 0 : index
    %c0_11 = arith.constant 0 : index
    %34 = vector.load %arg4[%33, %c0_10, %c0_11] : memref<27x8x128xbf16, #tpu.memory_space<vmem>>, vector<1x8x128xbf16>
    %35 = vector.shape_cast %34 : vector<1x8x128xbf16> to vector<8x128xbf16>
    %cst_12 = arith.constant dense<0.000000e+00> : vector<64x128xf32>
    %36 = tpu.matmul %30, %35, %cst_12 {dimension_numbers = #tpu.dot_dimension_numbers<[1], [0], [0], [1], [0, 0, 1, 1], [], []>} : vector<64x8xbf16>, vector<8x128xbf16>, vector<64x128xf32> -> vector<64x128xf32>
    %37 = vector.extract_strided_slice %4 {offsets = [1, 0], sizes = [64, 8], strides = [1, 1]} : vector<82x8xbf16> to vector<64x8xbf16>
    %c9_i32_13 = arith.constant 9 : i32
    %38 = arith.muli %arg2, %c9_i32_13 : i32
    %c1_i32_14 = arith.constant 1 : i32
    %39 = arith.addi %38, %c1_i32_14 : i32
    %40 = arith.index_cast %39 : i32 to index
    %c0_15 = arith.constant 0 : index
    %c0_16 = arith.constant 0 : index
    %41 = vector.load %arg4[%40, %c0_15, %c0_16] : memref<27x8x128xbf16, #tpu.memory_space<vmem>>, vector<1x8x128xbf16>
    %42 = vector.shape_cast %41 : vector<1x8x128xbf16> to vector<8x128xbf16>
    %cst_17 = arith.constant dense<0.000000e+00> : vector<64x128xf32>
    %43 = tpu.matmul %37, %42, %cst_17 {dimension_numbers = #tpu.dot_dimension_numbers<[1], [0], [0], [1], [0, 0, 1, 1], [], []>} : vector<64x8xbf16>, vector<8x128xbf16>, vector<64x128xf32> -> vector<64x128xf32>
    %44 = arith.addf %36, %43 : vector<64x128xf32>
    %45 = vector.extract_strided_slice %4 {offsets = [2, 0], sizes = [64, 8], strides = [1, 1]} : vector<82x8xbf16> to vector<64x8xbf16>
    %cst_18 = arith.constant 0.000000e+00 : bf16
    %46 = vector.broadcast %cst_18 : bf16 to vector<64x8xbf16>
    %47 = vector.shape_cast %25 : vector<64x1xi1> to vector<64x1xi1>
    %48 = vector.broadcast %47 : vector<64x1xi1> to vector<64x8xi1>
    %49 = arith.select %48, %45, %46 : vector<64x8xi1>, vector<64x8xbf16>
    %c9_i32_19 = arith.constant 9 : i32
    %50 = arith.muli %arg2, %c9_i32_19 : i32
    %c2_i32 = arith.constant 2 : i32
    %51 = arith.addi %50, %c2_i32 : i32
    %52 = arith.index_cast %51 : i32 to index
    %c0_20 = arith.constant 0 : index
    %c0_21 = arith.constant 0 : index
    %53 = vector.load %arg4[%52, %c0_20, %c0_21] : memref<27x8x128xbf16, #tpu.memory_space<vmem>>, vector<1x8x128xbf16>
    %54 = vector.shape_cast %53 : vector<1x8x128xbf16> to vector<8x128xbf16>
    %cst_22 = arith.constant dense<0.000000e+00> : vector<64x128xf32>
    %55 = tpu.matmul %49, %54, %cst_22 {dimension_numbers = #tpu.dot_dimension_numbers<[1], [0], [0], [1], [0, 0, 1, 1], [], []>} : vector<64x8xbf16>, vector<8x128xbf16>, vector<64x128xf32> -> vector<64x128xf32>
    %56 = arith.addf %44, %55 : vector<64x128xf32>
    %57 = vector.extract_strided_slice %4 {offsets = [8, 0], sizes = [64, 8], strides = [1, 1]} : vector<82x8xbf16> to vector<64x8xbf16>
    %cst_23 = arith.constant 0.000000e+00 : bf16
    %58 = vector.broadcast %cst_23 : bf16 to vector<64x8xbf16>
    %59 = vector.shape_cast %23 : vector<64x1xi1> to vector<64x1xi1>
    %60 = vector.broadcast %59 : vector<64x1xi1> to vector<64x8xi1>
    %61 = arith.select %60, %57, %58 : vector<64x8xi1>, vector<64x8xbf16>
    %c9_i32_24 = arith.constant 9 : i32
    %62 = arith.muli %arg2, %c9_i32_24 : i32
    %c3_i32 = arith.constant 3 : i32
    %63 = arith.addi %62, %c3_i32 : i32
    %64 = arith.index_cast %63 : i32 to index
    %c0_25 = arith.constant 0 : index
    %c0_26 = arith.constant 0 : index
    %65 = vector.load %arg4[%64, %c0_25, %c0_26] : memref<27x8x128xbf16, #tpu.memory_space<vmem>>, vector<1x8x128xbf16>
    %66 = vector.shape_cast %65 : vector<1x8x128xbf16> to vector<8x128xbf16>
    %cst_27 = arith.constant dense<0.000000e+00> : vector<64x128xf32>
    %67 = tpu.matmul %61, %66, %cst_27 {dimension_numbers = #tpu.dot_dimension_numbers<[1], [0], [0], [1], [0, 0, 1, 1], [], []>} : vector<64x8xbf16>, vector<8x128xbf16>, vector<64x128xf32> -> vector<64x128xf32>
    %68 = arith.addf %56, %67 : vector<64x128xf32>
    %69 = vector.extract_strided_slice %4 {offsets = [9, 0], sizes = [64, 8], strides = [1, 1]} : vector<82x8xbf16> to vector<64x8xbf16>
    %c9_i32_28 = arith.constant 9 : i32
    %70 = arith.muli %arg2, %c9_i32_28 : i32
    %c4_i32 = arith.constant 4 : i32
    %71 = arith.addi %70, %c4_i32 : i32
    %72 = arith.index_cast %71 : i32 to index
    %c0_29 = arith.constant 0 : index
    %c0_30 = arith.constant 0 : index
    %73 = vector.load %arg4[%72, %c0_29, %c0_30] : memref<27x8x128xbf16, #tpu.memory_space<vmem>>, vector<1x8x128xbf16>
    %74 = vector.shape_cast %73 : vector<1x8x128xbf16> to vector<8x128xbf16>
    %cst_31 = arith.constant dense<0.000000e+00> : vector<64x128xf32>
    %75 = tpu.matmul %69, %74, %cst_31 {dimension_numbers = #tpu.dot_dimension_numbers<[1], [0], [0], [1], [0, 0, 1, 1], [], []>} : vector<64x8xbf16>, vector<8x128xbf16>, vector<64x128xf32> -> vector<64x128xf32>
    %76 = arith.addf %68, %75 : vector<64x128xf32>
    %77 = vector.extract_strided_slice %4 {offsets = [10, 0], sizes = [64, 8], strides = [1, 1]} : vector<82x8xbf16> to vector<64x8xbf16>
    %cst_32 = arith.constant 0.000000e+00 : bf16
    %78 = vector.broadcast %cst_32 : bf16 to vector<64x8xbf16>
    %79 = vector.shape_cast %25 : vector<64x1xi1> to vector<64x1xi1>
    %80 = vector.broadcast %79 : vector<64x1xi1> to vector<64x8xi1>
    %81 = arith.select %80, %77, %78 : vector<64x8xi1>, vector<64x8xbf16>
    %c9_i32_33 = arith.constant 9 : i32
    %82 = arith.muli %arg2, %c9_i32_33 : i32
    %c5_i32 = arith.constant 5 : i32
    %83 = arith.addi %82, %c5_i32 : i32
    %84 = arith.index_cast %83 : i32 to index
    %c0_34 = arith.constant 0 : index
    %c0_35 = arith.constant 0 : index
    %85 = vector.load %arg4[%84, %c0_34, %c0_35] : memref<27x8x128xbf16, #tpu.memory_space<vmem>>, vector<1x8x128xbf16>
    %86 = vector.shape_cast %85 : vector<1x8x128xbf16> to vector<8x128xbf16>
    %cst_36 = arith.constant dense<0.000000e+00> : vector<64x128xf32>
    %87 = tpu.matmul %81, %86, %cst_36 {dimension_numbers = #tpu.dot_dimension_numbers<[1], [0], [0], [1], [0, 0, 1, 1], [], []>} : vector<64x8xbf16>, vector<8x128xbf16>, vector<64x128xf32> -> vector<64x128xf32>
    %88 = arith.addf %76, %87 : vector<64x128xf32>
    %89 = vector.extract_strided_slice %4 {offsets = [16, 0], sizes = [64, 8], strides = [1, 1]} : vector<82x8xbf16> to vector<64x8xbf16>
    %cst_37 = arith.constant 0.000000e+00 : bf16
    %90 = vector.broadcast %cst_37 : bf16 to vector<64x8xbf16>
    %91 = vector.shape_cast %23 : vector<64x1xi1> to vector<64x1xi1>
    %92 = vector.broadcast %91 : vector<64x1xi1> to vector<64x8xi1>
    %93 = arith.select %92, %89, %90 : vector<64x8xi1>, vector<64x8xbf16>
    %c9_i32_38 = arith.constant 9 : i32
    %94 = arith.muli %arg2, %c9_i32_38 : i32
    %c6_i32 = arith.constant 6 : i32
    %95 = arith.addi %94, %c6_i32 : i32
    %96 = arith.index_cast %95 : i32 to index
    %c0_39 = arith.constant 0 : index
    %c0_40 = arith.constant 0 : index
    %97 = vector.load %arg4[%96, %c0_39, %c0_40] : memref<27x8x128xbf16, #tpu.memory_space<vmem>>, vector<1x8x128xbf16>
    %98 = vector.shape_cast %97 : vector<1x8x128xbf16> to vector<8x128xbf16>
    %cst_41 = arith.constant dense<0.000000e+00> : vector<64x128xf32>
    %99 = tpu.matmul %93, %98, %cst_41 {dimension_numbers = #tpu.dot_dimension_numbers<[1], [0], [0], [1], [0, 0, 1, 1], [], []>} : vector<64x8xbf16>, vector<8x128xbf16>, vector<64x128xf32> -> vector<64x128xf32>
    %100 = arith.addf %88, %99 : vector<64x128xf32>
    %101 = vector.extract_strided_slice %4 {offsets = [17, 0], sizes = [64, 8], strides = [1, 1]} : vector<82x8xbf16> to vector<64x8xbf16>
    %c9_i32_42 = arith.constant 9 : i32
    %102 = arith.muli %arg2, %c9_i32_42 : i32
    %c7_i32_43 = arith.constant 7 : i32
    %103 = arith.addi %102, %c7_i32_43 : i32
    %104 = arith.index_cast %103 : i32 to index
    %c0_44 = arith.constant 0 : index
    %c0_45 = arith.constant 0 : index
    %105 = vector.load %arg4[%104, %c0_44, %c0_45] : memref<27x8x128xbf16, #tpu.memory_space<vmem>>, vector<1x8x128xbf16>
    %106 = vector.shape_cast %105 : vector<1x8x128xbf16> to vector<8x128xbf16>
    %cst_46 = arith.constant dense<0.000000e+00> : vector<64x128xf32>
    %107 = tpu.matmul %101, %106, %cst_46 {dimension_numbers = #tpu.dot_dimension_numbers<[1], [0], [0], [1], [0, 0, 1, 1], [], []>} : vector<64x8xbf16>, vector<8x128xbf16>, vector<64x128xf32> -> vector<64x128xf32>
    %108 = arith.addf %100, %107 : vector<64x128xf32>
    %109 = vector.extract_strided_slice %4 {offsets = [18, 0], sizes = [64, 8], strides = [1, 1]} : vector<82x8xbf16> to vector<64x8xbf16>
    %cst_47 = arith.constant 0.000000e+00 : bf16
    %110 = vector.broadcast %cst_47 : bf16 to vector<64x8xbf16>
    %111 = vector.shape_cast %25 : vector<64x1xi1> to vector<64x1xi1>
    %112 = vector.broadcast %111 : vector<64x1xi1> to vector<64x8xi1>
    %113 = arith.select %112, %109, %110 : vector<64x8xi1>, vector<64x8xbf16>
    %c9_i32_48 = arith.constant 9 : i32
    %114 = arith.muli %arg2, %c9_i32_48 : i32
    %c8_i32_49 = arith.constant 8 : i32
    %115 = arith.addi %114, %c8_i32_49 : i32
    %116 = arith.index_cast %115 : i32 to index
    %c0_50 = arith.constant 0 : index
    %c0_51 = arith.constant 0 : index
    %117 = vector.load %arg4[%116, %c0_50, %c0_51] : memref<27x8x128xbf16, #tpu.memory_space<vmem>>, vector<1x8x128xbf16>
    %118 = vector.shape_cast %117 : vector<1x8x128xbf16> to vector<8x128xbf16>
    %cst_52 = arith.constant dense<0.000000e+00> : vector<64x128xf32>
    %119 = tpu.matmul %113, %118, %cst_52 {dimension_numbers = #tpu.dot_dimension_numbers<[1], [0], [0], [1], [0, 0, 1, 1], [], []>} : vector<64x8xbf16>, vector<8x128xbf16>, vector<64x128xf32> -> vector<64x128xf32>
    %120 = arith.addf %108, %119 : vector<64x128xf32>
    %c0_53 = arith.constant 0 : index
    %c0_54 = arith.constant 0 : index
    %121 = vector.load %arg8[%c0_53, %c0_54] : memref<64x128xf32, #tpu.memory_space<vmem>>, vector<64x128xf32>
    %122 = arith.addf %121, %120 : vector<64x128xf32>
    %c0_55 = arith.constant 0 : index
    %c0_56 = arith.constant 0 : index
    %123 = vector.load %arg8[%c0_55, %c0_56] : memref<64x128xf32, #tpu.memory_space<vmem>>, vector<64x128xf32>
    tpu.vector_store %arg8[%c0_55, %c0_56], %122 {strides = array<i32>} : memref<64x128xf32, #tpu.memory_space<vmem>>, vector<64x128xf32>,
    %c2_i32_57 = arith.constant 2 : i32
    %124 = arith.cmpi eq, %arg2, %c2_i32_57 : i32
    %125 = arith.extui %124 : i1 to i32
    %c0_i32_58 = arith.constant 0 : i32
    %126 = arith.cmpi ne, %125, %c0_i32_58 : i32
    scf.if %126 {
      %c0_59 = arith.constant 0 : index
      %c0_60 = arith.constant 0 : index
      %127 = vector.load %arg8[%c0_59, %c0_60] : memref<64x128xf32, #tpu.memory_space<vmem>>, vector<64x128xf32>
      %128 = arith.truncf %127 : vector<64x128xf32> to vector<64x128xbf16>
      %c0_61 = arith.constant 0 : index
      %c0_62 = arith.constant 0 : index
      %c0_63 = arith.constant 0 : index
      %c0_64 = arith.constant 0 : index
      %129 = vector.load %arg5[%c0_61, %c0_62, %c0_63, %c0_64] : memref<1x1x64x128xbf16, #tpu.memory_space<vmem>>, vector<1x1x64x128xbf16>
      %130 = vector.shape_cast %129 : vector<1x1x64x128xbf16> to vector<64x128xbf16>
      %131 = vector.shape_cast %128 : vector<64x128xbf16> to vector<1x1x64x128xbf16>
      tpu.vector_store %arg5[%c0_61, %c0_62, %c0_63, %c0_64], %131 {strides = array<i32>} : memref<1x1x64x128xbf16, #tpu.memory_space<vmem>>, vector<1x1x64x128xbf16>,
      %cst_65 = arith.constant dense<0.000000e+00> : vector<128xf32>
      %132 = vector.multi_reduction <add>, %127, %cst_65 [0] : vector<64x128xf32> to vector<128xf32>
      %133 = vector.shape_cast %132 : vector<128xf32> to vector<1x128xf32>
      %c0_66 = arith.constant 0 : index
      %c0_67 = arith.constant 0 : index
      %c0_68 = arith.constant 0 : index
      %c0_69 = arith.constant 0 : index
      %134 = vector.load %arg6[%c0_66, %c0_67, %c0_68, %c0_69] : memref<1x1x1x128xf32, #tpu.memory_space<vmem>>, vector<1x1x1x128xf32>
      %135 = vector.shape_cast %134 : vector<1x1x1x128xf32> to vector<1x128xf32>
      %136 = vector.shape_cast %133 : vector<1x128xf32> to vector<1x1x1x128xf32>
      tpu.vector_store %arg6[%c0_66, %c0_67, %c0_68, %c0_69], %136 {strides = array<i32>} : memref<1x1x1x128xf32, #tpu.memory_space<vmem>>, vector<1x1x1x128xf32>,
      %137 = arith.mulf %127, %127 : vector<64x128xf32>
      %cst_70 = arith.constant dense<0.000000e+00> : vector<128xf32>
      %138 = vector.multi_reduction <add>, %137, %cst_70 [0] : vector<64x128xf32> to vector<128xf32>
      %139 = vector.shape_cast %138 : vector<128xf32> to vector<1x128xf32>
      %c0_71 = arith.constant 0 : index
      %c0_72 = arith.constant 0 : index
      %c0_73 = arith.constant 0 : index
      %c0_74 = arith.constant 0 : index
      %140 = vector.load %arg7[%c0_71, %c0_72, %c0_73, %c0_74] : memref<1x1x1x128xf32, #tpu.memory_space<vmem>>, vector<1x1x1x128xf32>
      %141 = vector.shape_cast %140 : vector<1x1x1x128xf32> to vector<1x128xf32>
      %142 = vector.shape_cast %139 : vector<1x128xf32> to vector<1x1x1x128xf32>
      tpu.vector_store %arg7[%c0_71, %c0_72, %c0_73, %c0_74], %142 {strides = array<i32>} : memref<1x1x1x128xf32, #tpu.memory_space<vmem>>, vector<1x1x1x128xf32>,
    } else {
    }
    return
  }
  func.func @transform_0(%arg0: i32, %arg1: i32, %arg2: i32) -> (i32, i32, i32, i32) {
    %0 = arith.addi %arg1, %arg2 : i32
    %c0_i32 = arith.constant 0 : i32
    %c0_i32_0 = arith.constant 0 : i32
    %c0_i32_1 = arith.constant 0 : i32
    return %arg0, %0, %c0_i32, %c0_i32_0 : i32, i32, i32, i32
  }
  func.func @transform_1(%arg0: i32, %arg1: i32, %arg2: i32) -> (i32, i32, i32) {
    %c0_i32 = arith.constant 0 : i32
    %c0_i32_0 = arith.constant 0 : i32
    %c0_i32_1 = arith.constant 0 : i32
    %c0_i32_2 = arith.constant 0 : i32
    return %c0_i32, %c0_i32_0, %c0_i32_1 : i32, i32, i32
  }
  func.func @transform_2(%arg0: i32, %arg1: i32, %arg2: i32) -> (i32, i32, i32, i32) {
    %c0_i32 = arith.constant 0 : i32
    %c0_i32_0 = arith.constant 0 : i32
    %c0_i32_1 = arith.constant 0 : i32
    return %arg0, %arg1, %c0_i32, %c0_i32_0 : i32, i32, i32, i32
  }
  func.func @transform_3(%arg0: i32, %arg1: i32, %arg2: i32) -> (i32, i32, i32, i32) {
    %c0_i32 = arith.constant 0 : i32
    %c0_i32_0 = arith.constant 0 : i32
    %c0_i32_1 = arith.constant 0 : i32
    return %arg0, %arg1, %c0_i32, %c0_i32_0 : i32, i32, i32, i32
  }
  func.func @transform_4(%arg0: i32, %arg1: i32, %arg2: i32) -> (i32, i32, i32, i32) {
    %c0_i32 = arith.constant 0 : i32
    %c0_i32_0 = arith.constant 0 : i32
    %c0_i32_1 = arith.constant 0 : i32
    return %arg0, %arg1, %c0_i32, %c0_i32_0 : i32, i32, i32, i32
  }
}

module attributes {stable_mosaic.version = 11 : i64} {
  func.func @_bn_relu_kernel(%arg0: i32, %arg1: memref<16x64x128xbf16, #tpu.memory_space<vmem>>, %arg2: memref<1x1x128xf32, #tpu.memory_space<vmem>>, %arg3: memref<1x1x128xf32, #tpu.memory_space<vmem>>, %arg4: memref<16x64x128xbf16, #tpu.memory_space<vmem>>) attributes {dimension_semantics = [#tpu.dimension_semantics<parallel>], iteration_bounds = array<i64: 1>, scalar_prefetch = 0 : i64, scratch_operands = 0 : i64, tpu.core_type = #tpu.core_type<tc>, window_params = [{transform_indices = @transform_0, window_bounds = array<i64: 16, 64, 128>}, {pipeline_mode = #tpu.pipeline_mode<synchronous>, transform_indices = @transform_1, window_bounds = array<i64: 1, 1, 128>}, {pipeline_mode = #tpu.pipeline_mode<synchronous>, transform_indices = @transform_2, window_bounds = array<i64: 1, 1, 128>}, {transform_indices = @transform_3, window_bounds = array<i64: 16, 64, 128>}]} {
    %c0 = arith.constant 0 : index
    %c0_0 = arith.constant 0 : index
    %c0_1 = arith.constant 0 : index
    %0 = vector.load %arg1[%c0, %c0_0, %c0_1] : memref<16x64x128xbf16, #tpu.memory_space<vmem>>, vector<16x64x128xbf16>
    %1 = arith.extf %0 : vector<16x64x128xbf16> to vector<16x64x128xf32>
    %c0_2 = arith.constant 0 : index
    %c0_3 = arith.constant 0 : index
    %c0_4 = arith.constant 0 : index
    %2 = vector.load %arg2[%c0_2, %c0_3, %c0_4] : memref<1x1x128xf32, #tpu.memory_space<vmem>>, vector<1x1x128xf32>
    %3 = vector.broadcast %2 : vector<1x1x128xf32> to vector<16x64x128xf32>
    %4 = arith.mulf %1, %3 : vector<16x64x128xf32>
    %c0_5 = arith.constant 0 : index
    %c0_6 = arith.constant 0 : index
    %c0_7 = arith.constant 0 : index
    %5 = vector.load %arg3[%c0_5, %c0_6, %c0_7] : memref<1x1x128xf32, #tpu.memory_space<vmem>>, vector<1x1x128xf32>
    %6 = vector.broadcast %5 : vector<1x1x128xf32> to vector<16x64x128xf32>
    %7 = arith.addf %4, %6 : vector<16x64x128xf32>
    %cst = arith.constant 0.000000e+00 : f32
    %8 = vector.broadcast %cst : f32 to vector<16x64x128xf32>
    %9 = arith.maximumf %7, %8 : vector<16x64x128xf32>
    %10 = arith.truncf %9 : vector<16x64x128xf32> to vector<16x64x128xbf16>
    %c0_8 = arith.constant 0 : index
    %c0_9 = arith.constant 0 : index
    %c0_10 = arith.constant 0 : index
    %11 = vector.load %arg4[%c0_8, %c0_9, %c0_10] : memref<16x64x128xbf16, #tpu.memory_space<vmem>>, vector<16x64x128xbf16>
    tpu.vector_store %arg4[%c0_8, %c0_9, %c0_10], %10 {strides = array<i32>} : memref<16x64x128xbf16, #tpu.memory_space<vmem>>, vector<16x64x128xbf16>,
    return
  }
  func.func @transform_0(%arg0: i32) -> (i32, i32, i32) {
    %c0_i32 = arith.constant 0 : i32
    %c0_i32_0 = arith.constant 0 : i32
    %c0_i32_1 = arith.constant 0 : i32
    return %arg0, %c0_i32, %c0_i32_0 : i32, i32, i32
  }
  func.func @transform_1(%arg0: i32) -> (i32, i32, i32) {
    %c0_i32 = arith.constant 0 : i32
    %c0_i32_0 = arith.constant 0 : i32
    %c0_i32_1 = arith.constant 0 : i32
    %c0_i32_2 = arith.constant 0 : i32
    return %c0_i32, %c0_i32_0, %c0_i32_1 : i32, i32, i32
  }
  func.func @transform_2(%arg0: i32) -> (i32, i32, i32) {
    %c0_i32 = arith.constant 0 : i32
    %c0_i32_0 = arith.constant 0 : i32
    %c0_i32_1 = arith.constant 0 : i32
    %c0_i32_2 = arith.constant 0 : i32
    return %c0_i32, %c0_i32_0, %c0_i32_1 : i32, i32, i32
  }
  func.func @transform_3(%arg0: i32) -> (i32, i32, i32) {
    %c0_i32 = arith.constant 0 : i32
    %c0_i32_0 = arith.constant 0 : i32
    %c0_i32_1 = arith.constant 0 : i32
    return %arg0, %c0_i32, %c0_i32_0 : i32, i32, i32
  }
}

module attributes {stable_mosaic.version = 11 : i64} {
  func.func @_bn_relu_kernel(%arg0: i32, %arg1: memref<16x64x128xbf16, #tpu.memory_space<vmem>>, %arg2: memref<1x1x128xf32, #tpu.memory_space<vmem>>, %arg3: memref<1x1x128xf32, #tpu.memory_space<vmem>>, %arg4: memref<16x64x128xf32, #tpu.memory_space<vmem>>) attributes {dimension_semantics = [#tpu.dimension_semantics<parallel>], iteration_bounds = array<i64: 1>, scalar_prefetch = 0 : i64, scratch_operands = 0 : i64, tpu.core_type = #tpu.core_type<tc>, window_params = [{transform_indices = @transform_0, window_bounds = array<i64: 16, 64, 128>}, {pipeline_mode = #tpu.pipeline_mode<synchronous>, transform_indices = @transform_1, window_bounds = array<i64: 1, 1, 128>}, {pipeline_mode = #tpu.pipeline_mode<synchronous>, transform_indices = @transform_2, window_bounds = array<i64: 1, 1, 128>}, {transform_indices = @transform_3, window_bounds = array<i64: 16, 64, 128>}]} {
    %c0 = arith.constant 0 : index
    %c0_0 = arith.constant 0 : index
    %c0_1 = arith.constant 0 : index
    %0 = vector.load %arg1[%c0, %c0_0, %c0_1] : memref<16x64x128xbf16, #tpu.memory_space<vmem>>, vector<16x64x128xbf16>
    %1 = arith.extf %0 : vector<16x64x128xbf16> to vector<16x64x128xf32>
    %c0_2 = arith.constant 0 : index
    %c0_3 = arith.constant 0 : index
    %c0_4 = arith.constant 0 : index
    %2 = vector.load %arg2[%c0_2, %c0_3, %c0_4] : memref<1x1x128xf32, #tpu.memory_space<vmem>>, vector<1x1x128xf32>
    %3 = vector.broadcast %2 : vector<1x1x128xf32> to vector<16x64x128xf32>
    %4 = arith.mulf %1, %3 : vector<16x64x128xf32>
    %c0_5 = arith.constant 0 : index
    %c0_6 = arith.constant 0 : index
    %c0_7 = arith.constant 0 : index
    %5 = vector.load %arg3[%c0_5, %c0_6, %c0_7] : memref<1x1x128xf32, #tpu.memory_space<vmem>>, vector<1x1x128xf32>
    %6 = vector.broadcast %5 : vector<1x1x128xf32> to vector<16x64x128xf32>
    %7 = arith.addf %4, %6 : vector<16x64x128xf32>
    %cst = arith.constant 0.000000e+00 : f32
    %8 = vector.broadcast %cst : f32 to vector<16x64x128xf32>
    %9 = arith.maximumf %7, %8 : vector<16x64x128xf32>
    %c0_8 = arith.constant 0 : index
    %c0_9 = arith.constant 0 : index
    %c0_10 = arith.constant 0 : index
    %10 = vector.load %arg4[%c0_8, %c0_9, %c0_10] : memref<16x64x128xf32, #tpu.memory_space<vmem>>, vector<16x64x128xf32>
    tpu.vector_store %arg4[%c0_8, %c0_9, %c0_10], %9 {strides = array<i32>} : memref<16x64x128xf32, #tpu.memory_space<vmem>>, vector<16x64x128xf32>,
    return
  }
  func.func @transform_0(%arg0: i32) -> (i32, i32, i32) {
    %c0_i32 = arith.constant 0 : i32
    %c0_i32_0 = arith.constant 0 : i32
    %c0_i32_1 = arith.constant 0 : i32
    return %arg0, %c0_i32, %c0_i32_0 : i32, i32, i32
  }
  func.func @transform_1(%arg0: i32) -> (i32, i32, i32) {
    %c0_i32 = arith.constant 0 : i32
    %c0_i32_0 = arith.constant 0 : i32
    %c0_i32_1 = arith.constant 0 : i32
    %c0_i32_2 = arith.constant 0 : i32
    return %c0_i32, %c0_i32_0, %c0_i32_1 : i32, i32, i32
  }
  func.func @transform_2(%arg0: i32) -> (i32, i32, i32) {
    %c0_i32 = arith.constant 0 : i32
    %c0_i32_0 = arith.constant 0 : i32
    %c0_i32_1 = arith.constant 0 : i32
    %c0_i32_2 = arith.constant 0 : i32
    return %c0_i32, %c0_i32_0, %c0_i32_1 : i32, i32, i32
  }
  func.func @transform_3(%arg0: i32) -> (i32, i32, i32) {
    %c0_i32 = arith.constant 0 : i32
    %c0_i32_0 = arith.constant 0 : i32
    %c0_i32_1 = arith.constant 0 : i32
    return %arg0, %c0_i32, %c0_i32_0 : i32, i32, i32
  }
}

</mosaic_0001>

<bundles_post_ra>
// kernel: double_conv.4
= control target key start
LH: loop header
LB: loop body
LE: loop exit
PB: predicated region body
PF: predicated region fallthrough
CT: control target
= control target key end

     0   :  { %s1932_s15 = smov 0   ;;  %s1934_s16 = smov 0   ;;  %s2638_s0 = inlined_call_operand.vmem [shape: bf16[2,10,82,8], index: 0, kind: input, shape index: {}]   ;;  %s2639_s1 = inlined_call_operand.vmem [shape: bf16[27,8,128], index: 1, kind: input, shape index: {}]   ;;  %s2640_s2 = inlined_call_operand.vmem [shape: bf16[2,8,64,128], index: 2, kind: output, shape index: {0}]   ;;  %s2641_s3 = inlined_call_operand.vmem [shape: f32[2,8,1,128], index: 3, kind: output, shape index: {1}]   ;;  %s2642_s4 = inlined_call_operand.vmem [shape: f32[2,8,1,128], index: 4, kind: output, shape index: {2}]  }
   0x1   :  { %s1936_s17 = smov 0   ;;  %s1938_s18 = smov 0  }
   0x2   :  { %s1940_s19 = smov 0   ;;  %s1942_s20 = smov 0  }
   0x3   :  { %s1944_s21 = smov 0  }
   0x4 LB: > { %s27_s22 = sadd.s32 1, %s1891_s18  ;;  %s30_s23 = sadd.s32 1, %s1895_s19  ;;  %s1903_s21 = sphi %s1944_s21, %s15_s21   ;;  %s1899_s20 = sphi %s1942_s20, %s2744_s20   ;;  %s1895_s19 = sphi %s1940_s19, %s2743_s19   ;;  %s1891_s18 = sphi %s1938_s18, %s2742_s18   ;;  %s1887_s17 = sphi %s1936_s17, %s2741_s17   ;;  %s1883_s16 = sphi %s1934_s16, %s2740_s16   ;;  %s1879_s15 = sphi %s1932_s15, %s2739_s15  }
   0x5   : > { %p28_p0 = scmp.ge.s32.totalorder %s27_s22, 3  ;;  %p1698_p1 = scmp.ge.s32.totalorder %s1903_s21, 1 }
   0x6   : > { %p202_p2 = scmp.lt.s32.totalorder %s1903_s21, 49  ;;  %s34_s24 = sadd.s32 1, %s1899_s20 }
   0x7   : > { %s2746_s22 = smov (%p28_p0, %s27_s22), 0  ;;  %s2748_s23 = smov (!%p28_p0, %s30_s23), %s1895_s19 }
   0x8   : > { %p203_p3 = pnand %p1698_p1, %p202_p2  ;;  %p32_p4 = scmp.ge.s32.totalorder %s2748_s23, 8 }
   0x9   : > { %s251_s25 = sadd.s32 (!%p203_p3), %s1879_s15, %s1883_s16  ;;  %p252_p6 = scmp.lt.s32.totalorder (!%p203_p3), %s1887_s17, 1 }
   0xa   : > { %s2750_s23 = smov (%p32_p4, %s2748_s23), 0  ;;  %s2752_s24 = smov (!%p32_p4, %s34_s24), %s1899_s20 }
   0xb   : > { %p36_p5 = scmp.ge.s32.totalorder %s2752_s24, 2  ;;  %206 = sbr.rel (%p203_p3) target bundleno = 371 (0x173), region = 28 }
   0xc   : > { %p254_p7 = scmp.lt.s32.totalorder (!%p203_p3), %s251_s25, 9  ;;  %p264_p8 = scmp.lt.s32.totalorder (!%p203_p3), %s1883_s16, 7 }
   0xd   : > { %s2754_s24 = smov (%p36_p5, %s2752_s24), 0  ;;  %p1705_p9 = scmp.ne.s32.totalorder (!%p203_p3), %s1879_s15, 0 }
   0xe   : > { %2652 = sst [smem:[#allocation3_spill]] %s2754_s24 }
  0x10   : > { %s2756_s17 = smov (!%p252_p6, %s1887_s17), 1  ;;  %s2758_s25 = smov (!%p254_p7, %s251_s25), 9 }
  0x11   : > { %s1790_s26 = smul.u32 110, %s2756_s17  ;;  %s1701_s28 = sshll.u32 %s2756_s17, 6 }
  0x12   : > { %s1789_s27 = smul.u32 11, %s2758_s25  ;;  %s2760_s16 = smov (!%p264_p8, %s1883_s16), 7 }
  0x13   : > { %s1703_s30 = sshll.u32 %s2756_s17, 3  ;;  %s1700_s6 = sshll.u32 %s2760_s16, 3 }
  0x14   : > { %s258_s29 = sadd.s32 %s1790_s26, %s1789_s27  ;;  %s268_s10 = sadd.s32 %s1701_s28, %s1700_s6 }
  0x15   : > { %s1699_s5 = sshll.u32 %s258_s29, 2  ;;  %s1702_s11 = sshll.u32 %s268_s10, 2 }
  0x16   : > { %s1985_s9 = scalar_lea.vmem %s2638_s0, %s1699_s5  ;;  %s1987_s12 = sadd.s32 %s1703_s30, %s2760_s16 }
  0x17   : > { %s1992_s25 = scalar_lea.vmem %s2640_s2, %s1702_s11  ;;  %s277_s27 = scalar_lea.vmem %s2641_s3, %s1987_s12 }
  0x18   : > { %s284_s5 = scalar_lea.vmem %s2642_s4, %s1987_s12  ;;  %291 = sbr.rel (%p1705_p9) target bundleno = 38 (0x26), region = 32 }
  0x1d   : > { %v1905_v0 = vmov 0.0  }
  0x1e   : > { %292 = vst [vmem:[#allocation2 + $0x30] sm:$0xff] %v1905_v0 }
  0x1f   : > { %293 = vst [vmem:[#allocation2] sm:$0xff] %v1905_v0 }
  0x20   : > { %294 = vst [vmem:[#allocation2 + $0x18] sm:$0xff] %v1905_v0 }
  0x21   : > { %295 = vst [vmem:[#allocation2 + $0x10] sm:$0xff] %v1905_v0 }
  0x22   : > { %296 = vst [vmem:[#allocation2 + $0x8] sm:$0xff] %v1905_v0 }
  0x23   : > { %297 = vst [vmem:[#allocation2 + $0x20] sm:$0xff] %v1905_v0 }
  0x24   : > { %298 = vst [vmem:[#allocation2 + $0x28] sm:$0xff] %v1905_v0 }
  0x25   : > { %299 = vst [vmem:[#allocation2 + $0x38] sm:$0xff] %v1905_v0 }
  0x26 PF: > { %s1762_s16 = smul.u32 36, %s1879_s15  ;;  %vm545_vm0 = vcmask 1043456   ;;  %v2005_v1 = vld [vmem:[%s1985_s9 + $0x8] sm:$0xf]  ;;  %v2008_v2 = vld [vmem:[%s1985_s9 + $0xc] sm:$0xf]  ;;  %v311_v3 = vlaneseq }
  0x27   : > { %v2011_v4 = vld [vmem:[%s1985_s9 + $0x10] sm:$0xf]  ;;  %v2014_v5 = vld [vmem:[%s1985_s9 + $0x14] sm:$0xf]  ;;  %v483_v6 = vunpack.c.l.b16 %v2005_v1  ;;  %v484_v7 = vunpack.c.l.b16 %v2008_v2  ;;  %vm2644_vm1 = vsmask.f32 7424 }
  0x28   : > { %s2021_s30 = scalar_lea.vmem %s2639_s1, %s1762_s16  ;;  %v485_v8 = vunpack.c.l.b16 %v2011_v4  ;;  %v486_v9 = vunpack.c.l.b16 %v2014_v5  ;;  %vm2649_vm2 = vcmask 64512   ;;  %v2026_v10 = vld [vmem:[%s1985_s9 + $0x18] sm:$0xf]  ;;  %v2029_v11 = vld [vmem:[%s1985_s9 + $0x1c] sm:$0xf]  ;;  %v2031_v12 = vshrl.u32 %v311_v3, 7 }
  0x29   : > { %v1708_v13 = vld [vmem:[%s2021_s30 + $0x4] sm:$0xf]  ;;  %v491_v14 = vpack.c.b16 %v484_v7, %v483_v6  ;;  %v487_v15 = vunpack.c.l.b16 %v2026_v10  ;;  %v488_v16 = vunpack.c.l.b16 %v2029_v11  ;;  %v2041_v17 = vld [vmem:[%s1985_s9 + $0x20] sm:$0xf]  ;;  %v1718_v18 = vld [vmem:[%s2021_s30 + $0x8] sm:$0xf] }
  0x2a   : > { %v547_v19 = vsel %vm545_vm0, %v1708_v13, 0  ;;  %v492_v20 = vpack.c.b16 %v486_v9, %v485_v8  ;;  %v2050_v21 = vunpack.c.l.b16 %v2041_v17  ;;  %v822_v22 = vsel %vm545_vm0, %v1718_v18, 0  ;;  %v2054_v23 = vld [vmem:[%s1985_s9] sm:$0xf]  ;;  %v2057_v24 = vld [vmem:[%s1985_s9 + $0x4] sm:$0xf] }
  0x2b   : > { %1786 = vmatpush.bf16.msra.mxu1 %v547_v19  ;;  %1787 = vmatpush.bf16.msra.mxu2 %v547_v19  ;;  %v504_v25 = vshll.u32 %v491_v14, 16  ;;  %v508_v26 = vshrl.u32 %v491_v14, 16  ;;  %v493_v27 = vpack.c.b16 %v488_v16, %v487_v15  ;;  %v481_v28 = vunpack.c.l.b16 %v2054_v23  ;;  %v1724_v29 = vld [vmem:[%s2021_s30 + $0xc] sm:$0xf]  ;;  %v467_v30 = vld [vmem:[%s2021_s30] sm:$0xf] }
  0x2c   : > { %1788 = vmatpush.bf16.msra.mxu3 %v547_v19  ;;  %556 = vmatpush.bf16.msra.mxu0 %v547_v19  ;;  %v512_v31 = vshll.u32 %v492_v20, 16  ;;  %v516_v32 = vshrl.u32 %v492_v20, 16  ;;  %v494_v33 = vpack.c.b16 %v2050_v21, %v2050_v21  ;;  %v482_v34 = vunpack.c.l.b16 %v2057_v24  ;;  %v1730_v35 = vld [vmem:[%s2021_s30 + $0x10] sm:$0xf]  ;;  %p1759_p10 = scmp.ne.s32.totalorder %s1879_s15, 2 }
  0x2d   : > { %v506_v36 = vrot.slane %v504_v25, 1  ;;  %v520_v37 = vshll.u32 %v493_v27, 16  ;;  %v524_v38 = vshrl.u32 %v493_v27, 16  ;;  %v906_v39 = vsel %vm545_vm0, %v1724_v29, 0 }
  0x2e   : > { %v514_v40 = vrot.slane %v512_v31, 1  ;;  %v528_v41 = vshll.u32 %v494_v33, 16  ;;  %v490_v42 = vpack.c.b16 %v482_v34, %v481_v28  ;;  %v611_v43 = vsel %vm545_vm0, %v467_v30, 0 }
  0x2f   : > { %831 = vmatpush.bf16.msrb.mxu2 %v822_v22  ;;  %v510_v44 = vor.u32 %v508_v26, %v506_v36  ;;  %v522_v45 = vrot.slane %v520_v37, 1  ;;  %620 = vmatpush.bf16.msrb.mxu1 %v611_v43  ;;  %v1005_v46 = vsel %vm545_vm0, %v1730_v35, 0  ;;  %v313_v47 = vadd.s32 8, %v2031_v12 }
  0x30   : > { %915 = vmatpush.bf16.msrb.mxu3 %v906_v39  ;;  %v518_v48 = vor.u32 %v516_v32, %v514_v40  ;;  %v530_v49 = vrot.slane %v528_v41, 1  ;;  %v497_v50 = vshrl.u32 %v490_v42, 16  ;;  %v499_v51 = vshll.u32 %v490_v42, 16  ;;  %1014 = vmatpush.bf16.msrb.mxu0 %v1005_v46 }
  0x31   : > { %v2077_v52 = vsel %vm2644_vm1, %v510_v44, %v514_v40  ;;  %v2079_v53 = vor.u32 %v524_v38, %v522_v45  ;;  %v324_v54 = vand.u32 7, %v2031_v12  ;;  %v331_v55 = vand.u32 7, %v313_v47 }
  0x32   : > { %1710 = vmatmul.msk.bf16.vlgmr.msra.gmra.mxu1 %vm2649_vm2, %v2077_v52  ;;  %v2085_v56 = vsel %vm2644_vm1, %v518_v48, %v522_v45  ;;  %v501_v57 = vrot.slane %v499_v51, 1  ;;  %v2088_v58 = vadd.s32 16, %v2031_v12  ;;  %v2108_v0 = vadd.s32 24, %v2031_v12 }
  0x33   : > { %1711 = vmatmul.msk.bf16.vlgmr.msra.gmra.mxu2 %vm2649_vm2, %v2085_v56  ;;  %v531_v59 = vsel %vm2644_vm1, %v2079_v53, %v530_v49  ;;  %vm416_vm3 = vcmp.gt.s32.totalorder %v324_v54, 0  ;;  %vm417_vm4 = vcmp.gt.s32.totalorder %v331_v55, 0  ;;  %vm2094_vm5 = vcmp.lt.s32.totalorder %v324_v54, 7 }
  0x34   : > { %1712 = vmatmul.msk.bf16.vlgmr.msra.gmra.mxu3 %vm2649_vm2, %v531_v59  ;;  %v502_v61 = vor.u32 %v501_v57, %v497_v50  ;;  %vm2099_vm6 = vcmp.lt.s32.totalorder %v331_v55, 7  ;;  %vm2103_vm7 = vmpackc.low %vm416_vm3, %vm416_vm3  ;;  %v338_v3 = vand.u32 7, %v2088_v58  ;;  %vm674_vm9 = vcmask 1040384  }
  0x35   : > { %vm2111_vm8 = vmpackc.low %vm417_vm4, %vm417_vm4  ;;  %v456_v14 = vsel %vm2103_vm7, %v2054_v23, 0  ;;  %vm675_vm10 = vcmask 1044484   ;;  %v345_v22 = vand.u32 7, %v2108_v0  ;;  %v1906_v26 = vmov 0  }
  0x36   : > { %v507_v18 = vsel %vm2644_vm1, %v502_v61, %v506_v36  ;;  %v457_v19 = vsel %vm2111_vm8, %v2057_v24, 0  ;;  %v586_v20 = vunpack.c.l.b16 %v456_v14  ;;  %vm658_vm11 = vmpackc.low %vm2094_vm5, %vm2094_vm5  ;;  %vm426_vm13 = vcmp.lt.s32.totalorder %v338_v3, 7  ;;  %v1742_v14 = vld [vmem:[%s2021_s30 + $0x18] sm:$0xf] }
  0x37   : > { %1709 = vmatmul.msk.bf16.vlgmr.msra.gmra.mxu0 %vm2649_vm2, %v507_v18  ;;  %v587_v25 = vunpack.c.l.b16 %v457_v19  ;;  %vm659_vm12 = vmpackc.low %vm2099_vm6, %vm2099_vm6  ;;  %v666_v27 = vsel %vm658_vm11, 65537, %v1906_v26  ;;  %v2134_v28 = vunpack.c.l.b16 %v1906_v26  ;;  %vm427_vm14 = vcmp.lt.s32.totalorder %v345_v22, 7 }
  0x38   : > { %v667_v29 = vsel %vm659_vm12, 65537, %v1906_v26  ;;  %v677_v30 = vrot.slane %v666_v27, 7  ;;  %vm660_vm15 = vmpackc.low %vm426_vm13, %vm426_vm13  ;;  %v2140_v31 = vunpack.c.h.b16 %v1906_v26  ;;  %v861_v36 = vsel %vm2103_vm7, %v2057_v24, 0 }
  0x39   : > { %v594_v32 = vpack.c.b16 %v587_v25, %v586_v20  ;;  %v679_v33 = vrot.slane %v667_v29, 7  ;;  %vm661_vm3 = vmpackc.low %vm427_vm14, %vm427_vm14  ;;  %v668_v35 = vsel %vm660_vm15, 65537, %v1906_v26  ;;  %v862_v45 = vsel %vm2111_vm8, %v2005_v1, 0  ;;  %v1748_v25 = vld [vmem:[%s2021_s30 + $0x1c] sm:$0xf] }
  0x3a   : > { %v2147_v37 = vsel %vm661_vm3, 65537, %v1906_v26  ;;  %vm2151_vm4 = vmor %vm674_vm9, %vm675_vm10  ;;  %v678_v39 = vrot.slane %v677_v30, 4  ;;  %v682_v40 = vrot.slane %v668_v35, 7  ;;  %v700_v41 = vunpack.c.l.b16 %v677_v30 }
  0x3b   : > { %v681_v42 = vrot.slane %v679_v33, 4  ;;  %v685_v43 = vrot.slane %v2147_v37, 7  ;;  %v701_v44 = vunpack.c.h.b16 %v677_v30  ;;  %v881_v48 = vunpack.c.l.b16 %v861_v36 }
  0x3c   : > { %v680_v46 = vsel %vm2151_vm4, %v678_v39, %v679_v33  ;;  %v684_v47 = vrot.slane %v682_v40, 4  ;;  %vm704_vm5 = vcmp.ne.s32.totalorder %v700_v41, %v2134_v28  ;;  %v882_v60 = vunpack.c.l.b16 %v862_v45  ;;  %v1754_v41 = vld [vmem:[%s2021_s30 + $0x20] sm:$0xf] }
  0x3d   : > { %v683_v49 = vsel %vm2151_vm4, %v681_v42, %v682_v40  ;;  %vm705_vm6 = vcmp.ne.s32.totalorder %v701_v44, %v2140_v31  ;;  %v707_v50 = vunpack.c.l.b16 %v680_v46  ;;  %v708_v51 = vunpack.c.h.b16 %v680_v46  ;;  %v1736_v40 = vld [vmem:[%s2021_s30 + $0x14] sm:$0xf] }
  0x3e   : > { %v686_v54 = vsel %vm2151_vm4, %v684_v47, %v685_v43  ;;  %vm2169_vm9 = vmpackc.low %vm705_vm6, %vm704_vm5  ;;  %v714_v57 = vunpack.c.l.b16 %v683_v49  ;;  %v715_v59 = vunpack.c.h.b16 %v683_v49  ;;  %vm2643_vm12 = vcmask 1046528  }
  0x3f   : > { %vm711_vm10 = vcmp.ne.s32.totalorder %v707_v50, %v2134_v28  ;;  %vm712_vm11 = vcmp.ne.s32.totalorder %v708_v51, %v2140_v31  ;;  %v721_v61 = vunpack.c.l.b16 %v686_v54  ;;  %v722_v62 = vunpack.c.h.b16 %v686_v54 }
  0x40   : > { %vm2176_vm13 = vmpackc.low %vm712_vm11, %vm711_vm10  ;;  %vm718_vm14 = vcmp.ne.s32.totalorder %v714_v57, %v2134_v28  ;;  %vm719_vm15 = vcmp.ne.s32.totalorder %v715_v59, %v2140_v31  ;;  %v763_v19 = vsel %vm2169_vm9, %v2054_v23, 0  ;;  %v889_v20 = vpack.c.b16 %v882_v60, %v881_v48 }
  0x41   : > { %vm2186_vm3 = vmpackc.low %vm719_vm15, %vm718_vm14  ;;  %vm725_vm5 = vcmp.ne.s32.totalorder %v721_v61, %v2134_v28  ;;  %vm726_vm6 = vcmp.ne.s32.totalorder %v722_v62, %v2140_v31  ;;  %v764_v29 = vsel %vm2176_vm13, %v2057_v24, 0  ;;  %v785_v30 = vunpack.c.l.b16 %v763_v19 }
  0x42   : > { %1713 = vmatmul.msk.bf16.vlgmr.msrb.gmra.mxu1 %vm2649_vm2, %v594_v32  ;;  %vm2196_vm10 = vmpackc.low %vm726_vm6, %vm725_vm5  ;;  %v2669_v33 = vmov 0  ;;  %v765_v23 = vsel %vm2186_vm3, %v2005_v1, 0  ;;  %v786_v35 = vunpack.c.l.b16 %v764_v29  ;;  %v1186_v36 = vsel %vm545_vm0, %v1742_v14, 0 }
  0x43   : > { %v2670_v33 = vsel %vm2196_vm10, 4294967295, %v2669_v33  ;;  %v951_v39 = vpack.c.b16 %v483_v6, %v482_v34  ;;  %v766_v32 = vsel %vm2196_vm10, %v2008_v2, 0  ;;  %v787_v42 = vunpack.c.l.b16 %v765_v23  ;;  %1195 = vmatpush.bf16.msra.mxu2 %v1186_v36 }
  0x44   : > { %v2217_v44 = vpack.c.b16 %v485_v8, %v484_v7  ;;  %v1253_v45 = vsel %vm545_vm0, %v1748_v25, 0  ;;  %v788_v46 = vunpack.c.l.b16 %v766_v32  ;;  %v794_v47 = vpack.c.b16 %v786_v35, %v785_v30  ;;  %1725 = vmatmul.msk.bf16.vlgmr.msrb.gmra.mxu3 %vm2649_vm2, %v889_v20 }
  0x45   : > { %v957_v6 = vshrl.u32 %v951_v39, 16  ;;  %v959_v34 = vshll.u32 %v951_v39, 16  ;;  %1262 = vmatpush.bf16.msra.mxu3 %v1253_v45  ;;  %v1102_v49 = vsel %vm545_vm0, %v1736_v40, 0  ;;  %v1350_v50 = vsel %vm545_vm0, %v1754_v41, 0 }
  0x46   : > { %v964_v48 = vshll.u32 %v2217_v44, 16  ;;  %vm418_vm11 = vcmp.gt.s32.totalorder %v338_v3, 0  ;;  %v795_v7 = vpack.c.b16 %v788_v46, %v787_v42  ;;  %v800_v8 = vrot.slane %v794_v47, 1  ;;  %1111 = vmatpush.bf16.msra.mxu1 %v1102_v49  ;;  %1359 = vmatpush.bf16.msra.mxu0 %v1350_v50 }
  0x47   : > { %v961_v51 = vrot.slane %v959_v34, 1  ;;  %vm419_vm14 = vcmp.gt.s32.totalorder %v345_v22, 0  ;;  %vm2228_vm15 = vmpackc.low %vm418_vm11, %vm418_vm11  ;;  %v2671_v54 = vmov 0  ;;  %v2673_v59 = vmov 0 }
  0x48   : > { %v2672_v54 = vsel %vm2228_vm15, 4294967295, %v2671_v54  ;;  %v966_v57 = vrot.slane %v964_v48, 1  ;;  %vm2232_vm5 = vmpackc.low %vm419_vm14, %vm419_vm14  ;;  %v458_v58 = vsel %vm2228_vm15, %v2005_v1, 0  ;;  %v316_v3 = vadd.s32 32, %v2031_v12 }
  0x49   : > { %v2674_v59 = vsel %vm2232_vm5, 4294967295, %v2673_v59  ;;  %v317_v60 = vadd.s32 40, %v2031_v12  ;;  %v2241_v61 = vrot.slane %v795_v7, 1  ;;  %v962_v0 = vor.u32 %v961_v51, %v957_v6 }
  0x4a   : > { %v459_v22 = vsel %vm2232_vm5, %v2008_v2, 0  ;;  %v588_v62 = vunpack.c.l.b16 %v458_v58  ;;  %v352_v19 = vand.u32 7, %v316_v3  ;;  %v863_v30 = vsel %vm2228_vm15, %v2008_v2, 0 }
  0x4b   : > { %v589_v14 = vunpack.c.l.b16 %v459_v22  ;;  %v359_v20 = vand.u32 7, %v317_v60  ;;  %v802_v25 = vsel %vm2643_vm12, %v800_v8, %v2241_v61  ;;  %v967_v29 = vsel %vm2644_vm1, %v962_v0, %v966_v57 }
  0x4c   : > { %v864_v23 = vsel %vm2232_vm5, %v2011_v4, 0  ;;  %1719 = vmatmul.msk.bf16.vlgmr.msrb.gmra.mxu2 %vm2649_vm2, %v802_v25  ;;  %1731 = vmatmul.msk.bf16.vlgmr.msrb.gmra.mxu0 %vm2649_vm2, %v967_v29  ;;  %vm428_vm0 = vcmp.lt.s32.totalorder %v352_v19, 7  ;;  %v687_v35 = vrot.slane %v685_v43, 4  ;;  %v883_v39 = vunpack.c.l.b16 %v863_v30 }
  0x4d   : > { %vm429_vm6 = vcmp.lt.s32.totalorder %v359_v20, 7  ;;  %v595_v36 = vpack.c.b16 %v589_v14, %v588_v62  ;;  %vm662_vm11 = vmpackc.low %vm428_vm0, %vm428_vm0  ;;  %v884_v40 = vunpack.c.l.b16 %v864_v23  ;;  %v2263_v41 = vpack.c.b16 %v487_v15, %v486_v9 }
  0x4e   : > { %vm663_vm14 = vmpackc.low %vm429_vm6, %vm429_vm6  ;;  %v670_v32 = vsel %vm662_vm11, 65537, %v1906_v26  ;;  %v968_v42 = vshrl.u32 %v2217_v44, 16  ;;  %vm420_vm12 = vcmp.gt.s32.totalorder %v352_v19, 0  ;;  %v2268_v45 = vadd.s32 48, %v2031_v12 }
  0x4f   : > { %v671_v37 = vsel %vm663_vm14, 65537, %v1906_v26  ;;  %v688_v43 = vrot.slane %v670_v32, 7  ;;  %vm421_vm0 = vcmp.gt.s32.totalorder %v359_v20, 0  ;;  %v2272_v46 = vadd.s32 56, %v2031_v12  ;;  %vm2278_vm6 = vmpackc.low %vm420_vm12, %vm420_vm12 }
  0x50   : > { %v691_v47 = vrot.slane %v671_v37, 7  ;;  %v972_v9 = vshll.u32 %v2263_v41, 16  ;;  %v366_v15 = vand.u32 7, %v2268_v45  ;;  %v890_v34 = vpack.c.b16 %v884_v40, %v883_v39  ;;  %vm2284_vm11 = vmpackc.low %vm421_vm0, %vm421_vm0 }
  0x51   : > { %v689_v6 = vsel %vm2151_vm4, %v687_v35, %v688_v43  ;;  %v690_v44 = vrot.slane %v688_v43, 4  ;;  %v970_v7 = vor.u32 %v968_v42, %v966_v57  ;;  %v373_v58 = vand.u32 7, %v2272_v46 }
  0x52   : > { %v728_v49 = vunpack.c.l.b16 %v689_v6  ;;  %v729_v50 = vunpack.c.h.b16 %v689_v6  ;;  %v2282_v8 = vrot.slane %v972_v9, 1  ;;  %1714 = vmatmul.msk.bf16.gmra.mxu1 %vm2649_vm2, %v595_v36  ;;  %vm430_vm12 = vcmp.lt.s32.totalorder %v366_v15, 7 }
  0x53   : > { %v692_v51 = vsel %vm2151_vm4, %v690_v44, %v691_v47  ;;  %v693_v3 = vrot.slane %v691_v47, 4  ;;  %vm664_vm0 = vmpackc.low %vm430_vm12, %vm430_vm12  ;;  %v460_v22 = vsel %vm2278_vm6, %v2011_v4, 0  ;;  %v461_v62 = vsel %vm2284_vm11, %v2014_v5, 0 }
  0x54   : > { %vm732_vm14 = vcmp.ne.s32.totalorder %v728_v49, %v2134_v28  ;;  %vm733_vm1 = vcmp.ne.s32.totalorder %v729_v50, %v2140_v31  ;;  %v735_v57 = vunpack.c.l.b16 %v692_v51  ;;  %v736_v60 = vunpack.c.h.b16 %v692_v51  ;;  %1726 = vmatmul.msk.bf16.gmra.mxu3 %vm2649_vm2, %v890_v34 }
  0x55   : > { %vm2296_vm5 = vmpackc.low %vm733_vm1, %vm732_vm14  ;;  %vm431_vm15 = vcmp.lt.s32.totalorder %v373_v58, 7  ;;  %v672_v14 = vsel %vm664_vm0, 65537, %v1906_v26  ;;  %vm2683_vm2 = vsmask.f32 7424  ;;  %v865_v35 = vsel %vm2278_vm6, %v2014_v5, 0 }
  0x56   : > { %vm739_vm10 = vcmp.ne.s32.totalorder %v735_v57, %v2134_v28  ;;  %vm740_vm1 = vcmp.ne.s32.totalorder %v736_v60, %v2140_v31  ;;  %v767_v19 = vsel %vm2296_vm5, %v2011_v4, 0  ;;  %vm665_vm12 = vmpackc.low %vm431_vm15, %vm431_vm15  ;;  %v694_v20 = vrot.slane %v672_v14, 7 }
  0x57   : > { %vm2313_vm14 = vmpackc.low %vm740_vm1, %vm739_vm10  ;;  %v789_v29 = vunpack.c.l.b16 %v767_v19  ;;  %v975_v30 = vsel %vm2683_vm2, %v970_v7, %v2282_v8  ;;  %v673_v23 = vsel %vm665_vm12, 65537, %v1906_v26  ;;  %v866_v26 = vsel %vm2284_vm11, %v2026_v10, 0 }
  0x58   : > { %v768_v36 = vsel %vm2313_vm14, %v2014_v5, 0  ;;  %v695_v39 = vsel %vm2151_vm4, %v693_v3, %v694_v20  ;;  %v696_v40 = vrot.slane %v694_v20, 4  ;;  %v697_v32 = vrot.slane %v673_v23, 7 }
  0x59   : > { %v790_v42 = vunpack.c.l.b16 %v768_v36  ;;  %v742_v37 = vunpack.c.l.b16 %v695_v39  ;;  %v743_v43 = vunpack.c.h.b16 %v695_v39  ;;  %v590_v46 = vunpack.c.l.b16 %v460_v22 }
  0x5a   : > { %v591_v47 = vunpack.c.l.b16 %v461_v62  ;;  %v698_v9 = vsel %vm2151_vm4, %v696_v40, %v697_v32  ;;  %vm2684_vm15 = vcmask 64512   ;;  %v885_v50 = vunpack.c.l.b16 %v865_v35 }
  0x5b   : > { %v796_v6 = vpack.c.b16 %v790_v42, %v789_v29  ;;  %vm746_vm2 = vcmp.ne.s32.totalorder %v742_v37, %v2134_v28  ;;  %vm747_vm10 = vcmp.ne.s32.totalorder %v743_v43, %v2140_v31  ;;  %v749_v44 = vunpack.c.l.b16 %v698_v9 }
  0x5c   : > { %1732 = vmatmul.msk.bf16.gmra.mxu0 %vm2684_vm15, %v975_v30  ;;  %vm2336_vm0 = vmpackc.low %vm747_vm10, %vm746_vm2  ;;  %v750_v49 = vunpack.c.h.b16 %v698_v9  ;;  %v886_v7 = vunpack.c.l.b16 %v866_v26  ;;  %v2347_v3 = vpack.c.b16 %v2050_v21, %v488_v16  ;;  %vm2687_vm12 = vcmask 1046528  }
  0x5d   : > { %v803_v51 = vrot.slane %v796_v6, 1  ;;  %vm753_vm1 = vcmp.ne.s32.totalorder %v749_v44, %v2134_v28  ;;  %v769_v38 = vsel %vm2336_vm0, %v2026_v10, 0  ;;  %v596_v60 = vpack.c.b16 %v591_v47, %v590_v46  ;;  %vm2690_vm10 = vmmov %vm2684_vm15 }
  0x5e   : > { %vm754_vm4 = vcmp.ne.s32.totalorder %v750_v49, %v2140_v31  ;;  %v2688_v22 = vmov 0  ;;  %v699_v62 = vrot.slane %v697_v32, 4  ;;  %v791_v16 = vunpack.c.l.b16 %v769_v38 }
  0x5f   : > { %v804_v57 = vsel %vm2687_vm12, %v2241_v61, %v803_v51  ;;  %vm2352_vm2 = vmpackc.low %vm754_vm4, %vm753_vm1  ;;  %v976_v19 = vshrl.u32 %v2263_v41, 16  ;;  %vm422_vm15 = vcmp.gt.s32.totalorder %v366_v15, 0  ;;  %v891_v20 = vpack.c.b16 %v886_v7, %v885_v50  ;;  %v2374_v41 = vld [vmem:[%s1985_s9 + $0x24] sm:$0xf] }
  0x60   : > { %v2689_v22 = vsel %vm2352_vm2, 4294967295, %v2688_v22  ;;  %1720 = vmatmul.msk.bf16.gmra.mxu2 %vm2690_vm10, %v804_v57  ;;  %v770_v14 = vsel %vm2352_vm2, %v2029_v11, 0  ;;  %v980_v29 = vshll.u32 %v2347_v3, 16  ;;  %vm423_vm1 = vcmp.gt.s32.totalorder %v373_v58, 0  ;;  %vm2691_vm4 = vmmov %vm2690_vm10 }
  0x61   : > { %v792_v61 = vunpack.c.l.b16 %v770_v14  ;;  %v756_v30 = vunpack.c.l.b16 %v699_v62  ;;  %v757_v23 = vunpack.c.h.b16 %v699_v62  ;;  %vm2365_vm12 = vmpackc.low %vm422_vm15, %vm422_vm15  ;;  %v978_v45 = vor.u32 %v976_v19, %v2282_v8 }
  0x62   : > { %1715 = vmatmul.msk.bf16.gmra.mxu1 %vm2691_vm4, %v596_v60  ;;  %vm2369_vm10 = vmpackc.low %vm423_vm1, %vm423_vm1  ;;  %v982_v15 = vrot.slane %v980_v29, 1  ;;  %v462_v58 = vsel %vm2365_vm12, %v2026_v10, 0  ;;  %v867_v32 = vsel %vm2365_vm12, %v2029_v11, 0  ;;  %v2393_v42 = vunpack.c.l.b16 %v2374_v41 }
  0x63   : > { %v797_v36 = vpack.c.b16 %v792_v61, %v791_v16  ;;  %vm2696_vm2 = vmmov %vm2691_vm4  ;;  %vm760_vm15 = vcmp.ne.s32.totalorder %v756_v30, %v2134_v28  ;;  %vm761_vm4 = vcmp.ne.s32.totalorder %v757_v23, %v2140_v31  ;;  %v463_v40 = vsel %vm2369_vm10, %v2029_v11, 0 }
  0x64   : > { %1727 = vmatmul.msk.bf16.gmra.mxu3 %vm2696_vm2, %v891_v20  ;;  %v868_v8 = vsel %vm2369_vm10, %v2041_v17, 0  ;;  %v1141_v28 = vsel %vm2103_vm7, %v2005_v1, 0  ;;  %vm2697_vm2 = vsmask.f32 7424  ;;  %v592_v43 = vunpack.c.l.b16 %v462_v58  ;;  %vm2399_vm1 = vmpackc.low %vm761_vm4, %vm760_vm15 }
  0x65   : > { %v805_v37 = vrot.slane %v797_v36, 1  ;;  %v983_v31 = vsel %vm2697_vm2, %v978_v45, %v982_v15  ;;  %v1142_v46 = vsel %vm2111_vm8, %v2008_v2, 0  ;;  %v2406_v47 = vunpack.c.l.b16 %v1141_v28 }
  0x66   : > { %v593_v9 = vunpack.c.l.b16 %v463_v40  ;;  %v887_v6 = vunpack.c.l.b16 %v867_v32  ;;  %v888_v44 = vunpack.c.l.b16 %v868_v8  ;;  %v2408_v49 = vunpack.c.l.b16 %v1142_v46 }
  0x67   : > { %v955_v63 = vpack.c.b16 %v2393_v42, %v2393_v42  ;;  %v1292_v50 = vsel %vm2169_vm9, %v2005_v1, 0  ;;  %v1293_v7 = vsel %vm2176_vm13, %v2008_v2, 0  ;;  %v1294_v13 = vsel %vm2186_vm3, %v2011_v4, 0 }
  0x68   : > { %vm2700_vm7 = vcmask 1046528   ;;  %vm2701_vm8 = vcmask 64512   ;;  %v771_v57 = vsel %vm2399_vm1, %v2041_v17, 0  ;;  %v1169_v60 = vpack.c.b16 %v2408_v49, %v2406_v47 }
  0x69   : > { %v806_v38 = vsel %vm2700_vm7, %v803_v51, %v805_v37  ;;  %vm2702_vm15 = vnez %v2670_v33  ;;  %v1314_v14 = vunpack.c.l.b16 %v1292_v50  ;;  %v1315_v16 = vunpack.c.l.b16 %v1293_v7  ;;  %vm2703_vm4 = vmmov %vm2701_vm8 }
  0x6a   : > { %v1295_v62 = vsel %vm2702_vm15, %v2014_v5, 0  ;;  %v1316_v19 = vunpack.c.l.b16 %v1294_v13  ;;  %v984_v20 = vshrl.u32 %v2347_v3, 16  ;;  %v597_v51 = vpack.c.b16 %v593_v9, %v592_v43  ;;  %vm2705_vm2 = vmmov %vm2700_vm7 }
  0x6b   : > { %v1317_v61 = vunpack.c.l.b16 %v1295_v62  ;;  %v1044_v29 = vsel %vm2169_vm9, %v2057_v24, 0  ;;  %v1323_v30 = vpack.c.b16 %v1315_v16, %v1314_v14  ;;  %v793_v36 = vunpack.c.l.b16 %v771_v57  ;;  %vm2704_vm9 = vmmov %vm2703_vm4 }
  0x6c   : > { %1733 = vmatmul.msk.bf16.gmra.mxu0 %vm2701_vm8, %v983_v31  ;;  %v892_v45 = vpack.c.b16 %v888_v44, %v887_v6  ;;  %v988_v58 = vshll.u32 %v955_v63, 16  ;;  %v1045_v40 = vsel %vm2176_vm13, %v2005_v1, 0  ;;  %v1046_v3 = vsel %vm2186_vm3, %v2008_v2, 0  ;;  %vm2708_vm3 = vmmov %vm2703_vm4 }
  0x6d   : > { %v1324_v23 = vpack.c.b16 %v1317_v61, %v1316_v19  ;;  %v1047_v55 = vsel %vm2702_vm15, %v2011_v4, 0  ;;  %v1328_v24 = vrot.slane %v1323_v30, 1  ;;  %v1066_v8 = vunpack.c.l.b16 %v1044_v29  ;;  %vm2710_vm15 = vmmov %vm2708_vm3 }
  0x6e   : > { %v1067_v28 = vunpack.c.l.b16 %v1045_v40  ;;  %vm2706_vm7 = vnez %v2672_v54  ;;  %vm2707_vm13 = vnez %v2674_v59  ;;  %v1068_v18 = vunpack.c.l.b16 %v1046_v3 }
  0x6f   : > { %v1329_v32 = vrot.slane %v1324_v23, 1  ;;  %v1143_v1 = vsel %vm2706_vm7, %v2011_v4, 0  ;;  %v1144_v2 = vsel %vm2707_vm13, %v2014_v5, 0  ;;  %v1069_v27 = vunpack.c.l.b16 %v1047_v55  ;;  %vm2713_vm7 = vmmov %vm2708_vm3 }
  0x70   : > { %1721 = vmatmul.msk.bf16.gmra.mxu2 %vm2703_vm4, %v806_v38  ;;  %v2453_v33 = vunpack.c.l.b16 %v1143_v1  ;;  %v1164_v43 = vunpack.c.l.b16 %v1144_v2  ;;  %v798_v46 = vpack.c.b16 %v793_v36, %v793_v36  ;;  %v986_v9 = vor.u32 %v984_v20, %v982_v15  ;;  %vm2711_vm4 = vmmov %vm2705_vm2 }
  0x71   : > { %v1330_v31 = vsel %vm2705_vm2, %v1328_v24, %v1329_v32  ;;  %v990_v6 = vrot.slane %v988_v58, 1  ;;  %v1075_v63 = vpack.c.b16 %v1067_v28, %v1066_v8  ;;  %v1076_v50 = vpack.c.b16 %v1069_v27, %v1068_v18  ;;  %vm2714_vm13 = vmmov %vm2708_vm3  ;;  %v310_v28 = vld [vmem:[%s1985_s9 + $0x28] sm:$0x1] }
  0x72   : > { %1716 = vmatmul.msk.bf16.gmra.mxu1 %vm2704_vm9, %v597_v51  ;;  %v1170_v44 = vpack.c.b16 %v1164_v43, %v2453_v33  ;;  %v807_v54 = vrot.slane %v798_v46, 1  ;;  %vm2709_vm8 = vsmask.f32 7424  ;;  %vm2712_vm9 = vmmov %vm2708_vm3  ;;  %v1048_v15 = vsel %vm2296_vm5, %v2014_v5, 0 }
  0x73   : > { %v991_v4 = vsel %vm2709_vm8, %v986_v9, %v990_v6  ;;  %v1080_v59 = vrot.slane %v1075_v63, 1  ;;  %v1081_v7 = vrot.slane %v1076_v50, 1  ;;  %v1049_v57 = vsel %vm2313_vm14, %v2026_v10, 0 }
  0x74   : > { %1728 = vmatmul.msk.bf16.gmra.mxu3 %vm2708_vm3, %v892_v45  ;;  %v808_v13 = vsel %vm2711_vm4, %v805_v37, %v807_v54  ;;  %v1145_v62 = vsel %vm2278_vm6, %v2026_v10, 0  ;;  %v1146_v37 = vsel %vm2284_vm11, %v2029_v11, 0  ;;  %v1070_v14 = vunpack.c.l.b16 %v1048_v15  ;;  %vm2715_vm6 = vmmov %vm2708_vm3 }
  0x75   : > { %v1082_v38 = vsel %vm2705_vm2, %v1080_v59, %v1081_v7  ;;  %v1071_v16 = vunpack.c.l.b16 %v1049_v57  ;;  %v1165_v19 = vunpack.c.l.b16 %v1145_v62  ;;  %v1166_v61 = vunpack.c.l.b16 %v1146_v37  ;;  %vm2716_vm11 = vmmov %vm2708_vm3 }
  0x76   : > { %v1296_v51 = vsel %vm2296_vm5, %v2026_v10, 0  ;;  %v1297_v48 = vsel %vm2313_vm14, %v2029_v11, 0  ;;  %vm2717_vm3 = vmmov %vm2705_vm2  ;;  %v1050_v10 = vsel %vm2336_vm0, %v2029_v11, 0  ;;  %vm2718_vm5 = vnez %v2689_v22 }
  0x77   : > { %v1171_v5 = vpack.c.b16 %v1166_v61, %v1165_v19  ;;  %v1077_v20 = vpack.c.b16 %v1071_v16, %v1070_v14  ;;  %v1318_v29 = vunpack.c.l.b16 %v1296_v51  ;;  %v1319_v30 = vunpack.c.l.b16 %v1297_v48  ;;  %vm2719_vm14 = vmmov %vm2715_vm6 }
  0x78   : > { %v1051_v0 = vsel %vm2718_vm5, %v2041_v17, 0  ;;  %v1072_v25 = vunpack.c.l.b16 %v1050_v10  ;;  %vm2720_vm8 = vmmov %vm2715_vm6  ;;  %v1147_v49 = vsel %vm2365_vm12, %v2041_v17, 0  ;;  %v1148_v11 = vsel %vm2369_vm10, %v2374_v41, 0 }
  0x79   : > { %v1083_v12 = vrot.slane %v1077_v20, 1  ;;  %v1325_v23 = vpack.c.b16 %v1319_v30, %v1318_v29  ;;  %v1073_v36 = vunpack.c.l.b16 %v1051_v0  ;;  %v1167_v45 = vunpack.c.l.b16 %v1147_v49  ;;  %vm2722_vm12 = vmmov %vm2715_vm6 }
  0x7a   : > { %v1168_v58 = vunpack.c.l.b16 %v1148_v11  ;;  %v1298_v35 = vsel %vm2336_vm0, %v2041_v17, 0  ;;  %v1299_v39 = vsel %vm2718_vm5, %v2374_v41, 0  ;;  %vm2723_vm10 = vmmov %vm2715_vm6  ;;  %v1052_v17 = vsel %vm2399_vm1, %v2374_v41, 0 }
  0x7b   : > { %v1331_v47 = vrot.slane %v1325_v23, 1  ;;  %v1078_v40 = vpack.c.b16 %v1073_v36, %v1072_v25  ;;  %v1320_v8 = vunpack.c.l.b16 %v1298_v35  ;;  %vm2724_vm4 = vmmov %vm2705_vm2  ;;  %vm2725_vm0 = vsmask.f32 7424 }
  0x7c   : > { %1734 = vmatmul.msk.bf16.gmra.mxu0 %vm2710_vm15, %v991_v4  ;;  %v1172_v3 = vpack.c.b16 %v1168_v58, %v1167_v45  ;;  %vm2721_vm15 = vmmov %vm2705_vm2  ;;  %v1230_v22 = vunpack.c.l.b16 %v310_v28  ;;  %v1074_v1 = vunpack.c.l.b16 %v1052_v17  ;;  %v1300_v9 = vsel %vm2399_vm1, %v310_v28, 0 }
  0x7d   : > { %v1332_v55 = vsel %vm2721_vm15, %v1329_v32, %v1331_v47  ;;  %v1085_v24 = vrot.slane %v1078_v40, 1  ;;  %vm2727_vm2 = vmmov %vm2715_vm6 }
  0x7e   : > { %v1232_v18 = vpack.c.b16 %v1230_v22, %v1230_v22  ;;  %v1079_v27 = vpack.c.b16 %v1074_v1, %v1074_v1  ;;  %vm2733_vm5 = vmmov %vm2727_vm2 }
  0x7f   : > { %v1086_v32 = vsel %vm2724_vm4, %v1083_v12, %v1085_v24  ;;  %vm2735_vm1 = vmmov %vm2724_vm4 }
  0x80   : > { %1722 = vmatmul.msk.bf16.gmra.mxu2 %vm2712_vm9, %v808_v13  ;;  %vm2726_vm9 = vmmov %vm2715_vm6  ;;  %v1242_v46 = vshll.u32 %v1232_v18, 16  ;;  %v1087_v41 = vrot.slane %v1079_v27, 1 }
  0x81   : > { %vm2737_vm15 = vmmov %vm2727_vm2 }
  0x82   : > { %1737 = vmatmul.msk.bf16.vlgmr.msra.gmra.mxu1 %vm2713_vm7, %v1082_v38  ;;  %vm2728_vm7 = vmmov %vm2717_vm3 }
  0x84   : > { %1749 = vmatmul.msk.bf16.vlgmr.msra.gmra.mxu3 %vm2714_vm13, %v2077_v52  ;;  %v1084_v52 = vsel %vm2717_vm3, %v1081_v7, %v1083_v12  ;;  %vm2729_vm13 = vmmov %vm2727_vm2 }
  0x8c   : > { %1755 = vmatmul.msk.bf16.vlgmr.msra.gmra.mxu0 %vm2715_vm6, %v1330_v31  ;;  %vm2730_vm6 = vmmov %vm2727_vm2 }
  0x90   : > { %1743 = vmatmul.msk.bf16.vlgmr.msra.gmra.mxu2 %vm2716_vm11, %v1169_v60  ;;  %v1231_v60 = vpack.c.b16 %v2393_v42, %v2050_v21  ;;  %v1321_v21 = vunpack.c.l.b16 %v1299_v39  ;;  %vm2731_vm11 = vmmov %vm2717_vm3 }
  0x91   : > { %v1088_v50 = vsel %vm2731_vm11, %v1085_v24, %v1087_v41  ;;  %vm2732_vm3 = vmmov %vm2725_vm0 }
  0x92   : > { %1738 = vmatmul.msk.bf16.gmra.mxu1 %vm2719_vm14, %v1084_v52  ;;  %v1326_v31 = vpack.c.b16 %v1321_v21, %v1320_v8  ;;  %v1238_v43 = vshrl.u32 %v1231_v60, 16  ;;  %vm2734_vm14 = vmmov %vm2727_vm2 }
  0x94   : > { %1750 = vmatmul.msk.bf16.gmra.mxu3 %vm2720_vm8, %v2085_v56  ;;  %v1234_v56 = vshll.u32 %v1231_v60, 16  ;;  %v1333_v2 = vrot.slane %v1326_v31, 1  ;;  %vm2736_vm8 = vmmov %vm2727_vm2 }
  0x96   : > { %v1236_v42 = vrot.slane %v1234_v56, 1  ;;  %v1334_v33 = vsel %vm2728_vm7, %v1331_v47, %v1333_v2 }
  0x98   : > { %v1237_v34 = vsel %vm2725_vm0, %v2079_v53, %v1236_v42  ;;  %v1322_v53 = vunpack.c.l.b16 %v1300_v9  ;;  %v1240_v6 = vor.u32 %v1238_v43, %v1236_v42 }
  0x9a   : > { %v1327_v54 = vpack.c.b16 %v1322_v53, %v1322_v53 }
  0x9c   : > { %1756 = vmatmul.msk.bf16.gmra.mxu0 %vm2722_vm12, %v1332_v55  ;;  %v1335_v26 = vrot.slane %v1327_v54, 1 }
  0x9e   : > { %v1336_v38 = vsel %vm2735_vm1, %v1333_v2, %v1335_v26 }
  0xa0   : > { %1744 = vmatmul.msk.bf16.gmra.mxu2 %vm2723_vm10, %v1170_v44  ;;  %v1244_v44 = vrot.slane %v1242_v46, 1 }
  0xa2   : > { %1739 = vmatmul.msk.bf16.gmra.mxu1 %vm2726_vm9, %v1086_v32  ;;  %v1245_v4 = vsel %vm2732_vm3, %v1240_v6, %v1244_v44 }
  0xa4   : > { %1751 = vmatmul.msk.bf16.gmra.mxu3 %vm2727_vm2, %v1237_v34 }
  0xac   : > { %1757 = vmatmul.msk.bf16.gmra.mxu0 %vm2729_vm13, %v1334_v33 }
  0xaf   : > { %v2529_v63 = vpop.f32.mrf.mxu1 }
  0xb0   : > { %1745 = vmatmul.msk.bf16.gmra.mxu2 %vm2730_vm6, %v1171_v5 }
  0xb2   : > { %1740 = vmatmul.msk.bf16.gmra.mxu1 %vm2733_vm5, %v1088_v50  ;;  %v1389_v50 = vld [vmem:[#allocation2 + $0x30] sm:$0xff] }
  0xb4   : > { %v558_v59 = vpop.f32.mrf.mxu0  ;;  %1752 = vmatmul.msk.bf16.gmra.mxu3 %vm2734_vm14, %v1245_v4 }
  0xb6   : > { %v2540_v15 = vpop.f32.mrf.mxu2 }
  0xb7   : > { %v2535_v7 = vpop.f32.mrf.mxu3  ;;  %v2537_v13 = vpop.f32.mrf.mxu1 }
  0xbc   : > { %1758 = vmatmul.msk.bf16.gmra.mxu0 %vm2736_vm8, %v1336_v38  ;;  %v560_v57 = vpop.f32.mrf.mxu0 }
  0xbe   : > { %v2546_v14 = vpop.f32.mrf.mxu2 }
  0xbf   : > { %v2544_v62 = vpop.f32.mrf.mxu3  ;;  %v622_v37 = vpop.f32.mrf.mxu1 }
  0xc0   : > { %1746 = vmatmul.msk.bf16.gmra.mxu2 %vm2737_vm15, %v1172_v3  ;;  %v623_v42 = vadd.f32 %v622_v37, %v558_v59 }
  0xc7   : > { %v917_v16 = vpop.f32.mrf.mxu3  ;;  %v624_v19 = vpop.f32.mrf.mxu1 }
  0xc8   : > { %v625_v1 = vadd.f32 %v624_v19, %v560_v57 }
  0xc9   : > { %v1016_v61 = vpop.f32.mrf.mxu0 }
  0xcf   : > { %v833_v5 = vpop.f32.mrf.mxu2  ;;  %v919_v20 = vpop.f32.mrf.mxu3 }
  0xd0   : > { %v627_v51 = vpop.f32.mrf.mxu1  ;;  %v853_v28 = vadd.f32 %v833_v5, %v623_v42 }
  0xd1   : > { %v1018_v48 = vpop.f32.mrf.mxu0  ;;  %v628_v6 = vadd.f32 %v627_v51, %v2529_v63 }
  0xd2   : > { %v937_v22 = vadd.f32 %v917_v16, %v853_v28 }
  0xd4   : > { %v1036_v18 = vadd.f32 %v1016_v61, %v937_v22 }
  0xd7   : > { %v922_v12 = vpop.f32.mrf.mxu3  ;;  %v835_v30 = vpop.f32.mrf.mxu2 }
  0xd8   : > { %v629_v29 = vpop.f32.mrf.mxu1  ;;  %v854_v2 = vadd.f32 %v835_v30, %v625_v1  ;;  %v1390_v30 = vld [vmem:[#allocation2] sm:$0xff]  ;;  %v1391_v1 = vld [vmem:[#allocation2 + $0x18] sm:$0xff] }
  0xd9   : > { %v1021_v52 = vpop.f32.mrf.mxu0  ;;  %v630_v5 = vadd.f32 %v629_v29, %v2537_v13 }
  0xda   : > { %v938_v9 = vadd.f32 %v919_v20, %v854_v2 }
  0xdc   : > { %v1037_v59 = vadd.f32 %v1018_v48, %v938_v9 }
  0xdf   : > { %v924_v23 = vpop.f32.mrf.mxu3 }
  0xe0   : > { %v2548_v10 = vpop.f32.mrf.mxu1 }
  0xe1   : > { %v2550_v0 = vpop.f32.mrf.mxu0 }
  0xe3   : > { %v838_v25 = vpop.f32.mrf.mxu2 }
  0xe4   : > { %v855_v54 = vadd.f32 %v838_v25, %v628_v6 }
  0xe6   : > { %v939_v16 = vadd.f32 %v922_v12, %v855_v54  ;;  %v633_v12 = vadd.f32 %v2548_v10, %v2540_v15  ;;  %v1392_v15 = vld [vmem:[#allocation2 + $0x10] sm:$0xff] }
  0xe7   : > { %v2552_v36 = vpop.f32.mrf.mxu3 }
  0xe8   : > { %v2554_v47 = vpop.f32.mrf.mxu1  ;;  %v1038_v51 = vadd.f32 %v1021_v52, %v939_v16 }
  0xe9   : > { %v2556_v49 = vpop.f32.mrf.mxu0 }
  0xeb   : > { %v840_v11 = vpop.f32.mrf.mxu2 }
  0xec   : > { %v856_v42 = vadd.f32 %v840_v11, %v630_v5 }
  0xee   : > { %v940_v48 = vadd.f32 %v924_v23, %v856_v42 }
  0xef   : > { %v2558_v60 = vpop.f32.mrf.mxu3 }
  0xf0   : > { %v2560_v45 = vpop.f32.mrf.mxu1 }
  0xf1   : > { %v2562_v58 = vpop.f32.mrf.mxu0 }
  0xf3   : > { %v843_v40 = vpop.f32.mrf.mxu2 }
  0xf4   : > { %v857_v13 = vadd.f32 %v843_v40, %v633_v12 }
  0xf7   : > { %v2564_v3 = vpop.f32.mrf.mxu3 }
  0xf8   : > { %v2566_v55 = vpop.f32.mrf.mxu1 }
  0xf9   : > { %v2568_v56 = vpop.f32.mrf.mxu0 }
  0xfb   : > { %v2570_v35 = vpop.f32.mrf.mxu2 }
  0xff   : > { %v2572_v39 = vpop.f32.mrf.mxu3 }
 0x100   : > { %v1113_v8 = vpop.f32.mrf.mxu1 }
 0x101   : > { %v2574_v24 = vpop.f32.mrf.mxu0  ;;  %v1133_v33 = vadd.f32 %v1113_v8, %v1036_v18  ;;  %v1039_v18 = vadd.f32 %v2550_v0, %v940_v48  ;;  %v1395_v48 = vld [vmem:[#allocation2 + $0x28] sm:$0xff] }
 0x103   : > { %v2576_v21 = vpop.f32.mrf.mxu2 }
 0x107   : > { %v1264_v32 = vpop.f32.mrf.mxu3 }
 0x108   : > { %v1115_v34 = vpop.f32.mrf.mxu1 }
 0x109   : > { %v1361_v31 = vpop.f32.mrf.mxu0  ;;  %v1134_v38 = vadd.f32 %v1115_v34, %v1037_v59  ;;  %v1393_v59 = vld [vmem:[#allocation2 + $0x8] sm:$0xff] }
 0x10b   : > { %v2578_v17 = vpop.f32.mrf.mxu2 }
 0x10f   : > { %v1266_v27 = vpop.f32.mrf.mxu3 }
 0x110   : > { %v1118_v53 = vpop.f32.mrf.mxu1 }
 0x111   : > { %v1363_v46 = vpop.f32.mrf.mxu0  ;;  %v1135_v25 = vadd.f32 %v1118_v53, %v1038_v51 }
 0x113   : > { %v1197_v43 = vpop.f32.mrf.mxu2 }
 0x114   : > { %v1217_v41 = vadd.f32 %v1197_v43, %v1133_v33  ;;  %v941_v43 = vadd.f32 %v2552_v36, %v857_v13  ;;  %v1396_v13 = vld [vmem:[#allocation2 + $0x38] sm:$0xff] }
 0x116   : > { %v1284_v44 = vadd.f32 %v1264_v32, %v1217_v41  ;;  %v1040_v53 = vadd.f32 %v2556_v49, %v941_v43 }
 0x117   : > { %v1269_v57 = vpop.f32.mrf.mxu3 }
 0x118   : > { %v1381_v4 = vadd.f32 %v1361_v31, %v1284_v44  ;;  %v1120_v8 = vpop.f32.mrf.mxu1 }
 0x119   : > { %v1366_v61 = vpop.f32.mrf.mxu0  ;;  %v1136_v52 = vadd.f32 %v1120_v8, %v1039_v18 }
 0x11a   : > { %v1397_v26 = vadd.f32 %v1389_v50, %v1381_v4 }
 0x11b   : > { %v1199_v37 = vpop.f32.mrf.mxu2 }
 0x11c   : > { %1405 = vst [vmem:[#allocation2 + $0x30] sm:$0xff] %v1397_v26  ;;  %v1218_v19 = vadd.f32 %v1199_v37, %v1134_v38 }
 0x11e   : > { %v1285_v20 = vadd.f32 %v1266_v27, %v1218_v19 }
 0x11f   : > { %v1271_v34 = vpop.f32.mrf.mxu3 }
 0x120   : > { %v1382_v63 = vadd.f32 %v1363_v46, %v1285_v20  ;;  %v1123_v11 = vpop.f32.mrf.mxu1  ;;  %v635_v46 = vadd.f32 %v2554_v47, %v2546_v14  ;;  %v638_v14 = vadd.f32 %v2560_v45, %v2535_v7  ;;  %v640_v7 = vadd.f32 %v2566_v55, %v2544_v62  ;;  %v1394_v20 = vld [vmem:[#allocation2 + $0x20] sm:$0xff] }
 0x121   : > { %v1368_v2 = vpop.f32.mrf.mxu0  ;;  %v1137_v44 = vadd.f32 %v1123_v11, %v1040_v53 }
 0x122   : > { %v1398_v28 = vadd.f32 %v1390_v30, %v1382_v63  ;;  %v858_v41 = vadd.f32 %v2570_v35, %v635_v46  ;;  %v859_v26 = vadd.f32 %v2576_v21, %v638_v14  ;;  %v860_v21 = vadd.f32 %v2578_v17, %v640_v7 }
 0x123   : > { %v1202_v32 = vpop.f32.mrf.mxu2 }
 0x124   : > { %1406 = vst [vmem:[#allocation2] sm:$0xff] %v1398_v28  ;;  %v1219_v31 = vadd.f32 %v1202_v32, %v1135_v25  ;;  %v942_v36 = vadd.f32 %v2558_v60, %v858_v41  ;;  %v944_v28 = vadd.f32 %v2572_v39, %v860_v21 }
 0x126   : > { %v1286_v22 = vadd.f32 %v1269_v57, %v1219_v31  ;;  %v1041_v38 = vadd.f32 %v2562_v58, %v942_v36  ;;  %v1043_v55 = vadd.f32 %v2574_v24, %v944_v28 }
 0x127   : > { %v1274_v10 = vpop.f32.mrf.mxu3 }
 0x128   : > { %v1383_v29 = vadd.f32 %v1366_v61, %v1286_v22  ;;  %v1125_v54 = vpop.f32.mrf.mxu1  ;;  %v943_v61 = vadd.f32 %v2564_v3, %v859_v26 }
 0x129   : > { %v1371_v0 = vpop.f32.mrf.mxu0  ;;  %v1138_v57 = vadd.f32 %v1125_v54, %v1041_v38 }
 0x12a   : > { %v1399_v27 = vadd.f32 %v1391_v1, %v1383_v29  ;;  %v1042_v58 = vadd.f32 %v2568_v56, %v943_v61 }
 0x12b   : > { %v1204_v33 = vpop.f32.mrf.mxu2 }
 0x12c   : > { %1407 = vst [vmem:[#allocation2 + $0x18] sm:$0xff] %v1399_v27  ;;  %v1220_v23 = vadd.f32 %v1204_v33, %v1136_v52 }
 0x12e   : > { %v1287_v9 = vadd.f32 %v1271_v34, %v1220_v23 }
 0x12f   : > { %v1276_v49 = vpop.f32.mrf.mxu3 }
 0x130   : > { %v1384_v40 = vadd.f32 %v1368_v2, %v1287_v9  ;;  %v1128_v5 = vpop.f32.mrf.mxu1 }
 0x131   : > { %v1373_v16 = vpop.f32.mrf.mxu0  ;;  %v1139_v42 = vadd.f32 %v1128_v5, %v1042_v58 }
 0x132   : > { %v1400_v6 = vadd.f32 %v1392_v15, %v1384_v40 }
 0x133   : > { %v1207_v50 = vpop.f32.mrf.mxu2 }
 0x134   : > { %1408 = vst [vmem:[#allocation2 + $0x10] sm:$0xff] %v1400_v6  ;;  %v1221_v4 = vadd.f32 %v1207_v50, %v1137_v44 }
 0x136   : > { %v1288_v47 = vadd.f32 %v1274_v10, %v1221_v4 }
 0x137   : > { %v1279_v51 = vpop.f32.mrf.mxu3 }
 0x138   : > { %v1385_v35 = vadd.f32 %v1371_v0, %v1288_v47  ;;  %v1130_v31 = vpop.f32.mrf.mxu1 }
 0x139   : > { %v1376_v25 = vpop.f32.mrf.mxu0  ;;  %v1140_v17 = vadd.f32 %v1130_v31, %v1043_v55 }
 0x13a   : > { %v1401_v37 = vadd.f32 %v1393_v59, %v1385_v35 }
 0x13b   : > { %v1209_v19 = vpop.f32.mrf.mxu2 }
 0x13c   : > { %1409 = vst [vmem:[#allocation2 + $0x8] sm:$0xff] %v1401_v37  ;;  %v1222_v60 = vadd.f32 %v1209_v19, %v1138_v57 }
 0x13e   : > { %v1289_v45 = vadd.f32 %v1276_v49, %v1222_v60 }
 0x13f   : > { %v1281_v22 = vpop.f32.mrf.mxu3 }
 0x140   : > { %v1386_v30 = vadd.f32 %v1373_v16, %v1289_v45 }
 0x141   : > { %v1378_v2 = vpop.f32.mrf.mxu0 }
 0x142   : > { %v1402_v8 = vadd.f32 %v1394_v20, %v1386_v30 }
 0x143   : > { %v1212_v63 = vpop.f32.mrf.mxu2 }
 0x144   : > { %1410 = vst [vmem:[#allocation2 + $0x20] sm:$0xff] %v1402_v8  ;;  %v1223_v3 = vadd.f32 %v1212_v63, %v1139_v42 }
 0x146   : > { %v1290_v32 = vadd.f32 %v1279_v51, %v1223_v3 }
 0x148   : > { %v1387_v62 = vadd.f32 %v1376_v25, %v1290_v32 }
 0x14a   : > { %v1403_v34 = vadd.f32 %v1395_v48, %v1387_v62 }
 0x14b   : > { %v1214_v12 = vpop.f32.mrf.mxu2 }
 0x14c   : > { %1411 = vst [vmem:[#allocation2 + $0x28] sm:$0xff] %v1403_v34  ;;  %v1224_v56 = vadd.f32 %v1214_v12, %v1140_v17 }
 0x14e   : > { %v1291_v1 = vadd.f32 %v1281_v22, %v1224_v56 }
 0x150   : > { %v1388_v29 = vadd.f32 %v1378_v2, %v1291_v1  ;;  %1416 = sbr.rel (%p1759_p10) target bundleno = 371 (0x173), region = 36 }
 0x152   : > { %v1404_v39 = vadd.f32 %v1396_v13, %v1388_v29 }
 0x154   : > { %1412 = vst [vmem:[#allocation2 + $0x38] sm:$0xff] %v1404_v39 }
 0x155   : > { %v1417_v18 = vld [vmem:[#allocation2 + $0x30] sm:$0xff]  ;;  %v1418_v11 = vld [vmem:[#allocation2] sm:$0xff]  ;;  %v1419_v27 = vld [vmem:[#allocation2 + $0x18] sm:$0xff] }
 0x156   : > { %v1766_v24 = vpack.c.bf16 %v1418_v11, %v1417_v18  ;;  %v1441_v52 = vadd.f32 %v1418_v11, %v1417_v18  ;;  %v1455_v33 = vmul.f32 %v1417_v18, %v1417_v18  ;;  %v1456_v43 = vmul.f32 %v1418_v11, %v1418_v11  ;;  %v1420_v23 = vld [vmem:[#allocation2 + $0x10] sm:$0xff]  ;;  %v1421_v46 = vld [vmem:[#allocation2 + $0x8] sm:$0xff]  ;;  %v1422_v9 = vld [vmem:[#allocation2 + $0x20] sm:$0xff] }
 0x157   : > { %v1771_v15 = vpack.c.bf16 %v1420_v23, %v1419_v27  ;;  %v1457_v10 = vmul.f32 %v1419_v27, %v1419_v27  ;;  %v1776_v41 = vpack.c.bf16 %v1422_v9, %v1421_v46  ;;  %v1458_v0 = vmul.f32 %v1420_v23, %v1420_v23  ;;  %v1423_v6 = vld [vmem:[#allocation2 + $0x28] sm:$0xff] }
 0x158   : > { %1767 = vst [vmem:[%s1992_s25] sm:$0xff] %v1766_v24   ;;  %v1463_v40 = vadd.f32 %v1456_v43, %v1455_v33  ;;  %v1442_v53 = vadd.f32 %v1441_v52, %v1419_v27  ;;  %v1459_v4 = vmul.f32 %v1421_v46, %v1421_v46  ;;  %v1460_v59 = vmul.f32 %v1422_v9, %v1422_v9 }
 0x159   : > { %1783 = vst [vmem:[%s1992_s25 + $0x8] sm:$0xff] %v1771_v15   ;;  %v1461_v38 = vmul.f32 %v1423_v6, %v1423_v6 }
 0x15a   : > { %v1443_v54 = vadd.f32 %v1442_v53, %v1420_v23  ;;  %v1464_v36 = vadd.f32 %v1463_v40, %v1457_v10  ;;  %1784 = vst [vmem:[%s1992_s25 + $0x10] sm:$0xff] %v1776_v41  }
 0x15b   : > { %v1424_v44 = vld [vmem:[#allocation2 + $0x38] sm:$0xff] }
 0x15c   : > { %v1781_v50 = vpack.c.bf16 %v1424_v44, %v1423_v6  ;;  %v1465_v14 = vadd.f32 %v1464_v36, %v1458_v0  ;;  %v1444_v47 = vadd.f32 %v1443_v54, %v1421_v46  ;;  %v1462_v57 = vmul.f32 %v1424_v44, %v1424_v44 }
 0x15e   : > { %1785 = vst [vmem:[%s1992_s25 + $0x18] sm:$0xff] %v1781_v50   ;;  %v1445_v26 = vadd.f32 %v1444_v47, %v1422_v9  ;;  %v1466_v35 = vadd.f32 %v1465_v14, %v1459_v4 }
 0x160   : > { %v1467_v49 = vadd.f32 %v1466_v35, %v1460_v59  ;;  %v1446_v37 = vadd.f32 %v1445_v26, %v1423_v6 }
 0x162   : > { %v1447_v16 = vadd.f32 %v1446_v37, %v1424_v44  ;;  %v1468_v19 = vadd.f32 %v1467_v49, %v1461_v38 }
 0x164   : > { %v1448_v61 = vrot.slane %v1447_v16, 4  ;;  %v1469_v60 = vadd.f32 %v1468_v19, %v1462_v57 }
 0x166   : > { %v1449_v5 = vadd.f32 %v1448_v61, %v1447_v16  ;;  %v1470_v7 = vrot.slane %v1469_v60, 4 }
 0x168   : > { %v1450_v45 = vrot.slane %v1449_v5, 2  ;;  %v1471_v20 = vadd.f32 %v1470_v7, %v1469_v60 }
 0x16a   : > { %v1451_v21 = vadd.f32 %v1450_v45, %v1449_v5  ;;  %v1472_v30 = vrot.slane %v1471_v20, 2 }
 0x16c   : > { %v1452_v58 = vrot.slane %v1451_v21, 1  ;;  %v1473_v8 = vadd.f32 %v1472_v30, %v1471_v20 }
 0x16e   : > { %v1453_v42 = vadd.f32 %v1452_v58, %v1451_v21  ;;  %v1474_v63 = vrot.slane %v1473_v8, 1 }
 0x170   : > { %1454 = vst [vmem:[%s277_s27] sm:$0x1] %v1453_v42  ;;  %v1475_v51 = vadd.f32 %v1474_v63, %v1473_v8 }
 0x172   : > { %1476 = vst [vmem:[%s284_s5] sm:$0x1] %v1475_v51 }
 0x173 PF: > { %s15_s21 = sadd.s32 1, %s1903_s21   ;;  %s2738_s9 = sld [smem:[#allocation3_spill]] }
 0x174   : > { %p12_p11 = scmp.ge.s32.totalorder %s15_s21, 50   ;;  %s2739_s15 = smov %s1891_s18 }
 0x175   : > { %s2740_s16 = smov %s1895_s19  ;;  %s2741_s17 = smov %s1899_s20 }
 0x176   : > { %s2742_s18 = smov %s2746_s22  ;;  %s2743_s19 = smov %s2750_s23 }
 0x177   :  { %14 = sbr.rel (!%p12_p11) target bundleno = 4 (0x4), region = 99 }
 0x179   : > { %s2744_s20 = smov %s2738_s9 }

// kernel: double_conv.5
= control target key start
LH: loop header
LB: loop body
LE: loop exit
PB: predicated region body
PF: predicated region fallthrough
CT: control target
= control target key end

     0   :  { %s2308_s0 = inlined_call_operand.vmem [shape: bf16[16,64,128], index: 0, kind: input, shape index: {}]   ;;  %s2309_s1 = inlined_call_operand.vmem [shape: f32[1,1,128], index: 1, kind: input, shape index: {}]   ;;  %s2310_s2 = inlined_call_operand.vmem [shape: f32[1,1,128], index: 2, kind: input, shape index: {}]   ;;  %s2311_s3 = inlined_call_operand.vmem [shape: bf16[16,64,128], index: 3, kind: output, shape index: {}]  }
   0x1   :  { %v923_v0 = vld [vmem:[%s2308_s0] sm:$0xff]   ;;  %v1498_v5 = vld [vmem:[%s2308_s0 + $0x8] sm:$0xff]   ;;  %v1499_v8 = vld [vmem:[%s2308_s0 + $0x10] sm:$0xff]  }
   0x2   :  { %v1654_v1 = vld [vmem:[%s2309_s1] ss:$0 sm:$0xff]  ;;  %v924_v2 = vunpack.c.l.bf16 %v923_v0  ;;  %v925_v3 = vunpack.c.h.bf16 %v923_v0  ;;  %v928_v6 = vunpack.c.l.bf16 %v1498_v5  ;;  %v929_v7 = vunpack.c.h.bf16 %v1498_v5  ;;  %v1500_v9 = vld [vmem:[%s2308_s0 + $0x18] sm:$0xff]   ;;  %v1502_v35 = vld [vmem:[%s2308_s0 + $0x28] sm:$0xff]  }
   0x3   :  { %v1659_v4 = vld [vmem:[%s2310_s2] ss:$0 sm:$0xff]  ;;  %v932_v12 = vunpack.c.l.bf16 %v1499_v8  ;;  %v933_v13 = vunpack.c.h.bf16 %v1499_v8  ;;  %v936_v16 = vunpack.c.l.bf16 %v1500_v9  ;;  %v937_v17 = vunpack.c.h.bf16 %v1500_v9  ;;  %v1503_v40 = vld [vmem:[%s2308_s0 + $0x30] sm:$0xff]   ;;  %v1504_v45 = vld [vmem:[%s2308_s0 + $0x38] sm:$0xff]  }
   0x4   :  { %v274_v10 = vmul.f32 %v1654_v1, %v924_v2  ;;  %v275_v11 = vmul.f32 %v1654_v1, %v925_v3  ;;  %v276_v14 = vmul.f32 %v1654_v1, %v928_v6  ;;  %v277_v15 = vmul.f32 %v1654_v1, %v929_v7  ;;  %v1501_v26 = vld [vmem:[%s2308_s0 + $0x20] sm:$0xff]  }
   0x5   :  { %v278_v20 = vmul.f32 %v1654_v1, %v932_v12  ;;  %v279_v21 = vmul.f32 %v1654_v1, %v933_v13  ;;  %v280_v24 = vmul.f32 %v1654_v1, %v936_v16  ;;  %v281_v25 = vmul.f32 %v1654_v1, %v937_v17  ;;  %v1505_v62 = vld [vmem:[%s2308_s0 + $0x40] sm:$0xff]   ;;  %v1506_v13 = vld [vmem:[%s2308_s0 + $0x48] sm:$0xff]  }
   0x6   :  { %v406_v18 = vadd.f32 %v1659_v4, %v274_v10  ;;  %v407_v19 = vadd.f32 %v1659_v4, %v275_v11  ;;  %v408_v22 = vadd.f32 %v1659_v4, %v276_v14  ;;  %v409_v23 = vadd.f32 %v1659_v4, %v277_v15 }
   0x7   :  { %v410_v29 = vadd.f32 %v1659_v4, %v278_v20  ;;  %v411_v30 = vadd.f32 %v1659_v4, %v279_v21  ;;  %v412_v33 = vadd.f32 %v1659_v4, %v280_v24  ;;  %v413_v34 = vadd.f32 %v1659_v4, %v281_v25 }
   0x8   :  { %v534_v27 = vmax.f32 %v406_v18, 0.0  ;;  %v535_v28 = vmax.f32 %v407_v19, 0.0  ;;  %v536_v31 = vmax.f32 %v408_v22, 0.0  ;;  %v537_v32 = vmax.f32 %v409_v23, 0.0  ;;  %v1507_v18 = vld [vmem:[%s2308_s0 + $0x50] sm:$0xff]   ;;  %v1508_v23 = vld [vmem:[%s2308_s0 + $0x58] sm:$0xff]  }
   0x9   :  { %v538_v37 = vmax.f32 %v410_v29, 0.0  ;;  %v539_v38 = vmax.f32 %v411_v30, 0.0  ;;  %v940_v39 = vunpack.c.l.bf16 %v1501_v26  ;;  %v540_v42 = vmax.f32 %v412_v33, 0.0 }
   0xa   :  { %v1181_v36 = vpack.c.bf16 %v535_v28, %v534_v27  ;;  %v1186_v41 = vpack.c.bf16 %v537_v32, %v536_v31  ;;  %v541_v43 = vmax.f32 %v413_v34, 0.0  ;;  %v941_v44 = vunpack.c.h.bf16 %v1501_v26 }
   0xb   :  { %v1191_v46 = vpack.c.bf16 %v539_v38, %v538_v37  ;;  %v282_v47 = vmul.f32 %v1654_v1, %v940_v39  ;;  %v944_v48 = vunpack.c.l.bf16 %v1502_v35  ;;  %v945_v49 = vunpack.c.h.bf16 %v1502_v35 }
   0xc   :  { %1182 = vst [vmem:[%s2311_s3] sm:$0xff] %v1181_v36   ;;  %v1196_v50 = vpack.c.bf16 %v541_v43, %v540_v42  ;;  %v283_v51 = vmul.f32 %v1654_v1, %v941_v44  ;;  %v948_v52 = vunpack.c.l.bf16 %v1503_v40  ;;  %v949_v53 = vunpack.c.h.bf16 %v1503_v40  ;;  %v1509_v36 = vld [vmem:[%s2308_s0 + $0x60] sm:$0xff]  }
   0xd   :  { %1561 = vst [vmem:[%s2311_s3 + $0x8] sm:$0xff] %v1186_v41   ;;  %v414_v54 = vadd.f32 %v1659_v4, %v282_v47  ;;  %v284_v55 = vmul.f32 %v1654_v1, %v944_v48  ;;  %v285_v56 = vmul.f32 %v1654_v1, %v945_v49  ;;  %v952_v57 = vunpack.c.l.bf16 %v1504_v45 }
   0xe   :  { %1562 = vst [vmem:[%s2311_s3 + $0x10] sm:$0xff] %v1191_v46   ;;  %v415_v58 = vadd.f32 %v1659_v4, %v283_v51  ;;  %v286_v59 = vmul.f32 %v1654_v1, %v948_v52  ;;  %v287_v60 = vmul.f32 %v1654_v1, %v949_v53  ;;  %v953_v61 = vunpack.c.h.bf16 %v1504_v45  ;;  %v1510_v53 = vld [vmem:[%s2308_s0 + $0x68] sm:$0xff]  }
   0xf   :  { %1563 = vst [vmem:[%s2311_s3 + $0x18] sm:$0xff] %v1196_v50   ;;  %v542_v63 = vmax.f32 %v414_v54, 0.0  ;;  %v416_v0 = vadd.f32 %v1659_v4, %v284_v55  ;;  %v417_v2 = vadd.f32 %v1659_v4, %v285_v56  ;;  %v288_v3 = vmul.f32 %v1654_v1, %v952_v57 }
  0x10   :  { %v543_v5 = vmax.f32 %v415_v58, 0.0  ;;  %v418_v6 = vadd.f32 %v1659_v4, %v286_v59  ;;  %v419_v7 = vadd.f32 %v1659_v4, %v287_v60  ;;  %v289_v8 = vmul.f32 %v1654_v1, %v953_v61  ;;  %v1511_v58 = vld [vmem:[%s2308_s0 + $0x70] sm:$0xff]  }
  0x11   :  { %v544_v9 = vmax.f32 %v416_v0, 0.0  ;;  %v545_v10 = vmax.f32 %v417_v2, 0.0  ;;  %v420_v11 = vadd.f32 %v1659_v4, %v288_v3  ;;  %v956_v12 = vunpack.c.l.bf16 %v1505_v62 }
  0x12   :  { %v1201_v14 = vpack.c.bf16 %v543_v5, %v542_v63  ;;  %v546_v15 = vmax.f32 %v418_v6, 0.0  ;;  %v547_v16 = vmax.f32 %v419_v7, 0.0  ;;  %v421_v17 = vadd.f32 %v1659_v4, %v289_v8  ;;  %v1512_v63 = vld [vmem:[%s2308_s0 + $0x78] sm:$0xff]  }
  0x13   :  { %v1206_v19 = vpack.c.bf16 %v545_v10, %v544_v9  ;;  %v548_v20 = vmax.f32 %v420_v11, 0.0  ;;  %v957_v21 = vunpack.c.h.bf16 %v1505_v62  ;;  %v290_v22 = vmul.f32 %v1654_v1, %v956_v12 }
  0x14   :  { %1564 = vst [vmem:[%s2311_s3 + $0x20] sm:$0xff] %v1201_v14   ;;  %v1211_v24 = vpack.c.bf16 %v547_v16, %v546_v15  ;;  %v549_v25 = vmax.f32 %v421_v17, 0.0  ;;  %v960_v26 = vunpack.c.l.bf16 %v1506_v13  ;;  %v961_v27 = vunpack.c.h.bf16 %v1506_v13  ;;  %v1513_v14 = vld [vmem:[%s2308_s0 + $0x80] sm:$0xff]  }
  0x15   :  { %1565 = vst [vmem:[%s2311_s3 + $0x28] sm:$0xff] %v1206_v19   ;;  %v291_v28 = vmul.f32 %v1654_v1, %v957_v21  ;;  %v422_v29 = vadd.f32 %v1659_v4, %v290_v22  ;;  %v964_v30 = vunpack.c.l.bf16 %v1507_v18  ;;  %v965_v31 = vunpack.c.h.bf16 %v1507_v18 }
  0x16   :  { %1566 = vst [vmem:[%s2311_s3 + $0x30] sm:$0xff] %v1211_v24   ;;  %v1216_v32 = vpack.c.bf16 %v549_v25, %v548_v20  ;;  %v292_v33 = vmul.f32 %v1654_v1, %v960_v26  ;;  %v293_v34 = vmul.f32 %v1654_v1, %v961_v27  ;;  %v968_v35 = vunpack.c.l.bf16 %v1508_v23  ;;  %v1514_v27 = vld [vmem:[%s2308_s0 + $0x88] sm:$0xff]  }
  0x17   :  { %v423_v37 = vadd.f32 %v1659_v4, %v291_v28  ;;  %v550_v38 = vmax.f32 %v422_v29, 0.0  ;;  %v294_v39 = vmul.f32 %v1654_v1, %v964_v30  ;;  %v295_v40 = vmul.f32 %v1654_v1, %v965_v31 }
  0x18   :  { %1567 = vst [vmem:[%s2311_s3 + $0x38] sm:$0xff] %v1216_v32   ;;  %v424_v41 = vadd.f32 %v1659_v4, %v292_v33  ;;  %v425_v42 = vadd.f32 %v1659_v4, %v293_v34  ;;  %v969_v43 = vunpack.c.h.bf16 %v1508_v23  ;;  %v296_v44 = vmul.f32 %v1654_v1, %v968_v35 }
  0x19   :  { %v551_v45 = vmax.f32 %v423_v37, 0.0  ;;  %v426_v46 = vadd.f32 %v1659_v4, %v294_v39  ;;  %v427_v47 = vadd.f32 %v1659_v4, %v295_v40  ;;  %v972_v48 = vunpack.c.l.bf16 %v1509_v36 }
  0x1a   :  { %v552_v49 = vmax.f32 %v424_v41, 0.0  ;;  %v553_v50 = vmax.f32 %v425_v42, 0.0  ;;  %v297_v51 = vmul.f32 %v1654_v1, %v969_v43  ;;  %v428_v52 = vadd.f32 %v1659_v4, %v296_v44  ;;  %v1516_v41 = vld [vmem:[%s2308_s0 + $0x98] sm:$0xff]  }
  0x1b   :  { %v1221_v54 = vpack.c.bf16 %v551_v45, %v550_v38  ;;  %v554_v55 = vmax.f32 %v426_v46, 0.0  ;;  %v555_v56 = vmax.f32 %v427_v47, 0.0  ;;  %v973_v57 = vunpack.c.h.bf16 %v1509_v36  ;;  %v1515_v36 = vld [vmem:[%s2308_s0 + $0x90] sm:$0xff]  }
  0x1c   :  { %v1226_v59 = vpack.c.bf16 %v553_v50, %v552_v49  ;;  %v429_v60 = vadd.f32 %v1659_v4, %v297_v51  ;;  %v556_v61 = vmax.f32 %v428_v52, 0.0  ;;  %v298_v62 = vmul.f32 %v1654_v1, %v972_v48 }
  0x1d   :  { %1568 = vst [vmem:[%s2311_s3 + $0x40] sm:$0xff] %v1221_v54   ;;  %v1231_v0 = vpack.c.bf16 %v555_v56, %v554_v55  ;;  %v299_v2 = vmul.f32 %v1654_v1, %v973_v57  ;;  %v976_v3 = vunpack.c.l.bf16 %v1510_v53  ;;  %v977_v5 = vunpack.c.h.bf16 %v1510_v53  ;;  %v1517_v54 = vld [vmem:[%s2308_s0 + $0xa0] sm:$0xff]  }
  0x1e   :  { %1569 = vst [vmem:[%s2311_s3 + $0x48] sm:$0xff] %v1226_v59   ;;  %v557_v6 = vmax.f32 %v429_v60, 0.0  ;;  %v430_v7 = vadd.f32 %v1659_v4, %v298_v62  ;;  %v980_v8 = vunpack.c.l.bf16 %v1511_v58  ;;  %v981_v9 = vunpack.c.h.bf16 %v1511_v58 }
  0x1f   :  { %1570 = vst [vmem:[%s2311_s3 + $0x50] sm:$0xff] %v1231_v0   ;;  %v431_v10 = vadd.f32 %v1659_v4, %v299_v2  ;;  %v300_v11 = vmul.f32 %v1654_v1, %v976_v3  ;;  %v301_v12 = vmul.f32 %v1654_v1, %v977_v5  ;;  %v984_v13 = vunpack.c.l.bf16 %v1512_v63  ;;  %v1518_v5 = vld [vmem:[%s2308_s0 + $0xa8] sm:$0xff]  }
  0x20   :  { %v1236_v15 = vpack.c.bf16 %v557_v6, %v556_v61  ;;  %v558_v16 = vmax.f32 %v430_v7, 0.0  ;;  %v302_v17 = vmul.f32 %v1654_v1, %v980_v8  ;;  %v303_v18 = vmul.f32 %v1654_v1, %v981_v9 }
  0x21   :  { %v559_v19 = vmax.f32 %v431_v10, 0.0  ;;  %v432_v20 = vadd.f32 %v1659_v4, %v300_v11  ;;  %v433_v21 = vadd.f32 %v1659_v4, %v301_v12  ;;  %v985_v22 = vunpack.c.h.bf16 %v1512_v63 }
  0x22   :  { %1571 = vst [vmem:[%s2311_s3 + $0x58] sm:$0xff] %v1236_v15   ;;  %v434_v23 = vadd.f32 %v1659_v4, %v302_v17  ;;  %v435_v24 = vadd.f32 %v1659_v4, %v303_v18  ;;  %v304_v25 = vmul.f32 %v1654_v1, %v984_v13  ;;  %v988_v26 = vunpack.c.l.bf16 %v1513_v14 }
  0x23   :  { %v1241_v28 = vpack.c.bf16 %v559_v19, %v558_v16  ;;  %v560_v29 = vmax.f32 %v432_v20, 0.0  ;;  %v561_v30 = vmax.f32 %v433_v21, 0.0  ;;  %v305_v31 = vmul.f32 %v1654_v1, %v985_v22 }
  0x24   :  { %v562_v32 = vmax.f32 %v434_v23, 0.0  ;;  %v563_v33 = vmax.f32 %v435_v24, 0.0  ;;  %v436_v34 = vadd.f32 %v1659_v4, %v304_v25  ;;  %v989_v35 = vunpack.c.h.bf16 %v1513_v14  ;;  %v1519_v14 = vld [vmem:[%s2308_s0 + $0xb0] sm:$0xff]   ;;  %v1520_v23 = vld [vmem:[%s2308_s0 + $0xb8] sm:$0xff]  }
  0x25   :  { %1572 = vst [vmem:[%s2311_s3 + $0x60] sm:$0xff] %v1241_v28   ;;  %v1246_v37 = vpack.c.bf16 %v561_v30, %v560_v29  ;;  %v437_v38 = vadd.f32 %v1659_v4, %v305_v31  ;;  %v306_v39 = vmul.f32 %v1654_v1, %v988_v26  ;;  %v992_v40 = vunpack.c.l.bf16 %v1514_v27 }
  0x26   :  { %v1251_v42 = vpack.c.bf16 %v563_v33, %v562_v32  ;;  %v564_v43 = vmax.f32 %v436_v34, 0.0  ;;  %v307_v44 = vmul.f32 %v1654_v1, %v989_v35  ;;  %v993_v45 = vunpack.c.h.bf16 %v1514_v27  ;;  %v1521_v32 = vld [vmem:[%s2308_s0 + $0xc0] sm:$0xff]  }
  0x27   :  { %1573 = vst [vmem:[%s2311_s3 + $0x68] sm:$0xff] %v1246_v37   ;;  %v565_v46 = vmax.f32 %v437_v38, 0.0  ;;  %v438_v47 = vadd.f32 %v1659_v4, %v306_v39  ;;  %v308_v48 = vmul.f32 %v1654_v1, %v992_v40  ;;  %v996_v49 = vunpack.c.l.bf16 %v1515_v36 }
  0x28   :  { %1574 = vst [vmem:[%s2311_s3 + $0x70] sm:$0xff] %v1251_v42   ;;  %v439_v50 = vadd.f32 %v1659_v4, %v307_v44  ;;  %v309_v51 = vmul.f32 %v1654_v1, %v993_v45  ;;  %v997_v52 = vunpack.c.h.bf16 %v1515_v36  ;;  %v1000_v53 = vunpack.c.l.bf16 %v1516_v41  ;;  %v1522_v45 = vld [vmem:[%s2308_s0 + $0xc8] sm:$0xff]  }
  0x29   :  { %v1256_v55 = vpack.c.bf16 %v565_v46, %v564_v43  ;;  %v566_v56 = vmax.f32 %v438_v47, 0.0  ;;  %v440_v57 = vadd.f32 %v1659_v4, %v308_v48  ;;  %v310_v58 = vmul.f32 %v1654_v1, %v996_v49 }
  0x2a   :  { %v567_v59 = vmax.f32 %v439_v50, 0.0  ;;  %v441_v60 = vadd.f32 %v1659_v4, %v309_v51  ;;  %v311_v61 = vmul.f32 %v1654_v1, %v997_v52  ;;  %v1001_v62 = vunpack.c.h.bf16 %v1516_v41 }
  0x2b   :  { %1575 = vst [vmem:[%s2311_s3 + $0x78] sm:$0xff] %v1256_v55   ;;  %v568_v63 = vmax.f32 %v440_v57, 0.0  ;;  %v442_v0 = vadd.f32 %v1659_v4, %v310_v58  ;;  %v312_v2 = vmul.f32 %v1654_v1, %v1000_v53  ;;  %v1004_v3 = vunpack.c.l.bf16 %v1517_v54 }
  0x2c   :  { %v1261_v6 = vpack.c.bf16 %v567_v59, %v566_v56  ;;  %v569_v7 = vmax.f32 %v441_v60, 0.0  ;;  %v443_v8 = vadd.f32 %v1659_v4, %v311_v61  ;;  %v313_v9 = vmul.f32 %v1654_v1, %v1001_v62 }
  0x2d   :  { %v570_v10 = vmax.f32 %v442_v0, 0.0  ;;  %v444_v11 = vadd.f32 %v1659_v4, %v312_v2  ;;  %v1005_v12 = vunpack.c.h.bf16 %v1517_v54  ;;  %v314_v13 = vmul.f32 %v1654_v1, %v1004_v3  ;;  %v1523_v54 = vld [vmem:[%s2308_s0 + $0xd0] sm:$0xff]  }
  0x2e   :  { %1576 = vst [vmem:[%s2311_s3 + $0x80] sm:$0xff] %v1261_v6   ;;  %v1266_v15 = vpack.c.bf16 %v569_v7, %v568_v63  ;;  %v571_v16 = vmax.f32 %v443_v8, 0.0  ;;  %v445_v17 = vadd.f32 %v1659_v4, %v313_v9  ;;  %v1008_v18 = vunpack.c.l.bf16 %v1518_v5  ;;  %v1524_v63 = vld [vmem:[%s2308_s0 + $0xd8] sm:$0xff]  }
  0x2f   :  { %v572_v19 = vmax.f32 %v444_v11, 0.0  ;;  %v315_v20 = vmul.f32 %v1654_v1, %v1005_v12  ;;  %v446_v21 = vadd.f32 %v1659_v4, %v314_v13  ;;  %v1009_v22 = vunpack.c.h.bf16 %v1518_v5 }
  0x30   :  { %1577 = vst [vmem:[%s2311_s3 + $0x88] sm:$0xff] %v1266_v15   ;;  %v1271_v24 = vpack.c.bf16 %v571_v16, %v570_v10  ;;  %v573_v25 = vmax.f32 %v445_v17, 0.0  ;;  %v316_v26 = vmul.f32 %v1654_v1, %v1008_v18  ;;  %v1012_v27 = vunpack.c.l.bf16 %v1519_v14  ;;  %v1525_v10 = vld [vmem:[%s2308_s0 + $0xe0] sm:$0xff]  }
  0x31   :  { %v447_v28 = vadd.f32 %v1659_v4, %v315_v20  ;;  %v574_v29 = vmax.f32 %v446_v21, 0.0  ;;  %v317_v30 = vmul.f32 %v1654_v1, %v1009_v22  ;;  %v1013_v31 = vunpack.c.h.bf16 %v1519_v14 }
  0x32   :  { %1578 = vst [vmem:[%s2311_s3 + $0x90] sm:$0xff] %v1271_v24   ;;  %v1276_v33 = vpack.c.bf16 %v573_v25, %v572_v19  ;;  %v448_v34 = vadd.f32 %v1659_v4, %v316_v26  ;;  %v318_v35 = vmul.f32 %v1654_v1, %v1012_v27  ;;  %v1016_v36 = vunpack.c.l.bf16 %v1520_v23 }
  0x33   :  { %v575_v37 = vmax.f32 %v447_v28, 0.0  ;;  %v449_v38 = vadd.f32 %v1659_v4, %v317_v30  ;;  %v319_v39 = vmul.f32 %v1654_v1, %v1013_v31  ;;  %v1017_v40 = vunpack.c.h.bf16 %v1520_v23  ;;  %v1526_v23 = vld [vmem:[%s2308_s0 + $0xe8] sm:$0xff]  }
  0x34   :  { %1579 = vst [vmem:[%s2311_s3 + $0x98] sm:$0xff] %v1276_v33   ;;  %v576_v41 = vmax.f32 %v448_v34, 0.0  ;;  %v450_v42 = vadd.f32 %v1659_v4, %v318_v35  ;;  %v320_v43 = vmul.f32 %v1654_v1, %v1016_v36  ;;  %v1020_v44 = vunpack.c.l.bf16 %v1521_v32 }
  0x35   :  { %v1281_v46 = vpack.c.bf16 %v575_v37, %v574_v29  ;;  %v577_v47 = vmax.f32 %v449_v38, 0.0  ;;  %v451_v48 = vadd.f32 %v1659_v4, %v319_v39  ;;  %v321_v49 = vmul.f32 %v1654_v1, %v1017_v40 }
  0x36   :  { %v578_v50 = vmax.f32 %v450_v42, 0.0  ;;  %v452_v51 = vadd.f32 %v1659_v4, %v320_v43  ;;  %v1021_v52 = vunpack.c.h.bf16 %v1521_v32  ;;  %v322_v53 = vmul.f32 %v1654_v1, %v1020_v44  ;;  %v1527_v32 = vld [vmem:[%s2308_s0 + $0xf0] sm:$0xff]  }
  0x37   :  { %1580 = vst [vmem:[%s2311_s3 + $0xa0] sm:$0xff] %v1281_v46   ;;  %v1286_v55 = vpack.c.bf16 %v577_v47, %v576_v41  ;;  %v579_v56 = vmax.f32 %v451_v48, 0.0  ;;  %v453_v57 = vadd.f32 %v1659_v4, %v321_v49  ;;  %v1024_v58 = vunpack.c.l.bf16 %v1522_v45  ;;  %v1528_v41 = vld [vmem:[%s2308_s0 + $0xf8] sm:$0xff]  }
  0x38   :  { %v580_v59 = vmax.f32 %v452_v51, 0.0  ;;  %v323_v60 = vmul.f32 %v1654_v1, %v1021_v52  ;;  %v454_v61 = vadd.f32 %v1659_v4, %v322_v53  ;;  %v1025_v62 = vunpack.c.h.bf16 %v1522_v45 }
  0x39   :  { %1581 = vst [vmem:[%s2311_s3 + $0xa8] sm:$0xff] %v1286_v55   ;;  %v1291_v0 = vpack.c.bf16 %v579_v56, %v578_v50  ;;  %v581_v2 = vmax.f32 %v453_v57, 0.0  ;;  %v324_v3 = vmul.f32 %v1654_v1, %v1024_v58  ;;  %v1028_v5 = vunpack.c.l.bf16 %v1523_v54  ;;  %v1529_v50 = vld [vmem:[%s2308_s0 + $0x100] sm:$0xff]  }
  0x3a   :  { %v455_v6 = vadd.f32 %v1659_v4, %v323_v60  ;;  %v582_v7 = vmax.f32 %v454_v61, 0.0  ;;  %v325_v8 = vmul.f32 %v1654_v1, %v1025_v62  ;;  %v1029_v9 = vunpack.c.h.bf16 %v1523_v54 }
  0x3b   :  { %1582 = vst [vmem:[%s2311_s3 + $0xb0] sm:$0xff] %v1291_v0   ;;  %v1296_v11 = vpack.c.bf16 %v581_v2, %v580_v59  ;;  %v456_v12 = vadd.f32 %v1659_v4, %v324_v3  ;;  %v326_v13 = vmul.f32 %v1654_v1, %v1028_v5  ;;  %v1032_v14 = vunpack.c.l.bf16 %v1524_v63 }
  0x3c   :  { %v583_v15 = vmax.f32 %v455_v6, 0.0  ;;  %v457_v16 = vadd.f32 %v1659_v4, %v325_v8  ;;  %v327_v17 = vmul.f32 %v1654_v1, %v1029_v9  ;;  %v1033_v18 = vunpack.c.h.bf16 %v1524_v63  ;;  %v1530_v63 = vld [vmem:[%s2308_s0 + $0x108] sm:$0xff]  }
  0x3d   :  { %1583 = vst [vmem:[%s2311_s3 + $0xb8] sm:$0xff] %v1296_v11   ;;  %v584_v19 = vmax.f32 %v456_v12, 0.0  ;;  %v458_v20 = vadd.f32 %v1659_v4, %v326_v13  ;;  %v328_v21 = vmul.f32 %v1654_v1, %v1032_v14  ;;  %v1036_v22 = vunpack.c.l.bf16 %v1525_v10 }
  0x3e   :  { %v1301_v24 = vpack.c.bf16 %v583_v15, %v582_v7  ;;  %v585_v25 = vmax.f32 %v457_v16, 0.0  ;;  %v459_v26 = vadd.f32 %v1659_v4, %v327_v17  ;;  %v329_v27 = vmul.f32 %v1654_v1, %v1033_v18 }
  0x3f   :  { %v586_v28 = vmax.f32 %v458_v20, 0.0  ;;  %v460_v29 = vadd.f32 %v1659_v4, %v328_v21  ;;  %v1037_v30 = vunpack.c.h.bf16 %v1525_v10  ;;  %v330_v31 = vmul.f32 %v1654_v1, %v1036_v22  ;;  %v1531_v10 = vld [vmem:[%s2308_s0 + $0x110] sm:$0xff]  }
  0x40   :  { %1584 = vst [vmem:[%s2311_s3 + $0xc0] sm:$0xff] %v1301_v24   ;;  %v1306_v33 = vpack.c.bf16 %v585_v25, %v584_v19  ;;  %v587_v34 = vmax.f32 %v459_v26, 0.0  ;;  %v461_v35 = vadd.f32 %v1659_v4, %v329_v27  ;;  %v1040_v36 = vunpack.c.l.bf16 %v1526_v23  ;;  %v1532_v19 = vld [vmem:[%s2308_s0 + $0x118] sm:$0xff]  }
  0x41   :  { %v588_v37 = vmax.f32 %v460_v29, 0.0  ;;  %v331_v38 = vmul.f32 %v1654_v1, %v1037_v30  ;;  %v462_v39 = vadd.f32 %v1659_v4, %v330_v31  ;;  %v1041_v40 = vunpack.c.h.bf16 %v1526_v23 }
  0x42   :  { %1585 = vst [vmem:[%s2311_s3 + $0xc8] sm:$0xff] %v1306_v33   ;;  %v1311_v42 = vpack.c.bf16 %v587_v34, %v586_v28  ;;  %v589_v43 = vmax.f32 %v461_v35, 0.0  ;;  %v332_v44 = vmul.f32 %v1654_v1, %v1040_v36  ;;  %v1044_v45 = vunpack.c.l.bf16 %v1527_v32  ;;  %v1533_v28 = vld [vmem:[%s2308_s0 + $0x120] sm:$0xff]  }
  0x43   :  { %v463_v46 = vadd.f32 %v1659_v4, %v331_v38  ;;  %v590_v47 = vmax.f32 %v462_v39, 0.0  ;;  %v333_v48 = vmul.f32 %v1654_v1, %v1041_v40  ;;  %v1045_v49 = vunpack.c.h.bf16 %v1527_v32 }
  0x44   :  { %1586 = vst [vmem:[%s2311_s3 + $0xd0] sm:$0xff] %v1311_v42   ;;  %v1316_v51 = vpack.c.bf16 %v589_v43, %v588_v37  ;;  %v464_v52 = vadd.f32 %v1659_v4, %v332_v44  ;;  %v334_v53 = vmul.f32 %v1654_v1, %v1044_v45  ;;  %v1048_v54 = vunpack.c.l.bf16 %v1528_v41 }
  0x45   :  { %v591_v55 = vmax.f32 %v463_v46, 0.0  ;;  %v465_v56 = vadd.f32 %v1659_v4, %v333_v48  ;;  %v335_v57 = vmul.f32 %v1654_v1, %v1045_v49  ;;  %v1049_v58 = vunpack.c.h.bf16 %v1528_v41  ;;  %v1534_v41 = vld [vmem:[%s2308_s0 + $0x128] sm:$0xff]  }
  0x46   :  { %1587 = vst [vmem:[%s2311_s3 + $0xd8] sm:$0xff] %v1316_v51   ;;  %v592_v59 = vmax.f32 %v464_v52, 0.0  ;;  %v466_v60 = vadd.f32 %v1659_v4, %v334_v53  ;;  %v336_v61 = vmul.f32 %v1654_v1, %v1048_v54  ;;  %v1052_v62 = vunpack.c.l.bf16 %v1529_v50 }
  0x47   :  { %v1321_v0 = vpack.c.bf16 %v591_v55, %v590_v47  ;;  %v593_v2 = vmax.f32 %v465_v56, 0.0  ;;  %v467_v3 = vadd.f32 %v1659_v4, %v335_v57  ;;  %v337_v5 = vmul.f32 %v1654_v1, %v1049_v58 }
  0x48   :  { %v594_v6 = vmax.f32 %v466_v60, 0.0  ;;  %v468_v7 = vadd.f32 %v1659_v4, %v336_v61  ;;  %v1053_v8 = vunpack.c.h.bf16 %v1529_v50  ;;  %v338_v9 = vmul.f32 %v1654_v1, %v1052_v62  ;;  %v1535_v50 = vld [vmem:[%s2308_s0 + $0x130] sm:$0xff]  }
  0x49   :  { %1588 = vst [vmem:[%s2311_s3 + $0xe0] sm:$0xff] %v1321_v0   ;;  %v1326_v11 = vpack.c.bf16 %v593_v2, %v592_v59  ;;  %v595_v12 = vmax.f32 %v467_v3, 0.0  ;;  %v469_v13 = vadd.f32 %v1659_v4, %v337_v5  ;;  %v1056_v14 = vunpack.c.l.bf16 %v1530_v63  ;;  %v1536_v59 = vld [vmem:[%s2308_s0 + $0x138] sm:$0xff]  }
  0x4a   :  { %v596_v15 = vmax.f32 %v468_v7, 0.0  ;;  %v339_v16 = vmul.f32 %v1654_v1, %v1053_v8  ;;  %v470_v17 = vadd.f32 %v1659_v4, %v338_v9  ;;  %v1057_v18 = vunpack.c.h.bf16 %v1530_v63 }
  0x4b   :  { %1589 = vst [vmem:[%s2311_s3 + $0xe8] sm:$0xff] %v1326_v11   ;;  %v1331_v20 = vpack.c.bf16 %v595_v12, %v594_v6  ;;  %v597_v21 = vmax.f32 %v469_v13, 0.0  ;;  %v340_v22 = vmul.f32 %v1654_v1, %v1056_v14  ;;  %v1060_v23 = vunpack.c.l.bf16 %v1531_v10  ;;  %v1537_v6 = vld [vmem:[%s2308_s0 + $0x140] sm:$0xff]  }
  0x4c   :  { %v471_v24 = vadd.f32 %v1659_v4, %v339_v16  ;;  %v598_v25 = vmax.f32 %v470_v17, 0.0  ;;  %v341_v26 = vmul.f32 %v1654_v1, %v1057_v18  ;;  %v1061_v27 = vunpack.c.h.bf16 %v1531_v10 }
  0x4d   :  { %1590 = vst [vmem:[%s2311_s3 + $0xf0] sm:$0xff] %v1331_v20   ;;  %v1336_v29 = vpack.c.bf16 %v597_v21, %v596_v15  ;;  %v472_v30 = vadd.f32 %v1659_v4, %v340_v22  ;;  %v342_v31 = vmul.f32 %v1654_v1, %v1060_v23  ;;  %v1064_v32 = vunpack.c.l.bf16 %v1532_v19 }
  0x4e   :  { %v599_v33 = vmax.f32 %v471_v24, 0.0  ;;  %v473_v34 = vadd.f32 %v1659_v4, %v341_v26  ;;  %v343_v35 = vmul.f32 %v1654_v1, %v1061_v27  ;;  %v1065_v36 = vunpack.c.h.bf16 %v1532_v19  ;;  %v1538_v19 = vld [vmem:[%s2308_s0 + $0x148] sm:$0xff]  }
  0x4f   :  { %1591 = vst [vmem:[%s2311_s3 + $0xf8] sm:$0xff] %v1336_v29   ;;  %v600_v37 = vmax.f32 %v472_v30, 0.0  ;;  %v474_v38 = vadd.f32 %v1659_v4, %v342_v31  ;;  %v344_v39 = vmul.f32 %v1654_v1, %v1064_v32  ;;  %v1068_v40 = vunpack.c.l.bf16 %v1533_v28 }
  0x50   :  { %v1341_v42 = vpack.c.bf16 %v599_v33, %v598_v25  ;;  %v601_v43 = vmax.f32 %v473_v34, 0.0  ;;  %v475_v44 = vadd.f32 %v1659_v4, %v343_v35  ;;  %v345_v45 = vmul.f32 %v1654_v1, %v1065_v36 }
  0x51   :  { %v602_v46 = vmax.f32 %v474_v38, 0.0  ;;  %v476_v47 = vadd.f32 %v1659_v4, %v344_v39  ;;  %v1069_v48 = vunpack.c.h.bf16 %v1533_v28  ;;  %v346_v49 = vmul.f32 %v1654_v1, %v1068_v40  ;;  %v1539_v28 = vld [vmem:[%s2308_s0 + $0x150] sm:$0xff]  }
  0x52   :  { %1592 = vst [vmem:[%s2311_s3 + $0x100] sm:$0xff] %v1341_v42   ;;  %v1346_v51 = vpack.c.bf16 %v601_v43, %v600_v37  ;;  %v603_v52 = vmax.f32 %v475_v44, 0.0  ;;  %v477_v53 = vadd.f32 %v1659_v4, %v345_v45  ;;  %v1072_v54 = vunpack.c.l.bf16 %v1534_v41  ;;  %v1540_v37 = vld [vmem:[%s2308_s0 + $0x158] sm:$0xff]  }
  0x53   :  { %v604_v55 = vmax.f32 %v476_v47, 0.0  ;;  %v347_v56 = vmul.f32 %v1654_v1, %v1069_v48  ;;  %v478_v57 = vadd.f32 %v1659_v4, %v346_v49  ;;  %v1073_v58 = vunpack.c.h.bf16 %v1534_v41 }
  0x54   :  { %1593 = vst [vmem:[%s2311_s3 + $0x108] sm:$0xff] %v1346_v51   ;;  %v1351_v60 = vpack.c.bf16 %v603_v52, %v602_v46  ;;  %v605_v61 = vmax.f32 %v477_v53, 0.0  ;;  %v348_v62 = vmul.f32 %v1654_v1, %v1072_v54  ;;  %v1076_v63 = vunpack.c.l.bf16 %v1535_v50  ;;  %v1541_v46 = vld [vmem:[%s2308_s0 + $0x160] sm:$0xff]  }
  0x55   :  { %v479_v0 = vadd.f32 %v1659_v4, %v347_v56  ;;  %v606_v2 = vmax.f32 %v478_v57, 0.0  ;;  %v349_v3 = vmul.f32 %v1654_v1, %v1073_v58  ;;  %v1077_v5 = vunpack.c.h.bf16 %v1535_v50 }
  0x56   :  { %1594 = vst [vmem:[%s2311_s3 + $0x110] sm:$0xff] %v1351_v60   ;;  %v1356_v7 = vpack.c.bf16 %v605_v61, %v604_v55  ;;  %v480_v8 = vadd.f32 %v1659_v4, %v348_v62  ;;  %v350_v9 = vmul.f32 %v1654_v1, %v1076_v63  ;;  %v1080_v10 = vunpack.c.l.bf16 %v1536_v59 }
  0x57   :  { %v607_v11 = vmax.f32 %v479_v0, 0.0  ;;  %v481_v12 = vadd.f32 %v1659_v4, %v349_v3  ;;  %v351_v13 = vmul.f32 %v1654_v1, %v1077_v5  ;;  %v1081_v14 = vunpack.c.h.bf16 %v1536_v59  ;;  %v1542_v59 = vld [vmem:[%s2308_s0 + $0x168] sm:$0xff]  }
  0x58   :  { %1595 = vst [vmem:[%s2311_s3 + $0x118] sm:$0xff] %v1356_v7   ;;  %v608_v15 = vmax.f32 %v480_v8, 0.0  ;;  %v482_v16 = vadd.f32 %v1659_v4, %v350_v9  ;;  %v352_v17 = vmul.f32 %v1654_v1, %v1080_v10  ;;  %v1084_v18 = vunpack.c.l.bf16 %v1537_v6 }
  0x59   :  { %v1361_v20 = vpack.c.bf16 %v607_v11, %v606_v2  ;;  %v609_v21 = vmax.f32 %v481_v12, 0.0  ;;  %v483_v22 = vadd.f32 %v1659_v4, %v351_v13  ;;  %v353_v23 = vmul.f32 %v1654_v1, %v1081_v14 }
  0x5a   :  { %v610_v24 = vmax.f32 %v482_v16, 0.0  ;;  %v484_v25 = vadd.f32 %v1659_v4, %v352_v17  ;;  %v1085_v26 = vunpack.c.h.bf16 %v1537_v6  ;;  %v354_v27 = vmul.f32 %v1654_v1, %v1084_v18  ;;  %v1543_v6 = vld [vmem:[%s2308_s0 + $0x170] sm:$0xff]  }
  0x5b   :  { %1596 = vst [vmem:[%s2311_s3 + $0x120] sm:$0xff] %v1361_v20   ;;  %v1366_v29 = vpack.c.bf16 %v609_v21, %v608_v15  ;;  %v611_v30 = vmax.f32 %v483_v22, 0.0  ;;  %v485_v31 = vadd.f32 %v1659_v4, %v353_v23  ;;  %v1088_v32 = vunpack.c.l.bf16 %v1538_v19  ;;  %v1544_v15 = vld [vmem:[%s2308_s0 + $0x178] sm:$0xff]  }
  0x5c   :  { %v612_v33 = vmax.f32 %v484_v25, 0.0  ;;  %v355_v34 = vmul.f32 %v1654_v1, %v1085_v26  ;;  %v486_v35 = vadd.f32 %v1659_v4, %v354_v27  ;;  %v1089_v36 = vunpack.c.h.bf16 %v1538_v19 }
  0x5d   :  { %1597 = vst [vmem:[%s2311_s3 + $0x128] sm:$0xff] %v1366_v29   ;;  %v1371_v38 = vpack.c.bf16 %v611_v30, %v610_v24  ;;  %v613_v39 = vmax.f32 %v485_v31, 0.0  ;;  %v356_v40 = vmul.f32 %v1654_v1, %v1088_v32  ;;  %v1092_v41 = vunpack.c.l.bf16 %v1539_v28  ;;  %v1545_v24 = vld [vmem:[%s2308_s0 + $0x180] sm:$0xff]  }
  0x5e   :  { %v487_v42 = vadd.f32 %v1659_v4, %v355_v34  ;;  %v614_v43 = vmax.f32 %v486_v35, 0.0  ;;  %v357_v44 = vmul.f32 %v1654_v1, %v1089_v36  ;;  %v1093_v45 = vunpack.c.h.bf16 %v1539_v28  ;;  %v2127_v35 = vld [vmem:[%s2309_s1] ss:$0 sm:$0xff] }
  0x5f   :  { %1598 = vst [vmem:[%s2311_s3 + $0x130] sm:$0xff] %v1371_v38   ;;  %v1376_v47 = vpack.c.bf16 %v613_v39, %v612_v33  ;;  %v488_v48 = vadd.f32 %v1659_v4, %v356_v40  ;;  %v358_v49 = vmul.f32 %v1654_v1, %v1092_v41  ;;  %v1096_v50 = vunpack.c.l.bf16 %v1540_v37  ;;  %v2136_v40 = vld [vmem:[%s2310_s2] ss:$0 sm:$0xff] }
  0x60   :  { %v615_v51 = vmax.f32 %v487_v42, 0.0  ;;  %v489_v52 = vadd.f32 %v1659_v4, %v357_v44  ;;  %v359_v53 = vmul.f32 %v1654_v1, %v1093_v45  ;;  %v1097_v54 = vunpack.c.h.bf16 %v1540_v37 }
  0x61   :  { %1599 = vst [vmem:[%s2311_s3 + $0x138] sm:$0xff] %v1376_v47   ;;  %v616_v55 = vmax.f32 %v488_v48, 0.0  ;;  %v490_v56 = vadd.f32 %v1659_v4, %v358_v49  ;;  %v360_v57 = vmul.f32 %v1654_v1, %v1096_v50  ;;  %v1100_v58 = vunpack.c.l.bf16 %v1541_v46 }
  0x62   :  { %v1381_v60 = vpack.c.bf16 %v615_v51, %v614_v43  ;;  %v617_v61 = vmax.f32 %v489_v52, 0.0  ;;  %v491_v62 = vadd.f32 %v1659_v4, %v359_v53  ;;  %v361_v63 = vmul.f32 %v1654_v1, %v1097_v54 }
  0x63   :  { %v618_v0 = vmax.f32 %v490_v56, 0.0  ;;  %v492_v2 = vadd.f32 %v1659_v4, %v360_v57  ;;  %v1101_v3 = vunpack.c.h.bf16 %v1541_v46  ;;  %v362_v5 = vmul.f32 %v1654_v1, %v1100_v58  ;;  %v1547_v46 = vld [vmem:[%s2308_s0 + $0x190] sm:$0xff]  }
  0x64   :  { %1600 = vst [vmem:[%s2311_s3 + $0x140] sm:$0xff] %v1381_v60   ;;  %v1386_v7 = vpack.c.bf16 %v617_v61, %v616_v55  ;;  %v619_v8 = vmax.f32 %v491_v62, 0.0  ;;  %v493_v9 = vadd.f32 %v1659_v4, %v361_v63  ;;  %v1104_v10 = vunpack.c.l.bf16 %v1542_v59  ;;  %v1548_v55 = vld [vmem:[%s2308_s0 + $0x198] sm:$0xff]  }
  0x65   :  { %v620_v11 = vmax.f32 %v492_v2, 0.0  ;;  %v363_v12 = vmul.f32 %v1654_v1, %v1101_v3  ;;  %v494_v13 = vadd.f32 %v1659_v4, %v362_v5  ;;  %v1105_v14 = vunpack.c.h.bf16 %v1542_v59 }
  0x66   :  { %1601 = vst [vmem:[%s2311_s3 + $0x148] sm:$0xff] %v1386_v7   ;;  %v1391_v16 = vpack.c.bf16 %v619_v8, %v618_v0  ;;  %v621_v17 = vmax.f32 %v493_v9, 0.0  ;;  %v364_v18 = vmul.f32 %v1654_v1, %v1104_v10  ;;  %v1108_v19 = vunpack.c.l.bf16 %v1543_v6  ;;  %v1549_v0 = vld [vmem:[%s2308_s0 + $0x1a0] sm:$0xff]  }
  0x67   :  { %v495_v20 = vadd.f32 %v1659_v4, %v363_v12  ;;  %v622_v21 = vmax.f32 %v494_v13, 0.0  ;;  %v365_v22 = vmul.f32 %v1654_v1, %v1105_v14  ;;  %v1109_v23 = vunpack.c.h.bf16 %v1543_v6 }
  0x68   :  { %1602 = vst [vmem:[%s2311_s3 + $0x150] sm:$0xff] %v1391_v16   ;;  %v1396_v25 = vpack.c.bf16 %v621_v17, %v620_v11  ;;  %v496_v26 = vadd.f32 %v1659_v4, %v364_v18  ;;  %v366_v27 = vmul.f32 %v1654_v1, %v1108_v19  ;;  %v1112_v28 = vunpack.c.l.bf16 %v1544_v15 }
  0x69   :  { %v623_v29 = vmax.f32 %v495_v20, 0.0  ;;  %v497_v30 = vadd.f32 %v1659_v4, %v365_v22  ;;  %v367_v31 = vmul.f32 %v1654_v1, %v1109_v23  ;;  %v1113_v32 = vunpack.c.h.bf16 %v1544_v15  ;;  %v1546_v1 = vld [vmem:[%s2308_s0 + $0x188] sm:$0xff]  }
  0x6a   :  { %1603 = vst [vmem:[%s2311_s3 + $0x158] sm:$0xff] %v1396_v25   ;;  %v624_v33 = vmax.f32 %v496_v26, 0.0  ;;  %v498_v34 = vadd.f32 %v1659_v4, %v366_v27  ;;  %v368_v36 = vmul.f32 %v2127_v35, %v1112_v28  ;;  %v1116_v37 = vunpack.c.l.bf16 %v1545_v24  ;;  %v1550_v15 = vld [vmem:[%s2308_s0 + $0x1a8] sm:$0xff]  }
  0x6b   :  { %v1401_v38 = vpack.c.bf16 %v623_v29, %v622_v21  ;;  %v625_v39 = vmax.f32 %v497_v30, 0.0  ;;  %v499_v4 = vadd.f32 %v2136_v40, %v367_v31  ;;  %v369_v41 = vmul.f32 %v2127_v35, %v1113_v32 }
  0x6c   :  { %v626_v42 = vmax.f32 %v498_v34, 0.0  ;;  %v500_v43 = vadd.f32 %v2136_v40, %v368_v36  ;;  %v1117_v44 = vunpack.c.h.bf16 %v1545_v24  ;;  %v370_v45 = vmul.f32 %v2127_v35, %v1116_v37  ;;  %v1551_v24 = vld [vmem:[%s2308_s0 + $0x1b0] sm:$0xff]  }
  0x6d   :  { %1604 = vst [vmem:[%s2311_s3 + $0x160] sm:$0xff] %v1401_v38   ;;  %v1406_v47 = vpack.c.bf16 %v625_v39, %v624_v33  ;;  %v627_v48 = vmax.f32 %v499_v4, 0.0  ;;  %v501_v49 = vadd.f32 %v2136_v40, %v369_v41  ;;  %v1120_v50 = vunpack.c.l.bf16 %v1546_v1  ;;  %v1552_v33 = vld [vmem:[%s2308_s0 + $0x1b8] sm:$0xff]  }
  0x6e   :  { %v628_v51 = vmax.f32 %v500_v43, 0.0  ;;  %v371_v52 = vmul.f32 %v2127_v35, %v1117_v44  ;;  %v502_v53 = vadd.f32 %v2136_v40, %v370_v45  ;;  %v1121_v54 = vunpack.c.h.bf16 %v1546_v1 }
  0x6f   :  { %1605 = vst [vmem:[%s2311_s3 + $0x168] sm:$0xff] %v1406_v47   ;;  %v1411_v56 = vpack.c.bf16 %v627_v48, %v626_v42  ;;  %v629_v57 = vmax.f32 %v501_v49, 0.0  ;;  %v372_v58 = vmul.f32 %v2127_v35, %v1120_v50  ;;  %v1124_v59 = vunpack.c.l.bf16 %v1547_v46  ;;  %v1553_v42 = vld [vmem:[%s2308_s0 + $0x1c0] sm:$0xff]  }
  0x70   :  { %v503_v60 = vadd.f32 %v2136_v40, %v371_v52  ;;  %v630_v61 = vmax.f32 %v502_v53, 0.0  ;;  %v373_v62 = vmul.f32 %v2127_v35, %v1121_v54  ;;  %v1125_v63 = vunpack.c.h.bf16 %v1547_v46 }
  0x71   :  { %1606 = vst [vmem:[%s2311_s3 + $0x170] sm:$0xff] %v1411_v56   ;;  %v1416_v2 = vpack.c.bf16 %v629_v57, %v628_v51  ;;  %v504_v3 = vadd.f32 %v2136_v40, %v372_v58  ;;  %v374_v5 = vmul.f32 %v2127_v35, %v1124_v59  ;;  %v1128_v6 = vunpack.c.l.bf16 %v1548_v55 }
  0x72   :  { %v631_v7 = vmax.f32 %v503_v60, 0.0  ;;  %v505_v8 = vadd.f32 %v2136_v40, %v373_v62  ;;  %v375_v9 = vmul.f32 %v2127_v35, %v1125_v63  ;;  %v1129_v10 = vunpack.c.h.bf16 %v1548_v55  ;;  %v1554_v55 = vld [vmem:[%s2308_s0 + $0x1c8] sm:$0xff]  }
  0x73   :  { %1607 = vst [vmem:[%s2311_s3 + $0x178] sm:$0xff] %v1416_v2   ;;  %v632_v11 = vmax.f32 %v504_v3, 0.0  ;;  %v506_v12 = vadd.f32 %v2136_v40, %v374_v5  ;;  %v376_v13 = vmul.f32 %v2127_v35, %v1128_v6  ;;  %v1132_v14 = vunpack.c.l.bf16 %v1549_v0 }
  0x74   :  { %v1421_v16 = vpack.c.bf16 %v631_v7, %v630_v61  ;;  %v633_v17 = vmax.f32 %v505_v8, 0.0  ;;  %v507_v18 = vadd.f32 %v2136_v40, %v375_v9  ;;  %v377_v19 = vmul.f32 %v2127_v35, %v1129_v10 }
  0x75   :  { %v634_v20 = vmax.f32 %v506_v12, 0.0  ;;  %v508_v21 = vadd.f32 %v2136_v40, %v376_v13  ;;  %v1133_v22 = vunpack.c.h.bf16 %v1549_v0  ;;  %v378_v23 = vmul.f32 %v2127_v35, %v1132_v14  ;;  %v1555_v0 = vld [vmem:[%s2308_s0 + $0x1d0] sm:$0xff]  }
  0x76   :  { %1608 = vst [vmem:[%s2311_s3 + $0x180] sm:$0xff] %v1421_v16   ;;  %v1426_v25 = vpack.c.bf16 %v633_v17, %v632_v11  ;;  %v635_v26 = vmax.f32 %v507_v18, 0.0  ;;  %v509_v27 = vadd.f32 %v2136_v40, %v377_v19  ;;  %v1136_v28 = vunpack.c.l.bf16 %v1550_v15  ;;  %v1556_v11 = vld [vmem:[%s2308_s0 + $0x1d8] sm:$0xff]  }
  0x77   :  { %v636_v29 = vmax.f32 %v508_v21, 0.0  ;;  %v379_v30 = vmul.f32 %v2127_v35, %v1133_v22  ;;  %v510_v31 = vadd.f32 %v2136_v40, %v378_v23  ;;  %v1137_v32 = vunpack.c.h.bf16 %v1550_v15 }
  0x78   :  { %1609 = vst [vmem:[%s2311_s3 + $0x188] sm:$0xff] %v1426_v25   ;;  %v1431_v34 = vpack.c.bf16 %v635_v26, %v634_v20  ;;  %v637_v36 = vmax.f32 %v509_v27, 0.0  ;;  %v380_v37 = vmul.f32 %v2127_v35, %v1136_v28  ;;  %v1140_v1 = vunpack.c.l.bf16 %v1551_v24  ;;  %v1557_v20 = vld [vmem:[%s2308_s0 + $0x1e0] sm:$0xff]  }
  0x79   :  { %v511_v38 = vadd.f32 %v2136_v40, %v379_v30  ;;  %v638_v39 = vmax.f32 %v510_v31, 0.0  ;;  %v381_v4 = vmul.f32 %v2127_v35, %v1137_v32  ;;  %v1141_v41 = vunpack.c.h.bf16 %v1551_v24 }
  0x7a   :  { %1610 = vst [vmem:[%s2311_s3 + $0x190] sm:$0xff] %v1431_v34   ;;  %v1436_v43 = vpack.c.bf16 %v637_v36, %v636_v29  ;;  %v512_v44 = vadd.f32 %v2136_v40, %v380_v37  ;;  %v382_v45 = vmul.f32 %v2127_v35, %v1140_v1  ;;  %v1144_v46 = vunpack.c.l.bf16 %v1552_v33 }
  0x7b   :  { %v639_v47 = vmax.f32 %v511_v38, 0.0  ;;  %v513_v48 = vadd.f32 %v2136_v40, %v381_v4  ;;  %v383_v49 = vmul.f32 %v2127_v35, %v1141_v41  ;;  %v1145_v50 = vunpack.c.h.bf16 %v1552_v33  ;;  %v1558_v33 = vld [vmem:[%s2308_s0 + $0x1e8] sm:$0xff]  }
  0x7c   :  { %1611 = vst [vmem:[%s2311_s3 + $0x198] sm:$0xff] %v1436_v43   ;;  %v640_v51 = vmax.f32 %v512_v44, 0.0  ;;  %v514_v52 = vadd.f32 %v2136_v40, %v382_v45  ;;  %v384_v53 = vmul.f32 %v2127_v35, %v1144_v46  ;;  %v1148_v54 = vunpack.c.l.bf16 %v1553_v42 }
  0x7d   :  { %v1441_v56 = vpack.c.bf16 %v639_v47, %v638_v39  ;;  %v641_v57 = vmax.f32 %v513_v48, 0.0  ;;  %v515_v58 = vadd.f32 %v2136_v40, %v383_v49  ;;  %v385_v59 = vmul.f32 %v2127_v35, %v1145_v50 }
  0x7e   :  { %v642_v60 = vmax.f32 %v514_v52, 0.0  ;;  %v516_v61 = vadd.f32 %v2136_v40, %v384_v53  ;;  %v1149_v62 = vunpack.c.h.bf16 %v1553_v42  ;;  %v386_v63 = vmul.f32 %v2127_v35, %v1148_v54  ;;  %v1559_v42 = vld [vmem:[%s2308_s0 + $0x1f0] sm:$0xff]  }
  0x7f   :  { %1612 = vst [vmem:[%s2311_s3 + $0x1a0] sm:$0xff] %v1441_v56   ;;  %v1446_v2 = vpack.c.bf16 %v641_v57, %v640_v51  ;;  %v643_v3 = vmax.f32 %v515_v58, 0.0  ;;  %v517_v5 = vadd.f32 %v2136_v40, %v385_v59  ;;  %v1152_v6 = vunpack.c.l.bf16 %v1554_v55  ;;  %v1560_v51 = vld [vmem:[%s2308_s0 + $0x1f8] sm:$0xff]  }
  0x80   :  { %v644_v7 = vmax.f32 %v516_v61, 0.0  ;;  %v387_v8 = vmul.f32 %v2127_v35, %v1149_v62  ;;  %v518_v9 = vadd.f32 %v2136_v40, %v386_v63  ;;  %v1153_v10 = vunpack.c.h.bf16 %v1554_v55 }
  0x81   :  { %1613 = vst [vmem:[%s2311_s3 + $0x1a8] sm:$0xff] %v1446_v2   ;;  %v1451_v12 = vpack.c.bf16 %v643_v3, %v642_v60  ;;  %v645_v13 = vmax.f32 %v517_v5, 0.0  ;;  %v388_v14 = vmul.f32 %v2127_v35, %v1152_v6  ;;  %v1156_v15 = vunpack.c.l.bf16 %v1555_v0 }
  0x82   :  { %v519_v16 = vadd.f32 %v2136_v40, %v387_v8  ;;  %v646_v17 = vmax.f32 %v518_v9, 0.0  ;;  %v389_v18 = vmul.f32 %v2127_v35, %v1153_v10  ;;  %v1157_v19 = vunpack.c.h.bf16 %v1555_v0 }
  0x83   :  { %1614 = vst [vmem:[%s2311_s3 + $0x1b0] sm:$0xff] %v1451_v12   ;;  %v1456_v21 = vpack.c.bf16 %v645_v13, %v644_v7  ;;  %v520_v22 = vadd.f32 %v2136_v40, %v388_v14  ;;  %v390_v23 = vmul.f32 %v2127_v35, %v1156_v15  ;;  %v1160_v24 = vunpack.c.l.bf16 %v1556_v11 }
  0x84   :  { %v647_v25 = vmax.f32 %v519_v16, 0.0  ;;  %v521_v26 = vadd.f32 %v2136_v40, %v389_v18  ;;  %v391_v27 = vmul.f32 %v2127_v35, %v1157_v19  ;;  %v1161_v28 = vunpack.c.h.bf16 %v1556_v11 }
  0x85   :  { %1615 = vst [vmem:[%s2311_s3 + $0x1b8] sm:$0xff] %v1456_v21   ;;  %v648_v29 = vmax.f32 %v520_v22, 0.0  ;;  %v522_v30 = vadd.f32 %v2136_v40, %v390_v23  ;;  %v392_v31 = vmul.f32 %v2127_v35, %v1160_v24  ;;  %v1164_v32 = vunpack.c.l.bf16 %v1557_v20 }
  0x86   :  { %v1461_v34 = vpack.c.bf16 %v647_v25, %v646_v17  ;;  %v649_v36 = vmax.f32 %v521_v26, 0.0  ;;  %v523_v37 = vadd.f32 %v2136_v40, %v391_v27  ;;  %v393_v1 = vmul.f32 %v2127_v35, %v1161_v28 }
  0x87   :  { %v650_v38 = vmax.f32 %v522_v30, 0.0  ;;  %v524_v39 = vadd.f32 %v2136_v40, %v392_v31  ;;  %v1165_v4 = vunpack.c.h.bf16 %v1557_v20  ;;  %v394_v41 = vmul.f32 %v2127_v35, %v1164_v32 }
  0x88   :  { %1616 = vst [vmem:[%s2311_s3 + $0x1c0] sm:$0xff] %v1461_v34   ;;  %v1466_v43 = vpack.c.bf16 %v649_v36, %v648_v29  ;;  %v651_v44 = vmax.f32 %v523_v37, 0.0  ;;  %v525_v45 = vadd.f32 %v2136_v40, %v393_v1  ;;  %v1168_v46 = vunpack.c.l.bf16 %v1558_v33 }
  0x89   :  { %v652_v47 = vmax.f32 %v524_v39, 0.0  ;;  %v395_v48 = vmul.f32 %v2127_v35, %v1165_v4  ;;  %v526_v49 = vadd.f32 %v2136_v40, %v394_v41  ;;  %v1169_v50 = vunpack.c.h.bf16 %v1558_v33 }
  0x8a   :  { %1617 = vst [vmem:[%s2311_s3 + $0x1c8] sm:$0xff] %v1466_v43   ;;  %v1471_v52 = vpack.c.bf16 %v651_v44, %v650_v38  ;;  %v653_v53 = vmax.f32 %v525_v45, 0.0  ;;  %v396_v54 = vmul.f32 %v2127_v35, %v1168_v46  ;;  %v1172_v55 = vunpack.c.l.bf16 %v1559_v42 }
  0x8b   :  { %v527_v56 = vadd.f32 %v2136_v40, %v395_v48  ;;  %v654_v57 = vmax.f32 %v526_v49, 0.0  ;;  %v397_v58 = vmul.f32 %v2127_v35, %v1169_v50  ;;  %v1173_v59 = vunpack.c.h.bf16 %v1559_v42 }
  0x8c   :  { %1618 = vst [vmem:[%s2311_s3 + $0x1d0] sm:$0xff] %v1471_v52   ;;  %v1476_v60 = vpack.c.bf16 %v653_v53, %v652_v47  ;;  %v528_v61 = vadd.f32 %v2136_v40, %v396_v54  ;;  %v398_v62 = vmul.f32 %v2127_v35, %v1172_v55  ;;  %v1176_v63 = vunpack.c.l.bf16 %v1560_v51 }
  0x8d   :  { %v655_v0 = vmax.f32 %v527_v56, 0.0  ;;  %v529_v2 = vadd.f32 %v2136_v40, %v397_v58  ;;  %v399_v3 = vmul.f32 %v2127_v35, %v1173_v59  ;;  %v1177_v5 = vunpack.c.h.bf16 %v1560_v51 }
  0x8e   :  { %1619 = vst [vmem:[%s2311_s3 + $0x1d8] sm:$0xff] %v1476_v60   ;;  %v656_v6 = vmax.f32 %v528_v61, 0.0  ;;  %v530_v7 = vadd.f32 %v2136_v40, %v398_v62  ;;  %v400_v8 = vmul.f32 %v2127_v35, %v1176_v63 }
  0x8f   :  { %v1481_v9 = vpack.c.bf16 %v655_v0, %v654_v57  ;;  %v657_v10 = vmax.f32 %v529_v2, 0.0  ;;  %v531_v11 = vadd.f32 %v2136_v40, %v399_v3  ;;  %v401_v12 = vmul.f32 %v2127_v35, %v1177_v5 }
  0x90   :  { %v658_v13 = vmax.f32 %v530_v7, 0.0  ;;  %v532_v14 = vadd.f32 %v2136_v40, %v400_v8 }
  0x91   :  { %1620 = vst [vmem:[%s2311_s3 + $0x1e0] sm:$0xff] %v1481_v9   ;;  %v1486_v15 = vpack.c.bf16 %v657_v10, %v656_v6  ;;  %v659_v16 = vmax.f32 %v531_v11, 0.0  ;;  %v533_v17 = vadd.f32 %v2136_v40, %v401_v12 }
  0x92   :  { %v660_v18 = vmax.f32 %v532_v14, 0.0 }
  0x93   :  { %1621 = vst [vmem:[%s2311_s3 + $0x1e8] sm:$0xff] %v1486_v15   ;;  %v1491_v19 = vpack.c.bf16 %v659_v16, %v658_v13  ;;  %v661_v20 = vmax.f32 %v533_v17, 0.0 }
  0x95   :  { %1622 = vst [vmem:[%s2311_s3 + $0x1f0] sm:$0xff] %v1491_v19   ;;  %v1496_v35 = vpack.c.bf16 %v661_v20, %v660_v18 }
  0x97   :  { %1623 = vst [vmem:[%s2311_s3 + $0x1f8] sm:$0xff] %v1496_v35  }

// kernel: double_conv.7
= control target key start
LH: loop header
LB: loop body
LE: loop exit
PB: predicated region body
PF: predicated region fallthrough
CT: control target
= control target key end

     0   :  { %s1989_s0 = inlined_call_operand.vmem [shape: bf16[16,64,128], index: 0, kind: input, shape index: {}]   ;;  %s1990_s1 = inlined_call_operand.vmem [shape: f32[1,1,128], index: 1, kind: input, shape index: {}]   ;;  %s1991_s2 = inlined_call_operand.vmem [shape: f32[1,1,128], index: 2, kind: input, shape index: {}]   ;;  %s1992_s3 = inlined_call_operand.vmem [shape: f32[16,64,128], index: 3, kind: output, shape index: {}]  }
   0x1   :  { %v795_v0 = vld [vmem:[%s1989_s0] sm:$0xff]   ;;  %v1050_v5 = vld [vmem:[%s1989_s0 + $0x8] sm:$0xff]   ;;  %v1051_v8 = vld [vmem:[%s1989_s0 + $0x10] sm:$0xff]  }
   0x2   :  { %v1143_v1 = vld [vmem:[%s1990_s1] ss:$0 sm:$0xff]  ;;  %v796_v2 = vunpack.c.l.bf16 %v795_v0  ;;  %v797_v4 = vunpack.c.h.bf16 %v795_v0  ;;  %v800_v6 = vunpack.c.l.bf16 %v1050_v5  ;;  %v801_v7 = vunpack.c.h.bf16 %v1050_v5  ;;  %v1052_v9 = vld [vmem:[%s1989_s0 + $0x18] sm:$0xff]   ;;  %v1054_v31 = vld [vmem:[%s1989_s0 + $0x28] sm:$0xff]  }
   0x3   :  { %v1148_v3 = vld [vmem:[%s1991_s2] ss:$0 sm:$0xff]  ;;  %v804_v12 = vunpack.c.l.bf16 %v1051_v8  ;;  %v805_v13 = vunpack.c.h.bf16 %v1051_v8  ;;  %v808_v16 = vunpack.c.l.bf16 %v1052_v9  ;;  %v809_v17 = vunpack.c.h.bf16 %v1052_v9  ;;  %v1055_v36 = vld [vmem:[%s1989_s0 + $0x30] sm:$0xff]   ;;  %v1056_v41 = vld [vmem:[%s1989_s0 + $0x38] sm:$0xff]  }
   0x4   :  { %v274_v10 = vmul.f32 %v1143_v1, %v796_v2  ;;  %v275_v11 = vmul.f32 %v1143_v1, %v797_v4  ;;  %v276_v14 = vmul.f32 %v1143_v1, %v800_v6  ;;  %v277_v15 = vmul.f32 %v1143_v1, %v801_v7  ;;  %v1053_v26 = vld [vmem:[%s1989_s0 + $0x20] sm:$0xff]   ;;  %v1058_v5 = vld [vmem:[%s1989_s0 + $0x48] sm:$0xff]  }
   0x5   :  { %v278_v20 = vmul.f32 %v1143_v1, %v804_v12  ;;  %v279_v21 = vmul.f32 %v1143_v1, %v805_v13  ;;  %v280_v24 = vmul.f32 %v1143_v1, %v808_v16  ;;  %v281_v25 = vmul.f32 %v1143_v1, %v809_v17  ;;  %v1057_v62 = vld [vmem:[%s1989_s0 + $0x40] sm:$0xff]  }
   0x6   :  { %v406_v18 = vadd.f32 %v1148_v3, %v274_v10  ;;  %v407_v19 = vadd.f32 %v1148_v3, %v275_v11  ;;  %v408_v22 = vadd.f32 %v1148_v3, %v276_v14  ;;  %v409_v23 = vadd.f32 %v1148_v3, %v277_v15  ;;  %v1059_v10 = vld [vmem:[%s1989_s0 + $0x50] sm:$0xff]   ;;  %v1060_v15 = vld [vmem:[%s1989_s0 + $0x58] sm:$0xff]  }
   0x7   :  { %v410_v29 = vadd.f32 %v1148_v3, %v278_v20  ;;  %v411_v30 = vadd.f32 %v1148_v3, %v279_v21  ;;  %v412_v34 = vadd.f32 %v1148_v3, %v280_v24  ;;  %v413_v35 = vadd.f32 %v1148_v3, %v281_v25 }
   0x8   :  { %v534_v27 = vmax.f32 %v406_v18, 0.0  ;;  %v535_v28 = vmax.f32 %v407_v19, 0.0  ;;  %v536_v32 = vmax.f32 %v408_v22, 0.0  ;;  %v537_v33 = vmax.f32 %v409_v23, 0.0 }
   0x9   :  { %v538_v37 = vmax.f32 %v410_v29, 0.0  ;;  %v539_v38 = vmax.f32 %v411_v30, 0.0  ;;  %v812_v39 = vunpack.c.l.bf16 %v1053_v26  ;;  %v813_v40 = vunpack.c.h.bf16 %v1053_v26 }
   0xa   :  { %662 = vst [vmem:[%s1992_s3] sm:$0xff] %v534_v27  ;;  %v540_v42 = vmax.f32 %v412_v34, 0.0  ;;  %v541_v43 = vmax.f32 %v413_v35, 0.0  ;;  %v816_v44 = vunpack.c.l.bf16 %v1054_v31  ;;  %v817_v45 = vunpack.c.h.bf16 %v1054_v31 }
   0xb   :  { %663 = vst [vmem:[%s1992_s3 + $0x8] sm:$0xff] %v535_v28  ;;  %v282_v46 = vmul.f32 %v1143_v1, %v812_v39  ;;  %v283_v47 = vmul.f32 %v1143_v1, %v813_v40  ;;  %v820_v48 = vunpack.c.l.bf16 %v1055_v36  ;;  %v821_v49 = vunpack.c.h.bf16 %v1055_v36  ;;  %v1061_v36 = vld [vmem:[%s1989_s0 + $0x60] sm:$0xff]  }
   0xc   :  { %664 = vst [vmem:[%s1992_s3 + $0x10] sm:$0xff] %v536_v32  ;;  %v284_v50 = vmul.f32 %v1143_v1, %v816_v44  ;;  %v285_v51 = vmul.f32 %v1143_v1, %v817_v45  ;;  %v824_v52 = vunpack.c.l.bf16 %v1056_v41  ;;  %v825_v53 = vunpack.c.h.bf16 %v1056_v41  ;;  %v1062_v41 = vld [vmem:[%s1989_s0 + $0x68] sm:$0xff]  }
   0xd   :  { %665 = vst [vmem:[%s1992_s3 + $0x18] sm:$0xff] %v537_v33  ;;  %v414_v54 = vadd.f32 %v1148_v3, %v282_v46  ;;  %v415_v55 = vadd.f32 %v1148_v3, %v283_v47  ;;  %v286_v56 = vmul.f32 %v1143_v1, %v820_v48  ;;  %v287_v57 = vmul.f32 %v1143_v1, %v821_v49  ;;  %v1063_v46 = vld [vmem:[%s1989_s0 + $0x70] sm:$0xff]  }
   0xe   :  { %666 = vst [vmem:[%s1992_s3 + $0x20] sm:$0xff] %v538_v37  ;;  %v416_v58 = vadd.f32 %v1148_v3, %v284_v50  ;;  %v417_v59 = vadd.f32 %v1148_v3, %v285_v51  ;;  %v288_v60 = vmul.f32 %v1143_v1, %v824_v52  ;;  %v289_v61 = vmul.f32 %v1143_v1, %v825_v53  ;;  %v1064_v51 = vld [vmem:[%s1989_s0 + $0x78] sm:$0xff]  }
   0xf   :  { %667 = vst [vmem:[%s1992_s3 + $0x28] sm:$0xff] %v539_v38  ;;  %v542_v63 = vmax.f32 %v414_v54, 0.0  ;;  %v543_v0 = vmax.f32 %v415_v55, 0.0  ;;  %v418_v2 = vadd.f32 %v1148_v3, %v286_v56  ;;  %v419_v4 = vadd.f32 %v1148_v3, %v287_v57 }
  0x10   :  { %668 = vst [vmem:[%s1992_s3 + $0x30] sm:$0xff] %v540_v42  ;;  %v544_v6 = vmax.f32 %v416_v58, 0.0  ;;  %v545_v7 = vmax.f32 %v417_v59, 0.0  ;;  %v420_v8 = vadd.f32 %v1148_v3, %v288_v60  ;;  %v421_v9 = vadd.f32 %v1148_v3, %v289_v61 }
  0x11   :  { %669 = vst [vmem:[%s1992_s3 + $0x38] sm:$0xff] %v541_v43  ;;  %v546_v11 = vmax.f32 %v418_v2, 0.0  ;;  %v547_v12 = vmax.f32 %v419_v4, 0.0  ;;  %v828_v13 = vunpack.c.l.bf16 %v1057_v62  ;;  %v829_v14 = vunpack.c.h.bf16 %v1057_v62 }
  0x12   :  { %670 = vst [vmem:[%s1992_s3 + $0x40] sm:$0xff] %v542_v63  ;;  %v548_v16 = vmax.f32 %v420_v8, 0.0  ;;  %v549_v17 = vmax.f32 %v421_v9, 0.0  ;;  %v832_v18 = vunpack.c.l.bf16 %v1058_v5  ;;  %v833_v19 = vunpack.c.h.bf16 %v1058_v5 }
  0x13   :  { %671 = vst [vmem:[%s1992_s3 + $0x48] sm:$0xff] %v543_v0  ;;  %v290_v20 = vmul.f32 %v1143_v1, %v828_v13  ;;  %v291_v21 = vmul.f32 %v1143_v1, %v829_v14  ;;  %v836_v22 = vunpack.c.l.bf16 %v1059_v10  ;;  %v837_v23 = vunpack.c.h.bf16 %v1059_v10  ;;  %v1065_v10 = vld [vmem:[%s1989_s0 + $0x80] sm:$0xff]  }
  0x14   :  { %672 = vst [vmem:[%s1992_s3 + $0x50] sm:$0xff] %v544_v6  ;;  %v292_v24 = vmul.f32 %v1143_v1, %v832_v18  ;;  %v293_v25 = vmul.f32 %v1143_v1, %v833_v19  ;;  %v840_v26 = vunpack.c.l.bf16 %v1060_v15  ;;  %v841_v27 = vunpack.c.h.bf16 %v1060_v15  ;;  %v1066_v15 = vld [vmem:[%s1989_s0 + $0x88] sm:$0xff]  }
  0x15   :  { %673 = vst [vmem:[%s1992_s3 + $0x58] sm:$0xff] %v545_v7  ;;  %v422_v28 = vadd.f32 %v1148_v3, %v290_v20  ;;  %v423_v29 = vadd.f32 %v1148_v3, %v291_v21  ;;  %v294_v30 = vmul.f32 %v1143_v1, %v836_v22  ;;  %v295_v31 = vmul.f32 %v1143_v1, %v837_v23  ;;  %v1067_v20 = vld [vmem:[%s1989_s0 + $0x90] sm:$0xff]  }
  0x16   :  { %674 = vst [vmem:[%s1992_s3 + $0x60] sm:$0xff] %v546_v11  ;;  %v424_v32 = vadd.f32 %v1148_v3, %v292_v24  ;;  %v425_v33 = vadd.f32 %v1148_v3, %v293_v25  ;;  %v296_v34 = vmul.f32 %v1143_v1, %v840_v26  ;;  %v297_v35 = vmul.f32 %v1143_v1, %v841_v27  ;;  %v1068_v25 = vld [vmem:[%s1989_s0 + $0x98] sm:$0xff]  }
  0x17   :  { %675 = vst [vmem:[%s1992_s3 + $0x68] sm:$0xff] %v547_v12  ;;  %v550_v37 = vmax.f32 %v422_v28, 0.0  ;;  %v551_v38 = vmax.f32 %v423_v29, 0.0  ;;  %v426_v39 = vadd.f32 %v1148_v3, %v294_v30  ;;  %v427_v40 = vadd.f32 %v1148_v3, %v295_v31 }
  0x18   :  { %676 = vst [vmem:[%s1992_s3 + $0x70] sm:$0xff] %v548_v16  ;;  %v552_v42 = vmax.f32 %v424_v32, 0.0  ;;  %v553_v43 = vmax.f32 %v425_v33, 0.0  ;;  %v428_v44 = vadd.f32 %v1148_v3, %v296_v34  ;;  %v429_v45 = vadd.f32 %v1148_v3, %v297_v35 }
  0x19   :  { %677 = vst [vmem:[%s1992_s3 + $0x78] sm:$0xff] %v549_v17  ;;  %v554_v47 = vmax.f32 %v426_v39, 0.0  ;;  %v555_v48 = vmax.f32 %v427_v40, 0.0  ;;  %v844_v49 = vunpack.c.l.bf16 %v1061_v36  ;;  %v845_v50 = vunpack.c.h.bf16 %v1061_v36 }
  0x1a   :  { %678 = vst [vmem:[%s1992_s3 + $0x80] sm:$0xff] %v550_v37  ;;  %v556_v52 = vmax.f32 %v428_v44, 0.0  ;;  %v557_v53 = vmax.f32 %v429_v45, 0.0  ;;  %v848_v54 = vunpack.c.l.bf16 %v1062_v41  ;;  %v849_v55 = vunpack.c.h.bf16 %v1062_v41 }
  0x1b   :  { %679 = vst [vmem:[%s1992_s3 + $0x88] sm:$0xff] %v551_v38  ;;  %v298_v56 = vmul.f32 %v1143_v1, %v844_v49  ;;  %v299_v57 = vmul.f32 %v1143_v1, %v845_v50  ;;  %v852_v58 = vunpack.c.l.bf16 %v1063_v46  ;;  %v853_v59 = vunpack.c.h.bf16 %v1063_v46  ;;  %v1069_v46 = vld [vmem:[%s1989_s0 + $0xa0] sm:$0xff]  }
  0x1c   :  { %680 = vst [vmem:[%s1992_s3 + $0x90] sm:$0xff] %v552_v42  ;;  %v300_v60 = vmul.f32 %v1143_v1, %v848_v54  ;;  %v301_v61 = vmul.f32 %v1143_v1, %v849_v55  ;;  %v856_v62 = vunpack.c.l.bf16 %v1064_v51  ;;  %v857_v63 = vunpack.c.h.bf16 %v1064_v51  ;;  %v1070_v51 = vld [vmem:[%s1989_s0 + $0xa8] sm:$0xff]  }
  0x1d   :  { %681 = vst [vmem:[%s1992_s3 + $0x98] sm:$0xff] %v553_v43  ;;  %v430_v0 = vadd.f32 %v1148_v3, %v298_v56  ;;  %v431_v2 = vadd.f32 %v1148_v3, %v299_v57  ;;  %v302_v4 = vmul.f32 %v1143_v1, %v852_v58  ;;  %v303_v5 = vmul.f32 %v1143_v1, %v853_v59  ;;  %v1071_v56 = vld [vmem:[%s1989_s0 + $0xb0] sm:$0xff]  }
  0x1e   :  { %682 = vst [vmem:[%s1992_s3 + $0xa0] sm:$0xff] %v554_v47  ;;  %v432_v6 = vadd.f32 %v1148_v3, %v300_v60  ;;  %v433_v7 = vadd.f32 %v1148_v3, %v301_v61  ;;  %v304_v8 = vmul.f32 %v1143_v1, %v856_v62  ;;  %v305_v9 = vmul.f32 %v1143_v1, %v857_v63  ;;  %v1072_v61 = vld [vmem:[%s1989_s0 + $0xb8] sm:$0xff]  }
  0x1f   :  { %683 = vst [vmem:[%s1992_s3 + $0xa8] sm:$0xff] %v555_v48  ;;  %v558_v11 = vmax.f32 %v430_v0, 0.0  ;;  %v559_v12 = vmax.f32 %v431_v2, 0.0  ;;  %v434_v13 = vadd.f32 %v1148_v3, %v302_v4  ;;  %v435_v14 = vadd.f32 %v1148_v3, %v303_v5 }
  0x20   :  { %684 = vst [vmem:[%s1992_s3 + $0xb0] sm:$0xff] %v556_v52  ;;  %v560_v16 = vmax.f32 %v432_v6, 0.0  ;;  %v561_v17 = vmax.f32 %v433_v7, 0.0  ;;  %v436_v18 = vadd.f32 %v1148_v3, %v304_v8  ;;  %v437_v19 = vadd.f32 %v1148_v3, %v305_v9 }
  0x21   :  { %685 = vst [vmem:[%s1992_s3 + $0xb8] sm:$0xff] %v557_v53  ;;  %v562_v21 = vmax.f32 %v434_v13, 0.0  ;;  %v563_v22 = vmax.f32 %v435_v14, 0.0  ;;  %v860_v23 = vunpack.c.l.bf16 %v1065_v10  ;;  %v861_v24 = vunpack.c.h.bf16 %v1065_v10 }
  0x22   :  { %686 = vst [vmem:[%s1992_s3 + $0xc0] sm:$0xff] %v558_v11  ;;  %v564_v26 = vmax.f32 %v436_v18, 0.0  ;;  %v565_v27 = vmax.f32 %v437_v19, 0.0  ;;  %v864_v28 = vunpack.c.l.bf16 %v1066_v15  ;;  %v865_v29 = vunpack.c.h.bf16 %v1066_v15 }
  0x23   :  { %687 = vst [vmem:[%s1992_s3 + $0xc8] sm:$0xff] %v559_v12  ;;  %v306_v30 = vmul.f32 %v1143_v1, %v860_v23  ;;  %v307_v31 = vmul.f32 %v1143_v1, %v861_v24  ;;  %v868_v32 = vunpack.c.l.bf16 %v1067_v20  ;;  %v869_v33 = vunpack.c.h.bf16 %v1067_v20  ;;  %v1073_v20 = vld [vmem:[%s1989_s0 + $0xc0] sm:$0xff]  }
  0x24   :  { %688 = vst [vmem:[%s1992_s3 + $0xd0] sm:$0xff] %v560_v16  ;;  %v308_v34 = vmul.f32 %v1143_v1, %v864_v28  ;;  %v309_v35 = vmul.f32 %v1143_v1, %v865_v29  ;;  %v872_v36 = vunpack.c.l.bf16 %v1068_v25  ;;  %v873_v37 = vunpack.c.h.bf16 %v1068_v25  ;;  %v1074_v25 = vld [vmem:[%s1989_s0 + $0xc8] sm:$0xff]  }
  0x25   :  { %689 = vst [vmem:[%s1992_s3 + $0xd8] sm:$0xff] %v561_v17  ;;  %v438_v38 = vadd.f32 %v1148_v3, %v306_v30  ;;  %v439_v39 = vadd.f32 %v1148_v3, %v307_v31  ;;  %v310_v40 = vmul.f32 %v1143_v1, %v868_v32  ;;  %v311_v41 = vmul.f32 %v1143_v1, %v869_v33  ;;  %v1075_v30 = vld [vmem:[%s1989_s0 + $0xd0] sm:$0xff]  }
  0x26   :  { %690 = vst [vmem:[%s1992_s3 + $0xe0] sm:$0xff] %v562_v21  ;;  %v440_v42 = vadd.f32 %v1148_v3, %v308_v34  ;;  %v441_v43 = vadd.f32 %v1148_v3, %v309_v35  ;;  %v312_v44 = vmul.f32 %v1143_v1, %v872_v36  ;;  %v313_v45 = vmul.f32 %v1143_v1, %v873_v37  ;;  %v1076_v35 = vld [vmem:[%s1989_s0 + $0xd8] sm:$0xff]  }
  0x27   :  { %691 = vst [vmem:[%s1992_s3 + $0xe8] sm:$0xff] %v563_v22  ;;  %v566_v47 = vmax.f32 %v438_v38, 0.0  ;;  %v567_v48 = vmax.f32 %v439_v39, 0.0  ;;  %v442_v49 = vadd.f32 %v1148_v3, %v310_v40  ;;  %v443_v50 = vadd.f32 %v1148_v3, %v311_v41 }
  0x28   :  { %692 = vst [vmem:[%s1992_s3 + $0xf0] sm:$0xff] %v564_v26  ;;  %v568_v52 = vmax.f32 %v440_v42, 0.0  ;;  %v569_v53 = vmax.f32 %v441_v43, 0.0  ;;  %v444_v54 = vadd.f32 %v1148_v3, %v312_v44  ;;  %v445_v55 = vadd.f32 %v1148_v3, %v313_v45 }
  0x29   :  { %693 = vst [vmem:[%s1992_s3 + $0xf8] sm:$0xff] %v565_v27  ;;  %v570_v57 = vmax.f32 %v442_v49, 0.0  ;;  %v571_v58 = vmax.f32 %v443_v50, 0.0  ;;  %v876_v59 = vunpack.c.l.bf16 %v1069_v46  ;;  %v877_v60 = vunpack.c.h.bf16 %v1069_v46 }
  0x2a   :  { %694 = vst [vmem:[%s1992_s3 + $0x100] sm:$0xff] %v566_v47  ;;  %v572_v62 = vmax.f32 %v444_v54, 0.0  ;;  %v573_v63 = vmax.f32 %v445_v55, 0.0  ;;  %v880_v0 = vunpack.c.l.bf16 %v1070_v51  ;;  %v881_v2 = vunpack.c.h.bf16 %v1070_v51 }
  0x2b   :  { %695 = vst [vmem:[%s1992_s3 + $0x108] sm:$0xff] %v567_v48  ;;  %v314_v4 = vmul.f32 %v1143_v1, %v876_v59  ;;  %v315_v5 = vmul.f32 %v1143_v1, %v877_v60  ;;  %v884_v6 = vunpack.c.l.bf16 %v1071_v56  ;;  %v885_v7 = vunpack.c.h.bf16 %v1071_v56  ;;  %v1077_v56 = vld [vmem:[%s1989_s0 + $0xe0] sm:$0xff]  }
  0x2c   :  { %696 = vst [vmem:[%s1992_s3 + $0x110] sm:$0xff] %v568_v52  ;;  %v316_v8 = vmul.f32 %v1143_v1, %v880_v0  ;;  %v317_v9 = vmul.f32 %v1143_v1, %v881_v2  ;;  %v888_v10 = vunpack.c.l.bf16 %v1072_v61  ;;  %v889_v11 = vunpack.c.h.bf16 %v1072_v61  ;;  %v1078_v61 = vld [vmem:[%s1989_s0 + $0xe8] sm:$0xff]  }
  0x2d   :  { %697 = vst [vmem:[%s1992_s3 + $0x118] sm:$0xff] %v569_v53  ;;  %v446_v12 = vadd.f32 %v1148_v3, %v314_v4  ;;  %v447_v13 = vadd.f32 %v1148_v3, %v315_v5  ;;  %v318_v14 = vmul.f32 %v1143_v1, %v884_v6  ;;  %v319_v15 = vmul.f32 %v1143_v1, %v885_v7  ;;  %v1079_v4 = vld [vmem:[%s1989_s0 + $0xf0] sm:$0xff]  }
  0x2e   :  { %698 = vst [vmem:[%s1992_s3 + $0x120] sm:$0xff] %v570_v57  ;;  %v448_v16 = vadd.f32 %v1148_v3, %v316_v8  ;;  %v449_v17 = vadd.f32 %v1148_v3, %v317_v9  ;;  %v320_v18 = vmul.f32 %v1143_v1, %v888_v10  ;;  %v321_v19 = vmul.f32 %v1143_v1, %v889_v11  ;;  %v1080_v9 = vld [vmem:[%s1989_s0 + $0xf8] sm:$0xff]  }
  0x2f   :  { %699 = vst [vmem:[%s1992_s3 + $0x128] sm:$0xff] %v571_v58  ;;  %v574_v21 = vmax.f32 %v446_v12, 0.0  ;;  %v575_v22 = vmax.f32 %v447_v13, 0.0  ;;  %v450_v23 = vadd.f32 %v1148_v3, %v318_v14  ;;  %v451_v24 = vadd.f32 %v1148_v3, %v319_v15 }
  0x30   :  { %700 = vst [vmem:[%s1992_s3 + $0x130] sm:$0xff] %v572_v62  ;;  %v576_v26 = vmax.f32 %v448_v16, 0.0  ;;  %v577_v27 = vmax.f32 %v449_v17, 0.0  ;;  %v452_v28 = vadd.f32 %v1148_v3, %v320_v18  ;;  %v453_v29 = vadd.f32 %v1148_v3, %v321_v19 }
  0x31   :  { %701 = vst [vmem:[%s1992_s3 + $0x138] sm:$0xff] %v573_v63  ;;  %v578_v31 = vmax.f32 %v450_v23, 0.0  ;;  %v579_v32 = vmax.f32 %v451_v24, 0.0  ;;  %v892_v33 = vunpack.c.l.bf16 %v1073_v20  ;;  %v893_v34 = vunpack.c.h.bf16 %v1073_v20 }
  0x32   :  { %702 = vst [vmem:[%s1992_s3 + $0x140] sm:$0xff] %v574_v21  ;;  %v580_v36 = vmax.f32 %v452_v28, 0.0  ;;  %v581_v37 = vmax.f32 %v453_v29, 0.0  ;;  %v896_v38 = vunpack.c.l.bf16 %v1074_v25  ;;  %v897_v39 = vunpack.c.h.bf16 %v1074_v25 }
  0x33   :  { %703 = vst [vmem:[%s1992_s3 + $0x148] sm:$0xff] %v575_v22  ;;  %v322_v40 = vmul.f32 %v1143_v1, %v892_v33  ;;  %v323_v41 = vmul.f32 %v1143_v1, %v893_v34  ;;  %v900_v42 = vunpack.c.l.bf16 %v1075_v30  ;;  %v901_v43 = vunpack.c.h.bf16 %v1075_v30  ;;  %v1081_v30 = vld [vmem:[%s1989_s0 + $0x100] sm:$0xff]  }
  0x34   :  { %704 = vst [vmem:[%s1992_s3 + $0x150] sm:$0xff] %v576_v26  ;;  %v324_v44 = vmul.f32 %v1143_v1, %v896_v38  ;;  %v325_v45 = vmul.f32 %v1143_v1, %v897_v39  ;;  %v904_v46 = vunpack.c.l.bf16 %v1076_v35  ;;  %v905_v47 = vunpack.c.h.bf16 %v1076_v35  ;;  %v1082_v35 = vld [vmem:[%s1989_s0 + $0x108] sm:$0xff]  }
  0x35   :  { %705 = vst [vmem:[%s1992_s3 + $0x158] sm:$0xff] %v577_v27  ;;  %v454_v48 = vadd.f32 %v1148_v3, %v322_v40  ;;  %v455_v49 = vadd.f32 %v1148_v3, %v323_v41  ;;  %v326_v50 = vmul.f32 %v1143_v1, %v900_v42  ;;  %v327_v51 = vmul.f32 %v1143_v1, %v901_v43  ;;  %v1083_v40 = vld [vmem:[%s1989_s0 + $0x110] sm:$0xff]  }
  0x36   :  { %706 = vst [vmem:[%s1992_s3 + $0x160] sm:$0xff] %v578_v31  ;;  %v456_v52 = vadd.f32 %v1148_v3, %v324_v44  ;;  %v457_v53 = vadd.f32 %v1148_v3, %v325_v45  ;;  %v328_v54 = vmul.f32 %v1143_v1, %v904_v46  ;;  %v329_v55 = vmul.f32 %v1143_v1, %v905_v47  ;;  %v1084_v45 = vld [vmem:[%s1989_s0 + $0x118] sm:$0xff]  }
  0x37   :  { %707 = vst [vmem:[%s1992_s3 + $0x168] sm:$0xff] %v579_v32  ;;  %v582_v57 = vmax.f32 %v454_v48, 0.0  ;;  %v583_v58 = vmax.f32 %v455_v49, 0.0  ;;  %v458_v59 = vadd.f32 %v1148_v3, %v326_v50  ;;  %v459_v60 = vadd.f32 %v1148_v3, %v327_v51 }
  0x38   :  { %708 = vst [vmem:[%s1992_s3 + $0x170] sm:$0xff] %v580_v36  ;;  %v584_v62 = vmax.f32 %v456_v52, 0.0  ;;  %v585_v63 = vmax.f32 %v457_v53, 0.0  ;;  %v460_v0 = vadd.f32 %v1148_v3, %v328_v54  ;;  %v461_v2 = vadd.f32 %v1148_v3, %v329_v55 }
  0x39   :  { %709 = vst [vmem:[%s1992_s3 + $0x178] sm:$0xff] %v581_v37  ;;  %v586_v5 = vmax.f32 %v458_v59, 0.0  ;;  %v587_v6 = vmax.f32 %v459_v60, 0.0  ;;  %v908_v7 = vunpack.c.l.bf16 %v1077_v56  ;;  %v909_v8 = vunpack.c.h.bf16 %v1077_v56 }
  0x3a   :  { %710 = vst [vmem:[%s1992_s3 + $0x180] sm:$0xff] %v582_v57  ;;  %v588_v10 = vmax.f32 %v460_v0, 0.0  ;;  %v589_v11 = vmax.f32 %v461_v2, 0.0  ;;  %v912_v12 = vunpack.c.l.bf16 %v1078_v61  ;;  %v913_v13 = vunpack.c.h.bf16 %v1078_v61 }
  0x3b   :  { %711 = vst [vmem:[%s1992_s3 + $0x188] sm:$0xff] %v583_v58  ;;  %v330_v14 = vmul.f32 %v1143_v1, %v908_v7  ;;  %v331_v15 = vmul.f32 %v1143_v1, %v909_v8  ;;  %v916_v16 = vunpack.c.l.bf16 %v1079_v4  ;;  %v917_v17 = vunpack.c.h.bf16 %v1079_v4  ;;  %v1085_v4 = vld [vmem:[%s1989_s0 + $0x120] sm:$0xff]  }
  0x3c   :  { %712 = vst [vmem:[%s1992_s3 + $0x190] sm:$0xff] %v584_v62  ;;  %v332_v18 = vmul.f32 %v1143_v1, %v912_v12  ;;  %v333_v19 = vmul.f32 %v1143_v1, %v913_v13  ;;  %v920_v20 = vunpack.c.l.bf16 %v1080_v9  ;;  %v921_v21 = vunpack.c.h.bf16 %v1080_v9  ;;  %v1086_v9 = vld [vmem:[%s1989_s0 + $0x128] sm:$0xff]  }
  0x3d   :  { %713 = vst [vmem:[%s1992_s3 + $0x198] sm:$0xff] %v585_v63  ;;  %v462_v22 = vadd.f32 %v1148_v3, %v330_v14  ;;  %v463_v23 = vadd.f32 %v1148_v3, %v331_v15  ;;  %v334_v24 = vmul.f32 %v1143_v1, %v916_v16  ;;  %v335_v25 = vmul.f32 %v1143_v1, %v917_v17  ;;  %v1087_v14 = vld [vmem:[%s1989_s0 + $0x130] sm:$0xff]  }
  0x3e   :  { %714 = vst [vmem:[%s1992_s3 + $0x1a0] sm:$0xff] %v586_v5  ;;  %v464_v26 = vadd.f32 %v1148_v3, %v332_v18  ;;  %v465_v27 = vadd.f32 %v1148_v3, %v333_v19  ;;  %v336_v28 = vmul.f32 %v1143_v1, %v920_v20  ;;  %v337_v29 = vmul.f32 %v1143_v1, %v921_v21  ;;  %v1088_v19 = vld [vmem:[%s1989_s0 + $0x138] sm:$0xff]  }
  0x3f   :  { %715 = vst [vmem:[%s1992_s3 + $0x1a8] sm:$0xff] %v587_v6  ;;  %v590_v31 = vmax.f32 %v462_v22, 0.0  ;;  %v591_v32 = vmax.f32 %v463_v23, 0.0  ;;  %v466_v33 = vadd.f32 %v1148_v3, %v334_v24  ;;  %v467_v34 = vadd.f32 %v1148_v3, %v335_v25 }
  0x40   :  { %716 = vst [vmem:[%s1992_s3 + $0x1b0] sm:$0xff] %v588_v10  ;;  %v592_v36 = vmax.f32 %v464_v26, 0.0  ;;  %v593_v37 = vmax.f32 %v465_v27, 0.0  ;;  %v468_v38 = vadd.f32 %v1148_v3, %v336_v28  ;;  %v469_v39 = vadd.f32 %v1148_v3, %v337_v29 }
  0x41   :  { %717 = vst [vmem:[%s1992_s3 + $0x1b8] sm:$0xff] %v589_v11  ;;  %v594_v41 = vmax.f32 %v466_v33, 0.0  ;;  %v595_v42 = vmax.f32 %v467_v34, 0.0  ;;  %v924_v43 = vunpack.c.l.bf16 %v1081_v30  ;;  %v925_v44 = vunpack.c.h.bf16 %v1081_v30 }
  0x42   :  { %718 = vst [vmem:[%s1992_s3 + $0x1c0] sm:$0xff] %v590_v31  ;;  %v596_v46 = vmax.f32 %v468_v38, 0.0  ;;  %v597_v47 = vmax.f32 %v469_v39, 0.0  ;;  %v928_v48 = vunpack.c.l.bf16 %v1082_v35  ;;  %v929_v49 = vunpack.c.h.bf16 %v1082_v35 }
  0x43   :  { %719 = vst [vmem:[%s1992_s3 + $0x1c8] sm:$0xff] %v591_v32  ;;  %v338_v50 = vmul.f32 %v1143_v1, %v924_v43  ;;  %v339_v51 = vmul.f32 %v1143_v1, %v925_v44  ;;  %v932_v52 = vunpack.c.l.bf16 %v1083_v40  ;;  %v933_v53 = vunpack.c.h.bf16 %v1083_v40  ;;  %v1089_v40 = vld [vmem:[%s1989_s0 + $0x140] sm:$0xff]  }
  0x44   :  { %720 = vst [vmem:[%s1992_s3 + $0x1d0] sm:$0xff] %v592_v36  ;;  %v340_v54 = vmul.f32 %v1143_v1, %v928_v48  ;;  %v341_v55 = vmul.f32 %v1143_v1, %v929_v49  ;;  %v936_v56 = vunpack.c.l.bf16 %v1084_v45  ;;  %v937_v57 = vunpack.c.h.bf16 %v1084_v45  ;;  %v1090_v45 = vld [vmem:[%s1989_s0 + $0x148] sm:$0xff]  }
  0x45   :  { %721 = vst [vmem:[%s1992_s3 + $0x1d8] sm:$0xff] %v593_v37  ;;  %v470_v58 = vadd.f32 %v1148_v3, %v338_v50  ;;  %v471_v59 = vadd.f32 %v1148_v3, %v339_v51  ;;  %v342_v60 = vmul.f32 %v1143_v1, %v932_v52  ;;  %v343_v61 = vmul.f32 %v1143_v1, %v933_v53  ;;  %v1091_v50 = vld [vmem:[%s1989_s0 + $0x150] sm:$0xff]  }
  0x46   :  { %722 = vst [vmem:[%s1992_s3 + $0x1e0] sm:$0xff] %v594_v41  ;;  %v472_v62 = vadd.f32 %v1148_v3, %v340_v54  ;;  %v473_v63 = vadd.f32 %v1148_v3, %v341_v55  ;;  %v344_v0 = vmul.f32 %v1143_v1, %v936_v56  ;;  %v345_v2 = vmul.f32 %v1143_v1, %v937_v57  ;;  %v1092_v55 = vld [vmem:[%s1989_s0 + $0x158] sm:$0xff]  }
  0x47   :  { %723 = vst [vmem:[%s1992_s3 + $0x1e8] sm:$0xff] %v595_v42  ;;  %v598_v5 = vmax.f32 %v470_v58, 0.0  ;;  %v599_v6 = vmax.f32 %v471_v59, 0.0  ;;  %v474_v7 = vadd.f32 %v1148_v3, %v342_v60  ;;  %v475_v8 = vadd.f32 %v1148_v3, %v343_v61 }
  0x48   :  { %724 = vst [vmem:[%s1992_s3 + $0x1f0] sm:$0xff] %v596_v46  ;;  %v600_v10 = vmax.f32 %v472_v62, 0.0  ;;  %v601_v11 = vmax.f32 %v473_v63, 0.0  ;;  %v476_v12 = vadd.f32 %v1148_v3, %v344_v0  ;;  %v477_v13 = vadd.f32 %v1148_v3, %v345_v2 }
  0x49   :  { %725 = vst [vmem:[%s1992_s3 + $0x1f8] sm:$0xff] %v597_v47  ;;  %v602_v15 = vmax.f32 %v474_v7, 0.0  ;;  %v603_v16 = vmax.f32 %v475_v8, 0.0  ;;  %v940_v17 = vunpack.c.l.bf16 %v1085_v4  ;;  %v941_v18 = vunpack.c.h.bf16 %v1085_v4 }
  0x4a   :  { %726 = vst [vmem:[%s1992_s3 + $0x200] sm:$0xff] %v598_v5  ;;  %v604_v20 = vmax.f32 %v476_v12, 0.0  ;;  %v605_v21 = vmax.f32 %v477_v13, 0.0  ;;  %v944_v22 = vunpack.c.l.bf16 %v1086_v9  ;;  %v945_v23 = vunpack.c.h.bf16 %v1086_v9 }
  0x4b   :  { %727 = vst [vmem:[%s1992_s3 + $0x208] sm:$0xff] %v599_v6  ;;  %v346_v24 = vmul.f32 %v1143_v1, %v940_v17  ;;  %v347_v25 = vmul.f32 %v1143_v1, %v941_v18  ;;  %v948_v26 = vunpack.c.l.bf16 %v1087_v14  ;;  %v949_v27 = vunpack.c.h.bf16 %v1087_v14  ;;  %v1093_v14 = vld [vmem:[%s1989_s0 + $0x160] sm:$0xff]  }
  0x4c   :  { %728 = vst [vmem:[%s1992_s3 + $0x210] sm:$0xff] %v600_v10  ;;  %v348_v28 = vmul.f32 %v1143_v1, %v944_v22  ;;  %v349_v29 = vmul.f32 %v1143_v1, %v945_v23  ;;  %v952_v30 = vunpack.c.l.bf16 %v1088_v19  ;;  %v953_v31 = vunpack.c.h.bf16 %v1088_v19  ;;  %v1094_v19 = vld [vmem:[%s1989_s0 + $0x168] sm:$0xff]  }
  0x4d   :  { %729 = vst [vmem:[%s1992_s3 + $0x218] sm:$0xff] %v601_v11  ;;  %v478_v32 = vadd.f32 %v1148_v3, %v346_v24  ;;  %v479_v33 = vadd.f32 %v1148_v3, %v347_v25  ;;  %v350_v34 = vmul.f32 %v1143_v1, %v948_v26  ;;  %v351_v35 = vmul.f32 %v1143_v1, %v949_v27  ;;  %v1095_v24 = vld [vmem:[%s1989_s0 + $0x170] sm:$0xff]  }
  0x4e   :  { %730 = vst [vmem:[%s1992_s3 + $0x220] sm:$0xff] %v602_v15  ;;  %v480_v36 = vadd.f32 %v1148_v3, %v348_v28  ;;  %v481_v37 = vadd.f32 %v1148_v3, %v349_v29  ;;  %v352_v38 = vmul.f32 %v1143_v1, %v952_v30  ;;  %v353_v39 = vmul.f32 %v1143_v1, %v953_v31  ;;  %v1096_v29 = vld [vmem:[%s1989_s0 + $0x178] sm:$0xff]  }
  0x4f   :  { %731 = vst [vmem:[%s1992_s3 + $0x228] sm:$0xff] %v603_v16  ;;  %v606_v41 = vmax.f32 %v478_v32, 0.0  ;;  %v607_v42 = vmax.f32 %v479_v33, 0.0  ;;  %v482_v43 = vadd.f32 %v1148_v3, %v350_v34  ;;  %v483_v44 = vadd.f32 %v1148_v3, %v351_v35 }
  0x50   :  { %732 = vst [vmem:[%s1992_s3 + $0x230] sm:$0xff] %v604_v20  ;;  %v608_v46 = vmax.f32 %v480_v36, 0.0  ;;  %v609_v47 = vmax.f32 %v481_v37, 0.0  ;;  %v484_v48 = vadd.f32 %v1148_v3, %v352_v38  ;;  %v485_v49 = vadd.f32 %v1148_v3, %v353_v39 }
  0x51   :  { %733 = vst [vmem:[%s1992_s3 + $0x238] sm:$0xff] %v605_v21  ;;  %v610_v51 = vmax.f32 %v482_v43, 0.0  ;;  %v611_v52 = vmax.f32 %v483_v44, 0.0  ;;  %v956_v53 = vunpack.c.l.bf16 %v1089_v40  ;;  %v957_v54 = vunpack.c.h.bf16 %v1089_v40 }
  0x52   :  { %734 = vst [vmem:[%s1992_s3 + $0x240] sm:$0xff] %v606_v41  ;;  %v612_v56 = vmax.f32 %v484_v48, 0.0  ;;  %v613_v57 = vmax.f32 %v485_v49, 0.0  ;;  %v960_v58 = vunpack.c.l.bf16 %v1090_v45  ;;  %v961_v59 = vunpack.c.h.bf16 %v1090_v45 }
  0x53   :  { %735 = vst [vmem:[%s1992_s3 + $0x248] sm:$0xff] %v607_v42  ;;  %v354_v60 = vmul.f32 %v1143_v1, %v956_v53  ;;  %v355_v61 = vmul.f32 %v1143_v1, %v957_v54  ;;  %v964_v62 = vunpack.c.l.bf16 %v1091_v50  ;;  %v965_v63 = vunpack.c.h.bf16 %v1091_v50  ;;  %v1097_v50 = vld [vmem:[%s1989_s0 + $0x180] sm:$0xff]  }
  0x54   :  { %736 = vst [vmem:[%s1992_s3 + $0x250] sm:$0xff] %v608_v46  ;;  %v356_v0 = vmul.f32 %v1143_v1, %v960_v58  ;;  %v357_v2 = vmul.f32 %v1143_v1, %v961_v59  ;;  %v968_v4 = vunpack.c.l.bf16 %v1092_v55  ;;  %v969_v5 = vunpack.c.h.bf16 %v1092_v55  ;;  %v1098_v55 = vld [vmem:[%s1989_s0 + $0x188] sm:$0xff]  }
  0x55   :  { %737 = vst [vmem:[%s1992_s3 + $0x258] sm:$0xff] %v609_v47  ;;  %v486_v6 = vadd.f32 %v1148_v3, %v354_v60  ;;  %v487_v7 = vadd.f32 %v1148_v3, %v355_v61  ;;  %v358_v8 = vmul.f32 %v1143_v1, %v964_v62  ;;  %v359_v9 = vmul.f32 %v1143_v1, %v965_v63 }
  0x56   :  { %738 = vst [vmem:[%s1992_s3 + $0x260] sm:$0xff] %v610_v51  ;;  %v488_v10 = vadd.f32 %v1148_v3, %v356_v0  ;;  %v489_v11 = vadd.f32 %v1148_v3, %v357_v2  ;;  %v360_v12 = vmul.f32 %v1143_v1, %v968_v4  ;;  %v361_v13 = vmul.f32 %v1143_v1, %v969_v5  ;;  %v1100_v0 = vld [vmem:[%s1989_s0 + $0x198] sm:$0xff]  }
  0x57   :  { %739 = vst [vmem:[%s1992_s3 + $0x268] sm:$0xff] %v611_v52  ;;  %v614_v15 = vmax.f32 %v486_v6, 0.0  ;;  %v615_v16 = vmax.f32 %v487_v7, 0.0  ;;  %v490_v17 = vadd.f32 %v1148_v3, %v358_v8  ;;  %v491_v18 = vadd.f32 %v1148_v3, %v359_v9  ;;  %v1776_v7 = vld [vmem:[%s1990_s1] ss:$0 sm:$0xff] }
  0x58   :  { %740 = vst [vmem:[%s1992_s3 + $0x270] sm:$0xff] %v612_v56  ;;  %v616_v20 = vmax.f32 %v488_v10, 0.0  ;;  %v617_v21 = vmax.f32 %v489_v11, 0.0  ;;  %v492_v22 = vadd.f32 %v1148_v3, %v360_v12  ;;  %v493_v23 = vadd.f32 %v1148_v3, %v361_v13 }
  0x59   :  { %741 = vst [vmem:[%s1992_s3 + $0x278] sm:$0xff] %v613_v57  ;;  %v618_v25 = vmax.f32 %v490_v17, 0.0  ;;  %v619_v26 = vmax.f32 %v491_v18, 0.0  ;;  %v972_v27 = vunpack.c.l.bf16 %v1093_v14  ;;  %v973_v28 = vunpack.c.h.bf16 %v1093_v14  ;;  %v1754_v57 = vld [vmem:[%s1991_s2] ss:$0 sm:$0xff] }
  0x5a   :  { %742 = vst [vmem:[%s1992_s3 + $0x280] sm:$0xff] %v614_v15  ;;  %v620_v30 = vmax.f32 %v492_v22, 0.0  ;;  %v621_v31 = vmax.f32 %v493_v23, 0.0  ;;  %v976_v32 = vunpack.c.l.bf16 %v1094_v19  ;;  %v977_v33 = vunpack.c.h.bf16 %v1094_v19 }
  0x5b   :  { %743 = vst [vmem:[%s1992_s3 + $0x288] sm:$0xff] %v615_v16  ;;  %v362_v34 = vmul.f32 %v1143_v1, %v972_v27  ;;  %v363_v35 = vmul.f32 %v1143_v1, %v973_v28  ;;  %v980_v36 = vunpack.c.l.bf16 %v1095_v24  ;;  %v981_v37 = vunpack.c.h.bf16 %v1095_v24  ;;  %v1101_v24 = vld [vmem:[%s1989_s0 + $0x1a0] sm:$0xff]  }
  0x5c   :  { %744 = vst [vmem:[%s1992_s3 + $0x290] sm:$0xff] %v616_v20  ;;  %v364_v38 = vmul.f32 %v1143_v1, %v976_v32  ;;  %v365_v39 = vmul.f32 %v1143_v1, %v977_v33  ;;  %v984_v40 = vunpack.c.l.bf16 %v1096_v29  ;;  %v985_v41 = vunpack.c.h.bf16 %v1096_v29  ;;  %v1102_v29 = vld [vmem:[%s1989_s0 + $0x1a8] sm:$0xff]  }
  0x5d   :  { %745 = vst [vmem:[%s1992_s3 + $0x298] sm:$0xff] %v617_v21  ;;  %v494_v42 = vadd.f32 %v1148_v3, %v362_v34  ;;  %v495_v43 = vadd.f32 %v1148_v3, %v363_v35  ;;  %v366_v44 = vmul.f32 %v1143_v1, %v980_v36  ;;  %v367_v45 = vmul.f32 %v1143_v1, %v981_v37  ;;  %v1103_v34 = vld [vmem:[%s1989_s0 + $0x1b0] sm:$0xff]  }
  0x5e   :  { %746 = vst [vmem:[%s1992_s3 + $0x2a0] sm:$0xff] %v618_v25  ;;  %v496_v46 = vadd.f32 %v1148_v3, %v364_v38  ;;  %v497_v47 = vadd.f32 %v1148_v3, %v365_v39  ;;  %v368_v48 = vmul.f32 %v1143_v1, %v984_v40  ;;  %v369_v49 = vmul.f32 %v1143_v1, %v985_v41  ;;  %v1104_v39 = vld [vmem:[%s1989_s0 + $0x1b8] sm:$0xff]  }
  0x5f   :  { %747 = vst [vmem:[%s1992_s3 + $0x2a8] sm:$0xff] %v619_v26  ;;  %v622_v51 = vmax.f32 %v494_v42, 0.0  ;;  %v623_v52 = vmax.f32 %v495_v43, 0.0  ;;  %v498_v53 = vadd.f32 %v1148_v3, %v366_v44  ;;  %v499_v54 = vadd.f32 %v1148_v3, %v367_v45  ;;  %v1099_v3 = vld [vmem:[%s1989_s0 + $0x190] sm:$0xff]  }
  0x60   :  { %748 = vst [vmem:[%s1992_s3 + $0x2b0] sm:$0xff] %v620_v30  ;;  %v624_v1 = vmax.f32 %v496_v46, 0.0  ;;  %v625_v56 = vmax.f32 %v497_v47, 0.0  ;;  %v500_v58 = vadd.f32 %v1754_v57, %v368_v48  ;;  %v501_v59 = vadd.f32 %v1754_v57, %v369_v49 }
  0x61   :  { %749 = vst [vmem:[%s1992_s3 + $0x2b8] sm:$0xff] %v621_v31  ;;  %v626_v60 = vmax.f32 %v498_v53, 0.0  ;;  %v627_v61 = vmax.f32 %v499_v54, 0.0  ;;  %v988_v62 = vunpack.c.l.bf16 %v1097_v50  ;;  %v989_v63 = vunpack.c.h.bf16 %v1097_v50 }
  0x62   :  { %750 = vst [vmem:[%s1992_s3 + $0x2c0] sm:$0xff] %v622_v51  ;;  %v628_v2 = vmax.f32 %v500_v58, 0.0  ;;  %v629_v4 = vmax.f32 %v501_v59, 0.0  ;;  %v992_v5 = vunpack.c.l.bf16 %v1098_v55  ;;  %v993_v6 = vunpack.c.h.bf16 %v1098_v55 }
  0x63   :  { %751 = vst [vmem:[%s1992_s3 + $0x2c8] sm:$0xff] %v623_v52  ;;  %v370_v8 = vmul.f32 %v1776_v7, %v988_v62  ;;  %v371_v9 = vmul.f32 %v1776_v7, %v989_v63  ;;  %v996_v10 = vunpack.c.l.bf16 %v1099_v3  ;;  %v997_v11 = vunpack.c.h.bf16 %v1099_v3  ;;  %v1105_v3 = vld [vmem:[%s1989_s0 + $0x1c0] sm:$0xff]  }
  0x64   :  { %752 = vst [vmem:[%s1992_s3 + $0x2d0] sm:$0xff] %v624_v1  ;;  %v372_v12 = vmul.f32 %v1776_v7, %v992_v5  ;;  %v373_v13 = vmul.f32 %v1776_v7, %v993_v6  ;;  %v1000_v14 = vunpack.c.l.bf16 %v1100_v0  ;;  %v1001_v15 = vunpack.c.h.bf16 %v1100_v0  ;;  %v1106_v0 = vld [vmem:[%s1989_s0 + $0x1c8] sm:$0xff]  }
  0x65   :  { %753 = vst [vmem:[%s1992_s3 + $0x2d8] sm:$0xff] %v625_v56  ;;  %v502_v16 = vadd.f32 %v1754_v57, %v370_v8  ;;  %v503_v17 = vadd.f32 %v1754_v57, %v371_v9  ;;  %v374_v18 = vmul.f32 %v1776_v7, %v996_v10  ;;  %v375_v19 = vmul.f32 %v1776_v7, %v997_v11  ;;  %v1107_v8 = vld [vmem:[%s1989_s0 + $0x1d0] sm:$0xff]  }
  0x66   :  { %754 = vst [vmem:[%s1992_s3 + $0x2e0] sm:$0xff] %v626_v60  ;;  %v504_v20 = vadd.f32 %v1754_v57, %v372_v12  ;;  %v505_v21 = vadd.f32 %v1754_v57, %v373_v13  ;;  %v376_v22 = vmul.f32 %v1776_v7, %v1000_v14  ;;  %v377_v23 = vmul.f32 %v1776_v7, %v1001_v15  ;;  %v1108_v13 = vld [vmem:[%s1989_s0 + $0x1d8] sm:$0xff]  }
  0x67   :  { %755 = vst [vmem:[%s1992_s3 + $0x2e8] sm:$0xff] %v627_v61  ;;  %v630_v25 = vmax.f32 %v502_v16, 0.0  ;;  %v631_v26 = vmax.f32 %v503_v17, 0.0  ;;  %v506_v27 = vadd.f32 %v1754_v57, %v374_v18  ;;  %v507_v28 = vadd.f32 %v1754_v57, %v375_v19 }
  0x68   :  { %756 = vst [vmem:[%s1992_s3 + $0x2f0] sm:$0xff] %v628_v2  ;;  %v632_v30 = vmax.f32 %v504_v20, 0.0  ;;  %v633_v31 = vmax.f32 %v505_v21, 0.0  ;;  %v508_v32 = vadd.f32 %v1754_v57, %v376_v22  ;;  %v509_v33 = vadd.f32 %v1754_v57, %v377_v23 }
  0x69   :  { %757 = vst [vmem:[%s1992_s3 + $0x2f8] sm:$0xff] %v629_v4  ;;  %v634_v35 = vmax.f32 %v506_v27, 0.0  ;;  %v635_v36 = vmax.f32 %v507_v28, 0.0  ;;  %v1004_v37 = vunpack.c.l.bf16 %v1101_v24  ;;  %v1005_v38 = vunpack.c.h.bf16 %v1101_v24 }
  0x6a   :  { %758 = vst [vmem:[%s1992_s3 + $0x300] sm:$0xff] %v630_v25  ;;  %v636_v40 = vmax.f32 %v508_v32, 0.0  ;;  %v637_v41 = vmax.f32 %v509_v33, 0.0  ;;  %v1008_v42 = vunpack.c.l.bf16 %v1102_v29  ;;  %v1009_v43 = vunpack.c.h.bf16 %v1102_v29 }
  0x6b   :  { %759 = vst [vmem:[%s1992_s3 + $0x308] sm:$0xff] %v631_v26  ;;  %v378_v44 = vmul.f32 %v1776_v7, %v1004_v37  ;;  %v379_v45 = vmul.f32 %v1776_v7, %v1005_v38  ;;  %v1012_v46 = vunpack.c.l.bf16 %v1103_v34  ;;  %v1013_v47 = vunpack.c.h.bf16 %v1103_v34  ;;  %v1109_v34 = vld [vmem:[%s1989_s0 + $0x1e0] sm:$0xff]  }
  0x6c   :  { %760 = vst [vmem:[%s1992_s3 + $0x310] sm:$0xff] %v632_v30  ;;  %v380_v48 = vmul.f32 %v1776_v7, %v1008_v42  ;;  %v381_v49 = vmul.f32 %v1776_v7, %v1009_v43  ;;  %v1016_v50 = vunpack.c.l.bf16 %v1104_v39  ;;  %v1017_v51 = vunpack.c.h.bf16 %v1104_v39  ;;  %v1110_v39 = vld [vmem:[%s1989_s0 + $0x1e8] sm:$0xff]  }
  0x6d   :  { %761 = vst [vmem:[%s1992_s3 + $0x318] sm:$0xff] %v633_v31  ;;  %v510_v52 = vadd.f32 %v1754_v57, %v378_v44  ;;  %v511_v53 = vadd.f32 %v1754_v57, %v379_v45  ;;  %v382_v54 = vmul.f32 %v1776_v7, %v1012_v46  ;;  %v383_v55 = vmul.f32 %v1776_v7, %v1013_v47  ;;  %v1111_v44 = vld [vmem:[%s1989_s0 + $0x1f0] sm:$0xff]  }
  0x6e   :  { %762 = vst [vmem:[%s1992_s3 + $0x320] sm:$0xff] %v634_v35  ;;  %v512_v1 = vadd.f32 %v1754_v57, %v380_v48  ;;  %v513_v56 = vadd.f32 %v1754_v57, %v381_v49  ;;  %v384_v58 = vmul.f32 %v1776_v7, %v1016_v50  ;;  %v385_v59 = vmul.f32 %v1776_v7, %v1017_v51  ;;  %v1112_v49 = vld [vmem:[%s1989_s0 + $0x1f8] sm:$0xff]  }
  0x6f   :  { %763 = vst [vmem:[%s1992_s3 + $0x328] sm:$0xff] %v635_v36  ;;  %v638_v60 = vmax.f32 %v510_v52, 0.0  ;;  %v639_v61 = vmax.f32 %v511_v53, 0.0  ;;  %v514_v62 = vadd.f32 %v1754_v57, %v382_v54  ;;  %v515_v63 = vadd.f32 %v1754_v57, %v383_v55 }
  0x70   :  { %764 = vst [vmem:[%s1992_s3 + $0x330] sm:$0xff] %v636_v40  ;;  %v640_v2 = vmax.f32 %v512_v1, 0.0  ;;  %v641_v4 = vmax.f32 %v513_v56, 0.0  ;;  %v516_v5 = vadd.f32 %v1754_v57, %v384_v58  ;;  %v517_v6 = vadd.f32 %v1754_v57, %v385_v59 }
  0x71   :  { %765 = vst [vmem:[%s1992_s3 + $0x338] sm:$0xff] %v637_v41  ;;  %v642_v9 = vmax.f32 %v514_v62, 0.0  ;;  %v643_v10 = vmax.f32 %v515_v63, 0.0  ;;  %v1020_v11 = vunpack.c.l.bf16 %v1105_v3  ;;  %v1021_v12 = vunpack.c.h.bf16 %v1105_v3 }
  0x72   :  { %766 = vst [vmem:[%s1992_s3 + $0x340] sm:$0xff] %v638_v60  ;;  %v644_v14 = vmax.f32 %v516_v5, 0.0  ;;  %v645_v15 = vmax.f32 %v517_v6, 0.0  ;;  %v1024_v16 = vunpack.c.l.bf16 %v1106_v0  ;;  %v1025_v17 = vunpack.c.h.bf16 %v1106_v0 }
  0x73   :  { %767 = vst [vmem:[%s1992_s3 + $0x348] sm:$0xff] %v639_v61  ;;  %v386_v18 = vmul.f32 %v1776_v7, %v1020_v11  ;;  %v387_v19 = vmul.f32 %v1776_v7, %v1021_v12  ;;  %v1028_v20 = vunpack.c.l.bf16 %v1107_v8  ;;  %v1029_v21 = vunpack.c.h.bf16 %v1107_v8 }
  0x74   :  { %768 = vst [vmem:[%s1992_s3 + $0x350] sm:$0xff] %v640_v2  ;;  %v388_v22 = vmul.f32 %v1776_v7, %v1024_v16  ;;  %v389_v23 = vmul.f32 %v1776_v7, %v1025_v17  ;;  %v1032_v24 = vunpack.c.l.bf16 %v1108_v13  ;;  %v1033_v25 = vunpack.c.h.bf16 %v1108_v13 }
  0x75   :  { %769 = vst [vmem:[%s1992_s3 + $0x358] sm:$0xff] %v641_v4  ;;  %v518_v26 = vadd.f32 %v1754_v57, %v386_v18  ;;  %v519_v27 = vadd.f32 %v1754_v57, %v387_v19  ;;  %v390_v28 = vmul.f32 %v1776_v7, %v1028_v20  ;;  %v391_v29 = vmul.f32 %v1776_v7, %v1029_v21 }
  0x76   :  { %770 = vst [vmem:[%s1992_s3 + $0x360] sm:$0xff] %v642_v9  ;;  %v520_v30 = vadd.f32 %v1754_v57, %v388_v22  ;;  %v521_v31 = vadd.f32 %v1754_v57, %v389_v23  ;;  %v392_v32 = vmul.f32 %v1776_v7, %v1032_v24  ;;  %v393_v33 = vmul.f32 %v1776_v7, %v1033_v25 }
  0x77   :  { %771 = vst [vmem:[%s1992_s3 + $0x368] sm:$0xff] %v643_v10  ;;  %v646_v35 = vmax.f32 %v518_v26, 0.0  ;;  %v647_v36 = vmax.f32 %v519_v27, 0.0  ;;  %v522_v37 = vadd.f32 %v1754_v57, %v390_v28  ;;  %v523_v38 = vadd.f32 %v1754_v57, %v391_v29 }
  0x78   :  { %772 = vst [vmem:[%s1992_s3 + $0x370] sm:$0xff] %v644_v14  ;;  %v648_v40 = vmax.f32 %v520_v30, 0.0  ;;  %v649_v41 = vmax.f32 %v521_v31, 0.0  ;;  %v524_v42 = vadd.f32 %v1754_v57, %v392_v32  ;;  %v525_v43 = vadd.f32 %v1754_v57, %v393_v33 }
  0x79   :  { %773 = vst [vmem:[%s1992_s3 + $0x378] sm:$0xff] %v645_v15  ;;  %v650_v45 = vmax.f32 %v522_v37, 0.0  ;;  %v651_v46 = vmax.f32 %v523_v38, 0.0  ;;  %v1036_v47 = vunpack.c.l.bf16 %v1109_v34  ;;  %v1037_v48 = vunpack.c.h.bf16 %v1109_v34 }
  0x7a   :  { %774 = vst [vmem:[%s1992_s3 + $0x380] sm:$0xff] %v646_v35  ;;  %v652_v50 = vmax.f32 %v524_v42, 0.0  ;;  %v653_v51 = vmax.f32 %v525_v43, 0.0  ;;  %v1040_v52 = vunpack.c.l.bf16 %v1110_v39  ;;  %v1041_v53 = vunpack.c.h.bf16 %v1110_v39 }
  0x7b   :  { %775 = vst [vmem:[%s1992_s3 + $0x388] sm:$0xff] %v647_v36  ;;  %v394_v54 = vmul.f32 %v1776_v7, %v1036_v47  ;;  %v395_v55 = vmul.f32 %v1776_v7, %v1037_v48  ;;  %v1044_v1 = vunpack.c.l.bf16 %v1111_v44  ;;  %v1045_v56 = vunpack.c.h.bf16 %v1111_v44 }
  0x7c   :  { %776 = vst [vmem:[%s1992_s3 + $0x390] sm:$0xff] %v648_v40  ;;  %v396_v58 = vmul.f32 %v1776_v7, %v1040_v52  ;;  %v397_v59 = vmul.f32 %v1776_v7, %v1041_v53  ;;  %v1048_v3 = vunpack.c.l.bf16 %v1112_v49  ;;  %v1049_v60 = vunpack.c.h.bf16 %v1112_v49 }
  0x7d   :  { %777 = vst [vmem:[%s1992_s3 + $0x398] sm:$0xff] %v649_v41  ;;  %v526_v61 = vadd.f32 %v1754_v57, %v394_v54  ;;  %v527_v62 = vadd.f32 %v1754_v57, %v395_v55  ;;  %v398_v63 = vmul.f32 %v1776_v7, %v1044_v1  ;;  %v399_v0 = vmul.f32 %v1776_v7, %v1045_v56 }
  0x7e   :  { %778 = vst [vmem:[%s1992_s3 + $0x3a0] sm:$0xff] %v650_v45  ;;  %v528_v2 = vadd.f32 %v1754_v57, %v396_v58  ;;  %v529_v4 = vadd.f32 %v1754_v57, %v397_v59  ;;  %v400_v5 = vmul.f32 %v1776_v7, %v1048_v3  ;;  %v401_v6 = vmul.f32 %v1776_v7, %v1049_v60 }
  0x7f   :  { %779 = vst [vmem:[%s1992_s3 + $0x3a8] sm:$0xff] %v651_v46  ;;  %v654_v8 = vmax.f32 %v526_v61, 0.0  ;;  %v655_v9 = vmax.f32 %v527_v62, 0.0  ;;  %v530_v10 = vadd.f32 %v1754_v57, %v398_v63  ;;  %v531_v11 = vadd.f32 %v1754_v57, %v399_v0 }
  0x80   :  { %780 = vst [vmem:[%s1992_s3 + $0x3b0] sm:$0xff] %v652_v50  ;;  %v656_v12 = vmax.f32 %v528_v2, 0.0  ;;  %v657_v13 = vmax.f32 %v529_v4, 0.0  ;;  %v532_v14 = vadd.f32 %v1754_v57, %v400_v5  ;;  %v533_v7 = vadd.f32 %v1754_v57, %v401_v6 }
  0x81   :  { %781 = vst [vmem:[%s1992_s3 + $0x3b8] sm:$0xff] %v653_v51  ;;  %v658_v15 = vmax.f32 %v530_v10, 0.0  ;;  %v659_v16 = vmax.f32 %v531_v11, 0.0 }
  0x82   :  { %782 = vst [vmem:[%s1992_s3 + $0x3c0] sm:$0xff] %v654_v8  ;;  %v660_v17 = vmax.f32 %v532_v14, 0.0  ;;  %v661_v57 = vmax.f32 %v533_v7, 0.0 }
  0x83   :  { %783 = vst [vmem:[%s1992_s3 + $0x3c8] sm:$0xff] %v655_v9 }
  0x84   :  { %784 = vst [vmem:[%s1992_s3 + $0x3d0] sm:$0xff] %v656_v12 }
  0x85   :  { %785 = vst [vmem:[%s1992_s3 + $0x3d8] sm:$0xff] %v657_v13 }
  0x86   :  { %786 = vst [vmem:[%s1992_s3 + $0x3e0] sm:$0xff] %v658_v15 }
  0x87   :  { %787 = vst [vmem:[%s1992_s3 + $0x3e8] sm:$0xff] %v659_v16 }
  0x88   :  { %788 = vst [vmem:[%s1992_s3 + $0x3f0] sm:$0xff] %v660_v17 }
  0x89   :  { %789 = vst [vmem:[%s1992_s3 + $0x3f8] sm:$0xff] %v661_v57 }

</bundles_post_ra>
